<compile_context>
chip_gen: v7x
topology: tpu7x:2x2x1
jax: 0.10.0
libtpu: 0.0.40
codegen_flags: <defaults>
</compile_context>

<pallas_src>
import numpy as np

import jax
import jax.numpy as jnp
from jax import lax
from jax.experimental import pallas as pl
from jax.experimental.pallas import tpu as pltpu


# ----------------------------- static geometry -----------------------------
C_IN, H_IN, W_IN = 3, 32, 32            # input  [N, 3, 32, 32]
K1, C1 = 5, 6                           # conv1: 3 -> 6, 5x5, stride 1, VALID
H1, W1 = H_IN - K1 + 1, W_IN - K1 + 1   # 28 x 28
HP1, WP1 = H1 // 2, W1 // 2             # 14 x 14 after 2x2 max-pool
K2, C2 = 5, 16                          # conv2: 6 -> 16, 5x5
H2, W2 = HP1 - K2 + 1, WP1 - K2 + 1     # 10 x 10
HP2, WP2 = H2 // 2, W2 // 2             # 5 x 5
F1, F2, F3 = 120, 84, 10                # fc sizes

NB = 8                                  # samples / grid step (keep grid >= 2)
SROW1 = H_IN                            # 32 rows/sample in conv1 row space
SROW2 = H_IN // 2                       # 16 rows/sample in pooled1/conv2 space
R1 = NB * SROW1                         # 256 rows  (rows >= 28 per sample unused)
R2 = NB * SROW2                         # 128 rows  (rows >= 14 per sample unused)

L1 = (W1 // 2) * C1                     # 84  lanes per conv1 parity half
L2 = (W2 // 2) * C2                     # 80  lanes per conv2 parity half
PAR = 128                               # lane offset of the odd-parity half
N1 = PAR + L1                           # 212 conv1 matmul output lanes
N2 = PAR + L2                           # 208 conv2 matmul output lanes


# ------------------------------ Pallas kernel -------------------------------
def _shift_up(y, k):
    """result[r] = y[r + k]; bottom k rows become 0 (they only land in
    per-sample padding rows that are never consumed downstream)."""
    if k == 0:
        return y
    pad = jnp.zeros((k, y.shape[1]), y.dtype)
    return jnp.concatenate([y[k:, :], pad], axis=0)


def _net1_kernel(x_ref, wc1_ref, b1_ref, wc2_ref, b2_ref,
                 wf1_ref, bf1_ref, wf2_ref, bf2_ref, wf3_ref, bf3_ref,
                 out_ref,
                 s1_ref, s2_ref):
    f32, bf16 = jnp.float32, jnp.bfloat16

    # ---- conv1: one M=R1 matmul per row shift di, both parities in one RHS ----
    x = x_ref[...]                                               # [R1, 96] bf16
    acc1 = jnp.dot(x, wc1_ref[0], preferred_element_type=f32)    # [R1, 212] f32
    for di in range(1, K1):
        acc1 = acc1 + _shift_up(
            jnp.dot(x, wc1_ref[di], preferred_element_type=f32), di)
    relu1 = jnp.maximum(acc1 + b1_ref[...], 0.0)
    # parity (even/odd output column) max == half of the 2x2 pool
    s1_ref[...] = jnp.maximum(relu1[:, :L1], relu1[:, PAR:PAR + L1])  # [R1, 84]

    # row-pair max + 2:1 row compaction: (n*32+2h, n*32+2h+1) -> row n*16+h
    m1 = jnp.maximum(s1_ref[pl.ds(0, R2, stride=2), :],
                     s1_ref[pl.ds(1, R2, stride=2), :]).astype(bf16)  # [R2, 84]

    # ---- conv2 ---------------------------------------------------------------
    acc2 = jnp.dot(m1, wc2_ref[0], preferred_element_type=f32)   # [R2, 208] f32
    for di in range(1, K2):
        acc2 = acc2 + _shift_up(
            jnp.dot(m1, wc2_ref[di], preferred_element_type=f32), di)
    relu2 = jnp.maximum(acc2 + b2_ref[...], 0.0)
    s2_ref[...] = jnp.maximum(relu2[:, :L2], relu2[:, PAR:PAR + L2])  # [R2, 80]

    # ---- fc1: pool2 row max + NB-batched matmul, fused per pooled row --------
    y = None
    for h in range(HP2):
        lhs = jnp.maximum(s2_ref[pl.ds(2 * h, NB, stride=SROW2), :],
                          s2_ref[pl.ds(2 * h + 1, NB, stride=SROW2), :])  # [NB,80]
        t = jnp.dot(lhs.astype(bf16), wf1_ref[h], preferred_element_type=f32)
        y = t if y is None else y + t
    y = jnp.maximum(y + bf1_ref[...], 0.0)                       # [NB, 120]

    # ---- fc2 + relu, fc3, single [NB, 10] store ------------------------------
    y = jnp.maximum(jnp.dot(y.astype(bf16), wf2_ref[...],
                            preferred_element_type=f32) + bf2_ref[...], 0.0)
    y = jnp.dot(y.astype(bf16), wf3_ref[...],
                preferred_element_type=f32) + bf3_ref[...]
    out_ref[...] = y.astype(out_ref.dtype)


# --------------------------- wrapper / pallas_call ---------------------------
def lenet_forward(x_nchw, packed):
    (wc1, b1r, wc2, b2r, wf1, bf1, wf2, bf2, wf3, bf3) = packed
    n = x_nchw.shape[0]
    # NCHW -> NHWC -> [N, 32, 96] (lane layout w*Cin + c), pad batch, flatten rows.
    x3 = jnp.transpose(x_nchw, (0, 2, 3, 1)).reshape(n, H_IN, W_IN * C_IN)
    pad = (-n) % NB
    if pad:
        x3 = jnp.pad(x3, ((0, pad), (0, 0), (0, 0)))
    npad = x3.shape[0]
    x2 = x3.reshape(npad * H_IN, W_IN * C_IN).astype(jnp.bfloat16)

    def const_spec(a):
        nd = a.ndim
        return pl.BlockSpec(a.shape, lambda b, _nd=nd: (0,) * _nd)

    consts = (wc1, b1r, wc2, b2r, wf1, bf1, wf2, bf2, wf3, bf3)
    out = pl.pallas_call(
        _net1_kernel,
        out_shape=jax.ShapeDtypeStruct((npad, F3), jnp.float32),
        grid_spec=pltpu.PrefetchScalarGridSpec(
            num_scalar_prefetch=0,
            grid=(npad // NB,),
            in_specs=[pl.BlockSpec((NB * H_IN, W_IN * C_IN), lambda b: (b, 0))]
                     + [const_spec(a) for a in consts],
            out_specs=pl.BlockSpec((NB, F3), lambda b: (b, 0)),
            scratch_shapes=[
                pltpu.VMEM((R1, L1), jnp.float32),   # parity-pooled conv1
                pltpu.VMEM((R2, L2), jnp.float32),   # parity-pooled conv2
            ],
        ),
        compiler_params=pltpu.CompilerParams(
            dimension_semantics=("parallel",),
            vmem_limit_bytes=32 * 1024 * 1024,
        ),
    )(x2, *consts)
    return out[:n]


lenet_forward_jit = jax.jit(lenet_forward)


# ----------------- host-side weight packing (done once, free) ----------------
def _conv_weights_cat(w_oihw, w_in):
    """Toeplitz weights, even/odd output columns side by side:
    [k(di), w_in*Cin, 128 + (w_out//2)*Cout] (odd half starts at lane 128)."""
    cout, cin, k, _ = w_oihw.shape
    w_out = w_in - k + 1
    wo2 = w_out // 2
    L = wo2 * cout
    out = np.zeros((k, w_in * cin, PAR + L), np.float32)
    wt = np.transpose(w_oihw, (2, 3, 1, 0))          # [di, dj, cin, cout]
    for p in range(2):
        base = p * PAR
        for di in range(k):
            for j2 in range(wo2):
                j = 2 * j2 + p                        # output column
                for dj in range(k):
                    w = j + dj                        # input column
                    out[di, w * cin:(w + 1) * cin,
                        base + j2 * cout: base + (j2 + 1) * cout] = wt[di, dj]
    return out


def _conv_bias_row(b, wo2):
    L = wo2 * b.shape[0]
    row = np.zeros((1, PAR + L), np.float32)
    t = np.tile(b, wo2)
    row[0, :L] = t
    row[0, PAR:PAR + L] = t
    return row


def _fc1_weights(w_fc1):
    """Fold the PyTorch NCHW flatten (c*25 + h*5 + w) into fc1: -> [5, 80, 120]."""
    out = np.zeros((HP2, WP2 * C2, F1), np.float32)
    for i2 in range(HP2):
        for w2 in range(WP2):
            for co in range(C2):
                out[i2, w2 * C2 + co, :] = w_fc1[:, co * (HP2 * WP2) + i2 * WP2 + w2]
    return out


def pack_params(p):
    w1, b1 = (np.asarray(a) for a in p["conv1"])
    w2, b2 = (np.asarray(a) for a in p["conv2"])
    wl1, bl1 = (np.asarray(a) for a in p["fc1"])
    wl2, bl2 = (np.asarray(a) for a in p["fc2"])
    wl3, bl3 = (np.asarray(a) for a in p["fc3"])
    return (jnp.asarray(_conv_weights_cat(w1, W_IN), jnp.bfloat16),   # [5,96,212]
            jnp.asarray(_conv_bias_row(b1, W1 // 2)),                 # [1,212]
            jnp.asarray(_conv_weights_cat(w2, WP1), jnp.bfloat16),    # [5,84,208]
            jnp.asarray(_conv_bias_row(b2, W2 // 2)),                 # [1,208]
            jnp.asarray(_fc1_weights(wl1), jnp.bfloat16),             # [5,80,120]
            jnp.asarray(bl1[None, :], jnp.float32),                   # [1,120]
            jnp.asarray(wl2.T, jnp.bfloat16),                         # [120,84]
            jnp.asarray(bl2[None, :], jnp.float32),                   # [1,84]
            jnp.asarray(wl3.T, jnp.bfloat16),                         # [84,10]
            jnp.asarray(bl3[None, :], jnp.float32))                   # [1,10]


# ----------------------- parameters & pure-JAX reference ---------------------
def init_params(key):
    ks = jax.random.split(key, 10)

    def u(k, shape, fan_in):
        b = 1.0 / np.sqrt(fan_in)
        return jax.random.uniform(k, shape, jnp.float32, -b, b)

    return dict(
        conv1=(u(ks[0], (C1, C_IN, K1, K1), C_IN * K1 * K1),
               u(ks[1], (C1,), C_IN * K1 * K1)),
        conv2=(u(ks[2], (C2, C1, K2, K2), C1 * K2 * K2),
               u(ks[3], (C2,), C1 * K2 * K2)),
        fc1=(u(ks[4], (F1, C2 * HP2 * WP2), C2 * HP2 * WP2),
             u(ks[5], (F1,), C2 * HP2 * WP2)),
        fc2=(u(ks[6], (F2, F1), F1), u(ks[7], (F2,), F1)),
        fc3=(u(ks[8], (F3, F2), F2), u(ks[9], (F3,), F2)),
    )


def lenet_reference(x_nchw, p):
    w1, b1 = p["conv1"]; w2, b2 = p["conv2"]
    wl1, bl1 = p["fc1"]; wl2, bl2 = p["fc2"]; wl3, bl3 = p["fc3"]

    def conv(x, w, b):
        y = lax.conv_general_dilated(x, w, (1, 1), "VALID",
                                     dimension_numbers=("NCHW", "OIHW", "NCHW"))
        return y + b[None, :, None, None]

    def pool(x):
        return lax.reduce_window(x, -jnp.inf, lax.max,
                                 (1, 1, 2, 2), (1, 1, 2, 2), "VALID")

    x = pool(jax.nn.relu(conv(x_nchw, w1, b1)))
    x = pool(jax.nn.relu(conv(x, w2, b2)))
    x = x.reshape(x.shape[0], -1)
    x = jax.nn.relu(x @ wl1.T + bl1)
    x = jax.nn.relu(x @ wl2.T + bl2)
    return x @ wl3.T + bl3


# ------------------------------------ main -----------------------------------
if __name__ == "__main__":
    root = jax.random.PRNGKey(0)
    k_params, k_x = jax.random.split(root)

    params = init_params(k_params)
    packed = pack_params(params)

    # Input consistent with Net1's forward (16*5*5 flatten => 32x32x3 input).
    x = jax.random.normal(k_x, (16, C_IN, H_IN, W_IN), jnp.float32)

    out = jax.block_until_ready(lenet_forward_jit(x, packed))
    assert out.shape == (16, F3), out.shape

    # Pure-JAX reference check (loose tolerance: bf16 operands, f32 accumulation).
    ref = jax.block_until_ready(lenet_reference(x, params))
    err = float(jnp.max(jnp.abs(out - ref)))
    scale = float(jnp.max(jnp.abs(ref))) + 1e-6
    assert err / scale < 0.08, (err, scale)

    print("KERNEL_OK")
</pallas_src>

<mosaic_0001>
module attributes {stable_mosaic.version = 11 : i64} {
  func.func @_net1_kernel(%arg0: i32, %arg1: memref<256x96xbf16, #tpu.memory_space<vmem>>, %arg2: memref<5x96x212xbf16, #tpu.memory_space<vmem>>, %arg3: memref<1x212xf32, #tpu.memory_space<vmem>>, %arg4: memref<5x84x208xbf16, #tpu.memory_space<vmem>>, %arg5: memref<1x208xf32, #tpu.memory_space<vmem>>, %arg6: memref<5x80x120xbf16, #tpu.memory_space<vmem>>, %arg7: memref<1x120xf32, #tpu.memory_space<vmem>>, %arg8: memref<120x84xbf16, #tpu.memory_space<vmem>>, %arg9: memref<1x84xf32, #tpu.memory_space<vmem>>, %arg10: memref<84x10xbf16, #tpu.memory_space<vmem>>, %arg11: memref<1x10xf32, #tpu.memory_space<vmem>>, %arg12: memref<8x10xf32, #tpu.memory_space<vmem>>, %arg13: memref<256x84xf32, #tpu.memory_space<vmem>>, %arg14: memref<128x80xf32, #tpu.memory_space<vmem>>) attributes {dimension_semantics = [#tpu.dimension_semantics<parallel>], iteration_bounds = array<i64: 2>, scalar_prefetch = 0 : i64, scratch_operands = 2 : i64, tpu.core_type = #tpu.core_type<tc>, window_params = [{transform_indices = @transform_0, window_bounds = array<i64: 256, 96>}, {pipeline_mode = #tpu.pipeline_mode<synchronous>, transform_indices = @transform_1, window_bounds = array<i64: 5, 96, 212>}, {pipeline_mode = #tpu.pipeline_mode<synchronous>, transform_indices = @transform_2, window_bounds = array<i64: 1, 212>}, {pipeline_mode = #tpu.pipeline_mode<synchronous>, transform_indices = @transform_3, window_bounds = array<i64: 5, 84, 208>}, {pipeline_mode = #tpu.pipeline_mode<synchronous>, transform_indices = @transform_4, window_bounds = array<i64: 1, 208>}, {pipeline_mode = #tpu.pipeline_mode<synchronous>, transform_indices = @transform_5, window_bounds = array<i64: 5, 80, 120>}, {pipeline_mode = #tpu.pipeline_mode<synchronous>, transform_indices = @transform_6, window_bounds = array<i64: 1, 120>}, {pipeline_mode = #tpu.pipeline_mode<synchronous>, transform_indices = @transform_7, window_bounds = array<i64: 120, 84>}, {pipeline_mode = #tpu.pipeline_mode<synchronous>, transform_indices = @transform_8, window_bounds = array<i64: 1, 84>}, {pipeline_mode = #tpu.pipeline_mode<synchronous>, transform_indices = @transform_9, window_bounds = array<i64: 84, 10>}, {pipeline_mode = #tpu.pipeline_mode<synchronous>, transform_indices = @transform_10, window_bounds = array<i64: 1, 10>}, {transform_indices = @transform_11, window_bounds = array<i64: 8, 10>}]} {
    %c0 = arith.constant 0 : index
    %c0_0 = arith.constant 0 : index
    %0 = vector.load %arg1[%c0, %c0_0] : memref<256x96xbf16, #tpu.memory_space<vmem>>, vector<256x96xbf16>
    %c0_1 = arith.constant 0 : index
    %c0_2 = arith.constant 0 : index
    %c0_3 = arith.constant 0 : index
    %1 = vector.load %arg2[%c0_1, %c0_2, %c0_3] : memref<5x96x212xbf16, #tpu.memory_space<vmem>>, vector<1x96x212xbf16>
    %2 = vector.shape_cast %1 : vector<1x96x212xbf16> to vector<96x212xbf16>
    %cst = arith.constant dense<0.000000e+00> : vector<256x212xf32>
    %3 = tpu.matmul %0, %2, %cst {dimension_numbers = #tpu.dot_dimension_numbers<[1], [0], [0], [1], [0, 0, 1, 1], [], []>} : vector<256x96xbf16>, vector<96x212xbf16>, vector<256x212xf32> -> vector<256x212xf32>
    %c1 = arith.constant 1 : index
    %c0_4 = arith.constant 0 : index
    %c0_5 = arith.constant 0 : index
    %4 = vector.load %arg2[%c1, %c0_4, %c0_5] : memref<5x96x212xbf16, #tpu.memory_space<vmem>>, vector<1x96x212xbf16>
    %5 = vector.shape_cast %4 : vector<1x96x212xbf16> to vector<96x212xbf16>
    %cst_6 = arith.constant dense<0.000000e+00> : vector<256x212xf32>
    %6 = tpu.matmul %0, %5, %cst_6 {dimension_numbers = #tpu.dot_dimension_numbers<[1], [0], [0], [1], [0, 0, 1, 1], [], []>} : vector<256x96xbf16>, vector<96x212xbf16>, vector<256x212xf32> -> vector<256x212xf32>
    %cst_7 = arith.constant 0.000000e+00 : f32
    %7 = vector.broadcast %cst_7 : f32 to vector<1x212xf32>
    %8 = vector.extract_strided_slice %6 {offsets = [1, 0], sizes = [255, 212], strides = [1, 1]} : vector<256x212xf32> to vector<255x212xf32>
    %9 = tpu.concatenate %8, %7 in 0 : vector<255x212xf32>, vector<1x212xf32> -> vector<256x212xf32>
    %10 = arith.addf %3, %9 : vector<256x212xf32>
    %c2 = arith.constant 2 : index
    %c0_8 = arith.constant 0 : index
    %c0_9 = arith.constant 0 : index
    %11 = vector.load %arg2[%c2, %c0_8, %c0_9] : memref<5x96x212xbf16, #tpu.memory_space<vmem>>, vector<1x96x212xbf16>
    %12 = vector.shape_cast %11 : vector<1x96x212xbf16> to vector<96x212xbf16>
    %cst_10 = arith.constant dense<0.000000e+00> : vector<256x212xf32>
    %13 = tpu.matmul %0, %12, %cst_10 {dimension_numbers = #tpu.dot_dimension_numbers<[1], [0], [0], [1], [0, 0, 1, 1], [], []>} : vector<256x96xbf16>, vector<96x212xbf16>, vector<256x212xf32> -> vector<256x212xf32>
    %cst_11 = arith.constant 0.000000e+00 : f32
    %14 = vector.broadcast %cst_11 : f32 to vector<2x212xf32>
    %15 = vector.extract_strided_slice %13 {offsets = [2, 0], sizes = [254, 212], strides = [1, 1]} : vector<256x212xf32> to vector<254x212xf32>
    %16 = tpu.concatenate %15, %14 in 0 : vector<254x212xf32>, vector<2x212xf32> -> vector<256x212xf32>
    %17 = arith.addf %10, %16 : vector<256x212xf32>
    %c3 = arith.constant 3 : index
    %c0_12 = arith.constant 0 : index
    %c0_13 = arith.constant 0 : index
    %18 = vector.load %arg2[%c3, %c0_12, %c0_13] : memref<5x96x212xbf16, #tpu.memory_space<vmem>>, vector<1x96x212xbf16>
    %19 = vector.shape_cast %18 : vector<1x96x212xbf16> to vector<96x212xbf16>
    %cst_14 = arith.constant dense<0.000000e+00> : vector<256x212xf32>
    %20 = tpu.matmul %0, %19, %cst_14 {dimension_numbers = #tpu.dot_dimension_numbers<[1], [0], [0], [1], [0, 0, 1, 1], [], []>} : vector<256x96xbf16>, vector<96x212xbf16>, vector<256x212xf32> -> vector<256x212xf32>
    %cst_15 = arith.constant 0.000000e+00 : f32
    %21 = vector.broadcast %cst_15 : f32 to vector<3x212xf32>
    %22 = vector.extract_strided_slice %20 {offsets = [3, 0], sizes = [253, 212], strides = [1, 1]} : vector<256x212xf32> to vector<253x212xf32>
    %23 = tpu.concatenate %22, %21 in 0 : vector<253x212xf32>, vector<3x212xf32> -> vector<256x212xf32>
    %24 = arith.addf %17, %23 : vector<256x212xf32>
    %c4 = arith.constant 4 : index
    %c0_16 = arith.constant 0 : index
    %c0_17 = arith.constant 0 : index
    %25 = vector.load %arg2[%c4, %c0_16, %c0_17] : memref<5x96x212xbf16, #tpu.memory_space<vmem>>, vector<1x96x212xbf16>
    %26 = vector.shape_cast %25 : vector<1x96x212xbf16> to vector<96x212xbf16>
    %cst_18 = arith.constant dense<0.000000e+00> : vector<256x212xf32>
    %27 = tpu.matmul %0, %26, %cst_18 {dimension_numbers = #tpu.dot_dimension_numbers<[1], [0], [0], [1], [0, 0, 1, 1], [], []>} : vector<256x96xbf16>, vector<96x212xbf16>, vector<256x212xf32> -> vector<256x212xf32>
    %cst_19 = arith.constant 0.000000e+00 : f32
    %28 = vector.broadcast %cst_19 : f32 to vector<4x212xf32>
    %29 = vector.extract_strided_slice %27 {offsets = [4, 0], sizes = [252, 212], strides = [1, 1]} : vector<256x212xf32> to vector<252x212xf32>
    %30 = tpu.concatenate %29, %28 in 0 : vector<252x212xf32>, vector<4x212xf32> -> vector<256x212xf32>
    %31 = arith.addf %24, %30 : vector<256x212xf32>
    %c0_20 = arith.constant 0 : index
    %c0_21 = arith.constant 0 : index
    %32 = vector.load %arg3[%c0_20, %c0_21] : memref<1x212xf32, #tpu.memory_space<vmem>>, vector<1x212xf32>
    %33 = vector.broadcast %32 : vector<1x212xf32> to vector<256x212xf32>
    %34 = arith.addf %31, %33 : vector<256x212xf32>
    %cst_22 = arith.constant 0.000000e+00 : f32
    %35 = vector.broadcast %cst_22 : f32 to vector<256x212xf32>
    %36 = arith.maximumf %34, %35 : vector<256x212xf32>
    %37 = vector.extract_strided_slice %36 {offsets = [0, 0], sizes = [256, 84], strides = [1, 1]} : vector<256x212xf32> to vector<256x84xf32>
    %38 = vector.extract_strided_slice %36 {offsets = [0, 128], sizes = [256, 84], strides = [1, 1]} : vector<256x212xf32> to vector<256x84xf32>
    %39 = arith.maximumf %37, %38 : vector<256x84xf32>
    %c0_23 = arith.constant 0 : index
    %c0_24 = arith.constant 0 : index
    %40 = vector.load %arg13[%c0_23, %c0_24] : memref<256x84xf32, #tpu.memory_space<vmem>>, vector<256x84xf32>
    tpu.vector_store %arg13[%c0_23, %c0_24], %39 {strides = array<i32>} : memref<256x84xf32, #tpu.memory_space<vmem>>, vector<256x84xf32>,
    %c0_25 = arith.constant 0 : index
    %c0_26 = arith.constant 0 : index
    %41 = tpu.strided_load %arg13[%c0_25, %c0_26] {strides = array<i32: 2, 1>} : memref<256x84xf32, #tpu.memory_space<vmem>>, vector<128x84xf32>
    %c1_27 = arith.constant 1 : index
    %c0_28 = arith.constant 0 : index
    %42 = tpu.strided_load %arg13[%c1_27, %c0_28] {strides = array<i32: 2, 1>} : memref<256x84xf32, #tpu.memory_space<vmem>>, vector<128x84xf32>
    %43 = arith.maximumf %41, %42 : vector<128x84xf32>
    %44 = arith.truncf %43 : vector<128x84xf32> to vector<128x84xbf16>
    %c0_29 = arith.constant 0 : index
    %c0_30 = arith.constant 0 : index
    %c0_31 = arith.constant 0 : index
    %45 = vector.load %arg4[%c0_29, %c0_30, %c0_31] : memref<5x84x208xbf16, #tpu.memory_space<vmem>>, vector<1x84x208xbf16>
    %46 = vector.shape_cast %45 : vector<1x84x208xbf16> to vector<84x208xbf16>
    %cst_32 = arith.constant dense<0.000000e+00> : vector<128x208xf32>
    %47 = tpu.matmul %44, %46, %cst_32 {dimension_numbers = #tpu.dot_dimension_numbers<[1], [0], [0], [1], [0, 0, 1, 1], [], []>} : vector<128x84xbf16>, vector<84x208xbf16>, vector<128x208xf32> -> vector<128x208xf32>
    %c1_33 = arith.constant 1 : index
    %c0_34 = arith.constant 0 : index
    %c0_35 = arith.constant 0 : index
    %48 = vector.load %arg4[%c1_33, %c0_34, %c0_35] : memref<5x84x208xbf16, #tpu.memory_space<vmem>>, vector<1x84x208xbf16>
    %49 = vector.shape_cast %48 : vector<1x84x208xbf16> to vector<84x208xbf16>
    %cst_36 = arith.constant dense<0.000000e+00> : vector<128x208xf32>
    %50 = tpu.matmul %44, %49, %cst_36 {dimension_numbers = #tpu.dot_dimension_numbers<[1], [0], [0], [1], [0, 0, 1, 1], [], []>} : vector<128x84xbf16>, vector<84x208xbf16>, vector<128x208xf32> -> vector<128x208xf32>
    %cst_37 = arith.constant 0.000000e+00 : f32
    %51 = vector.broadcast %cst_37 : f32 to vector<1x208xf32>
    %52 = vector.extract_strided_slice %50 {offsets = [1, 0], sizes = [127, 208], strides = [1, 1]} : vector<128x208xf32> to vector<127x208xf32>
    %53 = tpu.concatenate %52, %51 in 0 : vector<127x208xf32>, vector<1x208xf32> -> vector<128x208xf32>
    %54 = arith.addf %47, %53 : vector<128x208xf32>
    %c2_38 = arith.constant 2 : index
    %c0_39 = arith.constant 0 : index
    %c0_40 = arith.constant 0 : index
    %55 = vector.load %arg4[%c2_38, %c0_39, %c0_40] : memref<5x84x208xbf16, #tpu.memory_space<vmem>>, vector<1x84x208xbf16>
    %56 = vector.shape_cast %55 : vector<1x84x208xbf16> to vector<84x208xbf16>
    %cst_41 = arith.constant dense<0.000000e+00> : vector<128x208xf32>
    %57 = tpu.matmul %44, %56, %cst_41 {dimension_numbers = #tpu.dot_dimension_numbers<[1], [0], [0], [1], [0, 0, 1, 1], [], []>} : vector<128x84xbf16>, vector<84x208xbf16>, vector<128x208xf32> -> vector<128x208xf32>
    %cst_42 = arith.constant 0.000000e+00 : f32
    %58 = vector.broadcast %cst_42 : f32 to vector<2x208xf32>
    %59 = vector.extract_strided_slice %57 {offsets = [2, 0], sizes = [126, 208], strides = [1, 1]} : vector<128x208xf32> to vector<126x208xf32>
    %60 = tpu.concatenate %59, %58 in 0 : vector<126x208xf32>, vector<2x208xf32> -> vector<128x208xf32>
    %61 = arith.addf %54, %60 : vector<128x208xf32>
    %c3_43 = arith.constant 3 : index
    %c0_44 = arith.constant 0 : index
    %c0_45 = arith.constant 0 : index
    %62 = vector.load %arg4[%c3_43, %c0_44, %c0_45] : memref<5x84x208xbf16, #tpu.memory_space<vmem>>, vector<1x84x208xbf16>
    %63 = vector.shape_cast %62 : vector<1x84x208xbf16> to vector<84x208xbf16>
    %cst_46 = arith.constant dense<0.000000e+00> : vector<128x208xf32>
    %64 = tpu.matmul %44, %63, %cst_46 {dimension_numbers = #tpu.dot_dimension_numbers<[1], [0], [0], [1], [0, 0, 1, 1], [], []>} : vector<128x84xbf16>, vector<84x208xbf16>, vector<128x208xf32> -> vector<128x208xf32>
    %cst_47 = arith.constant 0.000000e+00 : f32
    %65 = vector.broadcast %cst_47 : f32 to vector<3x208xf32>
    %66 = vector.extract_strided_slice %64 {offsets = [3, 0], sizes = [125, 208], strides = [1, 1]} : vector<128x208xf32> to vector<125x208xf32>
    %67 = tpu.concatenate %66, %65 in 0 : vector<125x208xf32>, vector<3x208xf32> -> vector<128x208xf32>
    %68 = arith.addf %61, %67 : vector<128x208xf32>
    %c4_48 = arith.constant 4 : index
    %c0_49 = arith.constant 0 : index
    %c0_50 = arith.constant 0 : index
    %69 = vector.load %arg4[%c4_48, %c0_49, %c0_50] : memref<5x84x208xbf16, #tpu.memory_space<vmem>>, vector<1x84x208xbf16>
    %70 = vector.shape_cast %69 : vector<1x84x208xbf16> to vector<84x208xbf16>
    %cst_51 = arith.constant dense<0.000000e+00> : vector<128x208xf32>
    %71 = tpu.matmul %44, %70, %cst_51 {dimension_numbers = #tpu.dot_dimension_numbers<[1], [0], [0], [1], [0, 0, 1, 1], [], []>} : vector<128x84xbf16>, vector<84x208xbf16>, vector<128x208xf32> -> vector<128x208xf32>
    %cst_52 = arith.constant 0.000000e+00 : f32
    %72 = vector.broadcast %cst_52 : f32 to vector<4x208xf32>
    %73 = vector.extract_strided_slice %71 {offsets = [4, 0], sizes = [124, 208], strides = [1, 1]} : vector<128x208xf32> to vector<124x208xf32>
    %74 = tpu.concatenate %73, %72 in 0 : vector<124x208xf32>, vector<4x208xf32> -> vector<128x208xf32>
    %75 = arith.addf %68, %74 : vector<128x208xf32>
    %c0_53 = arith.constant 0 : index
    %c0_54 = arith.constant 0 : index
    %76 = vector.load %arg5[%c0_53, %c0_54] : memref<1x208xf32, #tpu.memory_space<vmem>>, vector<1x208xf32>
    %77 = vector.broadcast %76 : vector<1x208xf32> to vector<128x208xf32>
    %78 = arith.addf %75, %77 : vector<128x208xf32>
    %cst_55 = arith.constant 0.000000e+00 : f32
    %79 = vector.broadcast %cst_55 : f32 to vector<128x208xf32>
    %80 = arith.maximumf %78, %79 : vector<128x208xf32>
    %81 = vector.extract_strided_slice %80 {offsets = [0, 0], sizes = [128, 80], strides = [1, 1]} : vector<128x208xf32> to vector<128x80xf32>
    %82 = vector.extract_strided_slice %80 {offsets = [0, 128], sizes = [128, 80], strides = [1, 1]} : vector<128x208xf32> to vector<128x80xf32>
    %83 = arith.maximumf %81, %82 : vector<128x80xf32>
    %c0_56 = arith.constant 0 : index
    %c0_57 = arith.constant 0 : index
    %84 = vector.load %arg14[%c0_56, %c0_57] : memref<128x80xf32, #tpu.memory_space<vmem>>, vector<128x80xf32>
    tpu.vector_store %arg14[%c0_56, %c0_57], %83 {strides = array<i32>} : memref<128x80xf32, #tpu.memory_space<vmem>>, vector<128x80xf32>,
    %c0_58 = arith.constant 0 : index
    %c0_59 = arith.constant 0 : index
    %85 = tpu.strided_load %arg14[%c0_58, %c0_59] {strides = array<i32: 16, 1>} : memref<128x80xf32, #tpu.memory_space<vmem>>, vector<8x80xf32>
    %c1_60 = arith.constant 1 : index
    %c0_61 = arith.constant 0 : index
    %86 = tpu.strided_load %arg14[%c1_60, %c0_61] {strides = array<i32: 16, 1>} : memref<128x80xf32, #tpu.memory_space<vmem>>, vector<8x80xf32>
    %87 = arith.maximumf %85, %86 : vector<8x80xf32>
    %88 = arith.truncf %87 : vector<8x80xf32> to vector<8x80xbf16>
    %c0_62 = arith.constant 0 : index
    %c0_63 = arith.constant 0 : index
    %c0_64 = arith.constant 0 : index
    %89 = vector.load %arg6[%c0_62, %c0_63, %c0_64] : memref<5x80x120xbf16, #tpu.memory_space<vmem>>, vector<1x80x120xbf16>
    %90 = vector.shape_cast %89 : vector<1x80x120xbf16> to vector<80x120xbf16>
    %cst_65 = arith.constant dense<0.000000e+00> : vector<8x120xf32>
    %91 = tpu.matmul %88, %90, %cst_65 {dimension_numbers = #tpu.dot_dimension_numbers<[1], [0], [0], [1], [0, 0, 1, 1], [], []>} : vector<8x80xbf16>, vector<80x120xbf16>, vector<8x120xf32> -> vector<8x120xf32>
    %c2_66 = arith.constant 2 : index
    %c0_67 = arith.constant 0 : index
    %92 = tpu.strided_load %arg14[%c2_66, %c0_67] {strides = array<i32: 16, 1>} : memref<128x80xf32, #tpu.memory_space<vmem>>, vector<8x80xf32>
    %c3_68 = arith.constant 3 : index
    %c0_69 = arith.constant 0 : index
    %93 = tpu.strided_load %arg14[%c3_68, %c0_69] {strides = array<i32: 16, 1>} : memref<128x80xf32, #tpu.memory_space<vmem>>, vector<8x80xf32>
    %94 = arith.maximumf %92, %93 : vector<8x80xf32>
    %95 = arith.truncf %94 : vector<8x80xf32> to vector<8x80xbf16>
    %c1_70 = arith.constant 1 : index
    %c0_71 = arith.constant 0 : index
    %c0_72 = arith.constant 0 : index
    %96 = vector.load %arg6[%c1_70, %c0_71, %c0_72] : memref<5x80x120xbf16, #tpu.memory_space<vmem>>, vector<1x80x120xbf16>
    %97 = vector.shape_cast %96 : vector<1x80x120xbf16> to vector<80x120xbf16>
    %cst_73 = arith.constant dense<0.000000e+00> : vector<8x120xf32>
    %98 = tpu.matmul %95, %97, %cst_73 {dimension_numbers = #tpu.dot_dimension_numbers<[1], [0], [0], [1], [0, 0, 1, 1], [], []>} : vector<8x80xbf16>, vector<80x120xbf16>, vector<8x120xf32> -> vector<8x120xf32>
    %99 = arith.addf %91, %98 : vector<8x120xf32>
    %c4_74 = arith.constant 4 : index
    %c0_75 = arith.constant 0 : index
    %100 = tpu.strided_load %arg14[%c4_74, %c0_75] {strides = array<i32: 16, 1>} : memref<128x80xf32, #tpu.memory_space<vmem>>, vector<8x80xf32>
    %c5 = arith.constant 5 : index
    %c0_76 = arith.constant 0 : index
    %101 = tpu.strided_load %arg14[%c5, %c0_76] {strides = array<i32: 16, 1>} : memref<128x80xf32, #tpu.memory_space<vmem>>, vector<8x80xf32>
    %102 = arith.maximumf %100, %101 : vector<8x80xf32>
    %103 = arith.truncf %102 : vector<8x80xf32> to vector<8x80xbf16>
    %c2_77 = arith.constant 2 : index
    %c0_78 = arith.constant 0 : index
    %c0_79 = arith.constant 0 : index
    %104 = vector.load %arg6[%c2_77, %c0_78, %c0_79] : memref<5x80x120xbf16, #tpu.memory_space<vmem>>, vector<1x80x120xbf16>
    %105 = vector.shape_cast %104 : vector<1x80x120xbf16> to vector<80x120xbf16>
    %cst_80 = arith.constant dense<0.000000e+00> : vector<8x120xf32>
    %106 = tpu.matmul %103, %105, %cst_80 {dimension_numbers = #tpu.dot_dimension_numbers<[1], [0], [0], [1], [0, 0, 1, 1], [], []>} : vector<8x80xbf16>, vector<80x120xbf16>, vector<8x120xf32> -> vector<8x120xf32>
    %107 = arith.addf %99, %106 : vector<8x120xf32>
    %c6 = arith.constant 6 : index
    %c0_81 = arith.constant 0 : index
    %108 = tpu.strided_load %arg14[%c6, %c0_81] {strides = array<i32: 16, 1>} : memref<128x80xf32, #tpu.memory_space<vmem>>, vector<8x80xf32>
    %c7 = arith.constant 7 : index
    %c0_82 = arith.constant 0 : index
    %109 = tpu.strided_load %arg14[%c7, %c0_82] {strides = array<i32: 16, 1>} : memref<128x80xf32, #tpu.memory_space<vmem>>, vector<8x80xf32>
    %110 = arith.maximumf %108, %109 : vector<8x80xf32>
    %111 = arith.truncf %110 : vector<8x80xf32> to vector<8x80xbf16>
    %c3_83 = arith.constant 3 : index
    %c0_84 = arith.constant 0 : index
    %c0_85 = arith.constant 0 : index
    %112 = vector.load %arg6[%c3_83, %c0_84, %c0_85] : memref<5x80x120xbf16, #tpu.memory_space<vmem>>, vector<1x80x120xbf16>
    %113 = vector.shape_cast %112 : vector<1x80x120xbf16> to vector<80x120xbf16>
    %cst_86 = arith.constant dense<0.000000e+00> : vector<8x120xf32>
    %114 = tpu.matmul %111, %113, %cst_86 {dimension_numbers = #tpu.dot_dimension_numbers<[1], [0], [0], [1], [0, 0, 1, 1], [], []>} : vector<8x80xbf16>, vector<80x120xbf16>, vector<8x120xf32> -> vector<8x120xf32>
    %115 = arith.addf %107, %114 : vector<8x120xf32>
    %c8 = arith.constant 8 : index
    %c0_87 = arith.constant 0 : index
    %116 = tpu.strided_load %arg14[%c8, %c0_87] {strides = array<i32: 16, 1>} : memref<128x80xf32, #tpu.memory_space<vmem>>, vector<8x80xf32>
    %c9 = arith.constant 9 : index
    %c0_88 = arith.constant 0 : index
    %117 = tpu.strided_load %arg14[%c9, %c0_88] {strides = array<i32: 16, 1>} : memref<128x80xf32, #tpu.memory_space<vmem>>, vector<8x80xf32>
    %118 = arith.maximumf %116, %117 : vector<8x80xf32>
    %119 = arith.truncf %118 : vector<8x80xf32> to vector<8x80xbf16>
    %c4_89 = arith.constant 4 : index
    %c0_90 = arith.constant 0 : index
    %c0_91 = arith.constant 0 : index
    %120 = vector.load %arg6[%c4_89, %c0_90, %c0_91] : memref<5x80x120xbf16, #tpu.memory_space<vmem>>, vector<1x80x120xbf16>
    %121 = vector.shape_cast %120 : vector<1x80x120xbf16> to vector<80x120xbf16>
    %cst_92 = arith.constant dense<0.000000e+00> : vector<8x120xf32>
    %122 = tpu.matmul %119, %121, %cst_92 {dimension_numbers = #tpu.dot_dimension_numbers<[1], [0], [0], [1], [0, 0, 1, 1], [], []>} : vector<8x80xbf16>, vector<80x120xbf16>, vector<8x120xf32> -> vector<8x120xf32>
    %123 = arith.addf %115, %122 : vector<8x120xf32>
    %c0_93 = arith.constant 0 : index
    %c0_94 = arith.constant 0 : index
    %124 = vector.load %arg7[%c0_93, %c0_94] : memref<1x120xf32, #tpu.memory_space<vmem>>, vector<1x120xf32>
    %125 = vector.broadcast %124 : vector<1x120xf32> to vector<8x120xf32>
    %126 = arith.addf %123, %125 : vector<8x120xf32>
    %cst_95 = arith.constant 0.000000e+00 : f32
    %127 = vector.broadcast %cst_95 : f32 to vector<8x120xf32>
    %128 = arith.maximumf %126, %127 : vector<8x120xf32>
    %129 = arith.truncf %128 : vector<8x120xf32> to vector<8x120xbf16>
    %c0_96 = arith.constant 0 : index
    %c0_97 = arith.constant 0 : index
    %130 = vector.load %arg8[%c0_96, %c0_97] : memref<120x84xbf16, #tpu.memory_space<vmem>>, vector<120x84xbf16>
    %cst_98 = arith.constant dense<0.000000e+00> : vector<8x84xf32>
    %131 = tpu.matmul %129, %130, %cst_98 {dimension_numbers = #tpu.dot_dimension_numbers<[1], [0], [0], [1], [0, 0, 1, 1], [], []>} : vector<8x120xbf16>, vector<120x84xbf16>, vector<8x84xf32> -> vector<8x84xf32>
    %c0_99 = arith.constant 0 : index
    %c0_100 = arith.constant 0 : index
    %132 = vector.load %arg9[%c0_99, %c0_100] : memref<1x84xf32, #tpu.memory_space<vmem>>, vector<1x84xf32>
    %133 = vector.broadcast %132 : vector<1x84xf32> to vector<8x84xf32>
    %134 = arith.addf %131, %133 : vector<8x84xf32>
    %cst_101 = arith.constant 0.000000e+00 : f32
    %135 = vector.broadcast %cst_101 : f32 to vector<8x84xf32>
    %136 = arith.maximumf %134, %135 : vector<8x84xf32>
    %137 = arith.truncf %136 : vector<8x84xf32> to vector<8x84xbf16>
    %c0_102 = arith.constant 0 : index
    %c0_103 = arith.constant 0 : index
    %138 = vector.load %arg10[%c0_102, %c0_103] : memref<84x10xbf16, #tpu.memory_space<vmem>>, vector<84x10xbf16>
    %cst_104 = arith.constant dense<0.000000e+00> : vector<8x10xf32>
    %139 = tpu.matmul %137, %138, %cst_104 {dimension_numbers = #tpu.dot_dimension_numbers<[1], [0], [0], [1], [0, 0, 1, 1], [], []>} : vector<8x84xbf16>, vector<84x10xbf16>, vector<8x10xf32> -> vector<8x10xf32>
    %c0_105 = arith.constant 0 : index
    %c0_106 = arith.constant 0 : index
    %140 = vector.load %arg11[%c0_105, %c0_106] : memref<1x10xf32, #tpu.memory_space<vmem>>, vector<1x10xf32>
    %141 = vector.broadcast %140 : vector<1x10xf32> to vector<8x10xf32>
    %142 = arith.addf %139, %141 : vector<8x10xf32>
    %c0_107 = arith.constant 0 : index
    %c0_108 = arith.constant 0 : index
    %143 = vector.load %arg12[%c0_107, %c0_108] : memref<8x10xf32, #tpu.memory_space<vmem>>, vector<8x10xf32>
    tpu.vector_store %arg12[%c0_107, %c0_108], %142 {strides = array<i32>} : memref<8x10xf32, #tpu.memory_space<vmem>>, vector<8x10xf32>,
    return
  }
  func.func @transform_0(%arg0: i32) -> (i32, i32) {
    %c0_i32 = arith.constant 0 : i32
    %c0_i32_0 = arith.constant 0 : i32
    return %arg0, %c0_i32 : i32, i32
  }
  func.func @transform_1(%arg0: i32) -> (i32, i32, i32) {
    %c0_i32 = arith.constant 0 : i32
    %c0_i32_0 = arith.constant 0 : i32
    %c0_i32_1 = arith.constant 0 : i32
    %c0_i32_2 = arith.constant 0 : i32
    return %c0_i32, %c0_i32_0, %c0_i32_1 : i32, i32, i32
  }
  func.func @transform_2(%arg0: i32) -> (i32, i32) {
    %c0_i32 = arith.constant 0 : i32
    %c0_i32_0 = arith.constant 0 : i32
    %c0_i32_1 = arith.constant 0 : i32
    return %c0_i32, %c0_i32_0 : i32, i32
  }
  func.func @transform_3(%arg0: i32) -> (i32, i32, i32) {
    %c0_i32 = arith.constant 0 : i32
    %c0_i32_0 = arith.constant 0 : i32
    %c0_i32_1 = arith.constant 0 : i32
    %c0_i32_2 = arith.constant 0 : i32
    return %c0_i32, %c0_i32_0, %c0_i32_1 : i32, i32, i32
  }
  func.func @transform_4(%arg0: i32) -> (i32, i32) {
    %c0_i32 = arith.constant 0 : i32
    %c0_i32_0 = arith.constant 0 : i32
    %c0_i32_1 = arith.constant 0 : i32
    return %c0_i32, %c0_i32_0 : i32, i32
  }
  func.func @transform_5(%arg0: i32) -> (i32, i32, i32) {
    %c0_i32 = arith.constant 0 : i32
    %c0_i32_0 = arith.constant 0 : i32
    %c0_i32_1 = arith.constant 0 : i32
    %c0_i32_2 = arith.constant 0 : i32
    return %c0_i32, %c0_i32_0, %c0_i32_1 : i32, i32, i32
  }
  func.func @transform_6(%arg0: i32) -> (i32, i32) {
    %c0_i32 = arith.constant 0 : i32
    %c0_i32_0 = arith.constant 0 : i32
    %c0_i32_1 = arith.constant 0 : i32
    return %c0_i32, %c0_i32_0 : i32, i32
  }
  func.func @transform_7(%arg0: i32) -> (i32, i32) {
    %c0_i32 = arith.constant 0 : i32
    %c0_i32_0 = arith.constant 0 : i32
    %c0_i32_1 = arith.constant 0 : i32
    return %c0_i32, %c0_i32_0 : i32, i32
  }
  func.func @transform_8(%arg0: i32) -> (i32, i32) {
    %c0_i32 = arith.constant 0 : i32
    %c0_i32_0 = arith.constant 0 : i32
    %c0_i32_1 = arith.constant 0 : i32
    return %c0_i32, %c0_i32_0 : i32, i32
  }
  func.func @transform_9(%arg0: i32) -> (i32, i32) {
    %c0_i32 = arith.constant 0 : i32
    %c0_i32_0 = arith.constant 0 : i32
    %c0_i32_1 = arith.constant 0 : i32
    return %c0_i32, %c0_i32_0 : i32, i32
  }
  func.func @transform_10(%arg0: i32) -> (i32, i32) {
    %c0_i32 = arith.constant 0 : i32
    %c0_i32_0 = arith.constant 0 : i32
    %c0_i32_1 = arith.constant 0 : i32
    return %c0_i32, %c0_i32_0 : i32, i32
  }
  func.func @transform_11(%arg0: i32) -> (i32, i32) {
    %c0_i32 = arith.constant 0 : i32
    %c0_i32_0 = arith.constant 0 : i32
    return %arg0, %c0_i32 : i32, i32
  }
}

</mosaic_0001>

<bundles_post_ra>
// kernel: lenet_forward.1
= control target key start
LH: loop header
LB: loop body
LE: loop exit
PB: predicated region body
PF: predicated region fallthrough
CT: control target
= control target key end

     0   :  { %16 = vsyncpa [#allocation5], 0  ;;  %s9301_s0 = inlined_call_operand.vmem [shape: bf16[512,96], index: 0, kind: input, shape index: {}]   ;;  %s9302_s1 = inlined_call_operand.vmem [shape: bf16[5,96,212], index: 1, kind: input, shape index: {}]   ;;  %s9303_s2 = inlined_call_operand.vmem [shape: f32[1,212], index: 2, kind: input, shape index: {}]   ;;  %s9304_s3 = inlined_call_operand.vmem [shape: bf16[5,84,208], index: 3, kind: input, shape index: {}]   ;;  %s9305_s4 = inlined_call_operand.vmem [shape: f32[1,208], index: 4, kind: input, shape index: {}]   ;;  %s9306_s5 = inlined_call_operand.vmem [shape: bf16[5,80,120], index: 5, kind: input, shape index: {}]   ;;  %s9307_s6 = inlined_call_operand.vmem [shape: f32[1,120], index: 6, kind: input, shape index: {}]   ;;  %s9308_s7 = inlined_call_operand.vmem [shape: bf16[120,84], index: 7, kind: input, shape index: {}]   ;;  %s9309_s8 = inlined_call_operand.vmem [shape: f32[1,84], index: 8, kind: input, shape index: {}]   ;;  %s9310_s9 = inlined_call_operand.vmem [shape: bf16[84,10], index: 9, kind: input, shape index: {}]   ;;  %s9311_s10 = inlined_call_operand.vmem [shape: f32[1,10], index: 10, kind: input, shape index: {}]   ;;  %s9312_s11 = inlined_call_operand.hbm [shape: f32[16,10], index: 11, kind: output, shape index: {}]  }
   0x1   :  { %18 = vsyncpa [#allocation5 + $0x1], 0  ;;  %s6879_s17 = smov 0   ;;  %s6881_s18 = smov 0  }
   0x2   :  { %s6883_s19 = smov 0   ;;  %s6885_s20 = smov 0  }
   0x3 LB: > { %9332 = sst [smem:[#allocation7_spill]] %s6809_s19  ;;  %s6900_s21 = sadd.s32 4294967295, %s6813_s20   ;;  %s6813_s20 = sphi %s6885_s20, %s9523_s20   ;;  %s6809_s19 = sphi %s6883_s19, %s9520_s19   ;;  %s6805_s18 = sphi %s6881_s18, %s9522_s18   ;;  %s6801_s17 = sphi %s6879_s17, %s9521_s17  }
   0x4   : > { %s5870_s22 = sadd.s32 4294967294, %s6813_s20   ;;  %s6904_s23 = sadd.s32 1, %s6813_s20  }
   0x5   : > { %s267_s24 = sadd.s32 1, %s6809_s19  ;;  %s264_s25 = ssub.s32 %s6813_s20, %s6904_s23 }
   0x6   : > { %p277_p0 = scmp.ne.s32.totalorder %s6809_s19, %s6805_s18  ;;  %p265_p1 = scmp.eq.s32.totalorder %s264_s25, 0 }
   0x7   : > { %p278_p2 = scmp.eq.s32.totalorder %s6900_s21, 1  ;;  %p283_p3 = scmp.ne.s32.totalorder %s6805_s18, %s6801_s17 }
   0x8   : > { %p284_p4 = scmp.eq.s32.totalorder %s5870_s22, 1  ;;  %p5873_p7 = scmp.ge.s32.totalorder %s6813_s20, 1 }
   0x9   : > { %s6915_s26 = scalar_select %p265_p1, %s6809_s19, %s267_s24  }
   0xa   : > { %p6917_p5 = por %p278_p2, %p277_p0  ;;  %p6921_p6 = por %p284_p4, %p283_p3 }
   0xb   : > { %9333 = sst [smem:[#allocation8_spill]] %s6915_s26  ;;  %p341_p8 = scmp.lt.s32.totalorder %s6813_s20, 3 }
   0xd   : > { %p342_p9 = pnand %p5873_p7, %p341_p8 }
   0xf   : > { %345 = sbr.rel (%p342_p9) target bundleno = 1763 (0x6e3), region = 64 }
  0x16   : > { %v6517_v0 = vld [vmem:[%s9302_s1 + $0x64] ss:$8 sps:$4 sm:$0xff]   ;;  %v6519_v1 = vld [vmem:[%s9302_s1 + $0x60] ss:$8 sps:$4 sm:$0xff]   ;;  %v9314_v2 = vmov 0   ;;  %s5875_s14 = sshll.u32 %s6900_s21, 5 }
  0x17   : > { %666 = vmatprep.mubr.bf16.mxu0 %v9314_v2  ;;  %1176 = vmatprep.mubr.bf16.mxu1 %v9314_v2  ;;  %v6520_v3 = vld [vmem:[%s9302_s1 + $0x4] ss:$8 sps:$4 sm:$0xff]   ;;  %v6522_v4 = vld [vmem:[%s9302_s1] ss:$8 sps:$4 sm:$0xff]   ;;  %v6523_v5 = vld [vmem:[%s9302_s1 + $0x74] ss:$8 sps:$4 sm:$0xff]  }
  0x18   : > { %634 = vmatprep.subr.bf16.mxu0 %v6517_v0  ;;  %v6525_v6 = vld [vmem:[%s9302_s1 + $0x70] ss:$8 sps:$4 sm:$0xff]   ;;  %1144 = vmatprep.subr.bf16.mxu1 %v6520_v3  ;;  %v6526_v7 = vld [vmem:[%s9302_s1 + $0x14] ss:$8 sps:$4 sm:$0xff]   ;;  %p382_p10 = scmp.lt.s32.totalorder %s5875_s14, 63  ;;  %vm585_vm0 = vcmask 785408  }
  0x19   : > { %635 = vmatpush1.bf16.msra.mxu0 %v6519_v1  ;;  %1145 = vmatpush1.bf16.msra.mxu1 %v6522_v4  ;;  %v6528_v8 = vld [vmem:[%s9302_s1 + $0x10] ss:$8 sps:$4 sm:$0xff]   ;;  %v6529_v9 = vld [vmem:[%s9302_s1 + $0x84] ss:$8 sps:$4 sm:$0xff]   ;;  %v6531_v10 = vld [vmem:[%s9302_s1 + $0x80] ss:$8 sps:$4 sm:$0xff]  }
  0x1a   : > { %636 = vmatprep.subr.bf16.mxu0 %v6523_v5  ;;  %1146 = vmatprep.subr.bf16.mxu1 %v6526_v7  ;;  %v6532_v11 = vld [vmem:[%s9302_s1 + $0x24] ss:$8 sps:$4 sm:$0xff]   ;;  %v6535_v12 = vld [vmem:[%s9302_s1 + $0x94] ss:$8 sps:$4 sm:$0xff]   ;;  %s9525_s14 = smov (!%p382_p10, %s5875_s14), 63  ;;  %vm891_vm1 = vcmask 1046528  }
  0x1b   : > { %v6534_v13 = vld [vmem:[%s9302_s1 + $0x20] ss:$8 sps:$4 sm:$0xff]   ;;  %v6538_v14 = vld [vmem:[%s9302_s1 + $0x34] ss:$8 sps:$4 sm:$0xff]   ;;  %v6537_v15 = vld [vmem:[%s9302_s1 + $0x90] ss:$8 sps:$4 sm:$0xff]  }
  0x1c   : > { %v6541_v16 = vld [vmem:[%s9302_s1 + $0xa4] ss:$8 sps:$4 sm:$0xff]   ;;  %s5876_s12 = sshll.u32 %s9525_s14, 2  ;;  %v6540_v17 = vld [vmem:[%s9302_s1 + $0x30] ss:$8 sps:$4 sm:$0xff]   ;;  %vm1667_vm2 = vcmask 1045504  }
  0x1d   : > { %637 = vmatpush1.bf16.msra.mxu0 %v6525_v6  ;;  %1147 = vmatpush1.bf16.msra.mxu1 %v6528_v8  ;;  %v6544_v18 = vld [vmem:[%s9302_s1 + $0x44] ss:$8 sps:$4 sm:$0xff]   ;;  %v6543_v19 = vld [vmem:[%s9302_s1 + $0xa0] ss:$8 sps:$4 sm:$0xff]   ;;  %s6990_s30 = scalar_lea.vmem %s9301_s0, %s5876_s12  ;;  %v6547_v20 = vld [vmem:[%s9302_s1 + $0xb4] ss:$8 sps:$4 sm:$0xff]  }
  0x1e   : > { %638 = vmatprep.subr.bf16.mxu0 %v6529_v9  ;;  %1148 = vmatprep.subr.bf16.mxu1 %v6532_v11  ;;  %v6546_v21 = vld [vmem:[%s9302_s1 + $0x40] ss:$8 sps:$4 sm:$0xff]   ;;  %v6550_v22 = vld [vmem:[%s9302_s1 + $0x54] ss:$8 sps:$4 sm:$0xff]   ;;  %v6549_v23 = vld [vmem:[%s9302_s1 + $0xb0] ss:$8 sps:$4 sm:$0xff]  }
  0x1f   : > { %v6556_v24 = vld [vmem:[%s9302_s1 + $0xc4] ss:$8 sps:$4 sm:$0xff]   ;;  %v6552_v25 = vld [vmem:[%s9302_s1 + $0x50] ss:$8 sps:$4 sm:$0xff]   ;;  %v6554_v27 = vld [vmem:[%s9302_s1 + $0xc0] ss:$8 sps:$4 sm:$0xff]  }
  0x20   : > { %v7011_v26 = vld [vmem:[%s6990_s30] sm:$0xff]   ;;  %v6561_v28 = vld [vmem:[%s9302_s1 + $0xd4] ss:$8 sps:$4 sm:$0xff]   ;;  %v6559_v29 = vld [vmem:[%s9302_s1 + $0xd0] ss:$8 sps:$4 sm:$0xff]   ;;  %vm2254_vm3 = vcmask 1044480  }
  0x21   : > { %639 = vmatpush1.bf16.msra.mxu0 %v6531_v10  ;;  %1149 = vmatpush1.bf16.msra.mxu1 %v6534_v13  ;;  %v6567_v30 = vld [vmem:[%s9302_s1 + $0xe4] ss:$8 sps:$4 sm:$0xff]   ;;  %v6565_v32 = vld [vmem:[%s9302_s1 + $0xe0] ss:$8 sps:$4 sm:$0xff]   ;;  %v6573_v33 = vld [vmem:[%s9302_s1 + $0xf4] ss:$8 sps:$4 sm:$0xff]  }
  0x22   : > { %640 = vmatprep.subr.bf16.mxu0 %v6535_v12  ;;  %1150 = vmatprep.subr.bf16.mxu1 %v6538_v14  ;;  %v7032_v31 = vld [vmem:[%s6990_s30 + $0x8] sm:$0xff]   ;;  %v6571_v34 = vld [vmem:[%s9302_s1 + $0xf0] ss:$8 sps:$4 sm:$0xff]   ;;  %v6587_v40 = vld [vmem:[%s9302_s1 + $0x114] ss:$8 sps:$4 sm:$0xff]   ;;  %vm3492_vm4 = vcmask 1041408  }
  0x23   : > { %v6578_v35 = vld [vmem:[%s9302_s1 + $0x104] ss:$8 sps:$4 sm:$0xff]   ;;  %v6582_v36 = vld [vmem:[%s9302_s1 + $0x120] ss:$8 sps:$4 sm:$0xff]   ;;  %v7059_v38 = vld [vmem:[%s6990_s30 + $0x10] sm:$0xff]   ;;  %vm2841_vm5 = vcmask 1043456  }
  0x24   : > { %v6584_v37 = vld [vmem:[%s9302_s1 + $0x124] ss:$8 sps:$4 sm:$0xff]   ;;  %v6576_v39 = vld [vmem:[%s9302_s1 + $0x100] ss:$8 sps:$4 sm:$0xff]   ;;  %v6590_v41 = vld [vmem:[%s9302_s1 + $0x134] ss:$8 sps:$4 sm:$0xff]  }
  0x25   : > { %641 = vmatpush1.bf16.msra.mxu0 %v6537_v15  ;;  %1151 = vmatpush1.bf16.msra.mxu1 %v6540_v17  ;;  %v6588_v42 = vld [vmem:[%s9302_s1 + $0x130] ss:$8 sps:$4 sm:$0xff]   ;;  %v6594_v43 = vld [vmem:[%s9302_s1 + $0x144] ss:$8 sps:$4 sm:$0xff]   ;;  %v6592_v45 = vld [vmem:[%s9302_s1 + $0x140] ss:$8 sps:$4 sm:$0xff]  }
  0x26   : > { %642 = vmatprep.subr.bf16.mxu0 %v6541_v16  ;;  %1152 = vmatprep.subr.bf16.mxu1 %v6544_v18  ;;  %v6585_v44 = vld [vmem:[%s9302_s1 + $0x110] ss:$8 sps:$4 sm:$0xff]   ;;  %v6597_v47 = vld [vmem:[%s9302_s1 + $0x154] ss:$8 sps:$4 sm:$0xff]   ;;  %v6607_v49 = vld [vmem:[%s9302_s1 + $0x184] ss:$8 sps:$4 sm:$0xff]  }
  0x27   : > { %v7089_v46 = vld [vmem:[%s6990_s30 + $0x18] sm:$0xff]   ;;  %v6601_v50 = vld [vmem:[%s9302_s1 + $0x164] ss:$8 sps:$4 sm:$0xff]   ;;  %v6599_v51 = vld [vmem:[%s9302_s1 + $0x160] ss:$8 sps:$4 sm:$0xff]   ;;  %vm3270_vm6 = vcmask 687104  }
  0x28   : > { %v6595_v48 = vld [vmem:[%s9302_s1 + $0x150] ss:$8 sps:$4 sm:$0xff]   ;;  %v7112_v52 = vld [vmem:[%s6990_s30 + $0x20] sm:$0xff]   ;;  %v6604_v53 = vld [vmem:[%s9302_s1 + $0x174] ss:$8 sps:$4 sm:$0xff]   ;;  %vm6817_vm7 = vmmov 0  }
  0x29   : > { %643 = vmatpush1.bf16.msra.mxu0 %v6543_v19  ;;  %1153 = vmatpush1.bf16.msra.mxu1 %v6546_v21  ;;  %v6602_v54 = vld [vmem:[%s9302_s1 + $0x170] ss:$8 sps:$4 sm:$0xff]   ;;  %v7127_v55 = vld [vmem:[%s6990_s30 + $0x28] sm:$0xff]   ;;  %v7154_v58 = vld [vmem:[%s6990_s30 + $0x40] sm:$0xff]   ;;  %vm5044_vm8 = vcmask 654336   ;;  %vm5649_vm9 = vcmask 982016  }
  0x2a   : > { %644 = vmatprep.subr.bf16.mxu0 %v6547_v20  ;;  %1154 = vmatprep.subr.bf16.mxu1 %v6550_v22  ;;  %v7136_v56 = vld [vmem:[%s6990_s30 + $0x30] sm:$0xff]   ;;  %v7145_v57 = vld [vmem:[%s6990_s30 + $0x38] sm:$0xff]   ;;  %v7163_v59 = vld [vmem:[%s6990_s30 + $0x48] sm:$0xff]   ;;  %s378_s26 = sand.u32 1, %s6805_s18   ;;  %vm5795_vm10 = vcmask 80896   ;;  %s6818_s14 = smov [#allocation4]  }
  0x2b   : > { %v7173_v60 = vld [vmem:[%s6990_s30 + $0x50] sm:$0xff]   ;;  %v7182_v61 = vld [vmem:[%s6990_s30 + $0x58] sm:$0xff]   ;;  %v7191_v62 = vld [vmem:[%s6990_s30 + $0x60] sm:$0xff]   ;;  %s5874_s13 = sshll.u32 %s378_s26, 3 }
  0x2c   : > { %v7200_v63 = vld [vmem:[%s6990_s30 + $0x68] sm:$0xff]   ;;  %v7209_v0 = vld [vmem:[%s6990_s30 + $0x70] sm:$0xff]   ;;  %v7218_v1 = vld [vmem:[%s6990_s30 + $0x78] sm:$0xff]   ;;  %s380_s22 = scalar_lea.vmem [#allocation4], %s5874_s13  ;;  %s6755_s13 = sshll.u32 %s6818_s14, 4  ;;  %s6756_s13 = int_to_ptr.vmem [resolvable:$false] %s6755_s13 }
  0x2d   : > { %645 = vmatpush1.bf16.msra.mxu0 %v6549_v23  ;;  %1155 = vmatpush1.bf16.msra.mxu1 %v6552_v25  ;;  %v6605_v3 = vld [vmem:[%s9302_s1 + $0x180] ss:$8 sps:$4 sm:$0xff]   ;;  %v6610_v4 = vld [vmem:[%s9302_s1 + $0x194] ss:$8 sps:$4 sm:$0xff]   ;;  %v6608_v5 = vld [vmem:[%s9302_s1 + $0x190] ss:$8 sps:$4 sm:$0xff]  }
  0x2e   : > { %1410 = vmatprep.subr.bf16.mxu0 %v6556_v24  ;;  %1997 = vmatprep.subr.bf16.mxu1 %v6584_v37  ;;  %v6613_v6 = vld [vmem:[%s9302_s1 + $0x1a4] ss:$8 sps:$4 sm:$0xff]   ;;  %v6611_v7 = vld [vmem:[%s9302_s1 + $0x1a0] ss:$8 sps:$4 sm:$0xff]   ;;  %v6616_v8 = vld [vmem:[%s9302_s1 + $0x1b4] ss:$8 sps:$4 sm:$0xff]  }
  0x2f   : > { %v6614_v9 = vld [vmem:[%s9302_s1 + $0x1b0] ss:$8 sps:$4 sm:$0xff]   ;;  %v6619_v10 = vld [vmem:[%s9302_s1 + $0x1c4] ss:$8 sps:$4 sm:$0xff]   ;;  %v6617_v11 = vld [vmem:[%s9302_s1 + $0x1c0] ss:$8 sps:$4 sm:$0xff]  }
  0x30   : > { %5917 = vmatmul.mubr.msk.bf16.vlgmr.msra.gmra.mrb[0].mxu0 %vm585_vm0, %v7011_v26  ;;  %5945 = vmatmul.mubr.msk.bf16.vlgmr.msra.gmra.mrb[0].mxu1 %vm585_vm0, %v7011_v26  ;;  %v6622_v12 = vld [vmem:[%s9302_s1 + $0x1d4] ss:$8 sps:$4 sm:$0xff]   ;;  %v6620_v13 = vld [vmem:[%s9302_s1 + $0x1d0] ss:$8 sps:$4 sm:$0xff]   ;;  %s5811_s19 = sshll.u32 %s380_s22, 4  ;;  %s6757_s15 = scalar_lea.vmem %s6756_s13, 256  ;;  %s9261_s19 = int_to_ptr.vmem [resolvable:$true] %s5811_s19 }
  0x31   : > { %1411 = vmatpush1.bf16.msra.mxu0 %v6554_v27  ;;  %676 = vmatprep.mubr.bf16.mxu0 %v9314_v2  ;;  %s6751_s29 = scalar_lea.vmem %s9261_s19, 128  ;;  %p6758_p0 = scmp.lt.s32.totalorder %s9261_s19, %s6756_s13 }
  0x32   : > { %1412 = vmatprep.subr.bf16.mxu0 %v6561_v28  ;;  %1186 = vmatprep.mubr.bf16.mxu1 %v9314_v2  ;;  %p6752_p11 = scmp.ne.s32.totalorder %s9261_s19, %s6751_s29  ;;  %p6759_p1 = scmp.lt.s32.totalorder %s6757_s15, %s6751_s29 }
  0x33   : > { %1998 = vmatpush1.bf16.msra.mxu1 %v6582_v36 }
  0x34   : > { %1999 = vmatprep.subr.bf16.mxu1 %v6590_v41  ;;  %p6753_p12 = pnand %p6752_p11, %p6917_p5  ;;  %p6760_p2 = por %p6759_p1, %p6758_p0 }
  0x35   : > { %1413 = vmatpush1.bf16.msra.mxu0 %v6559_v29 }
  0x36   : > { %1414 = vmatprep.subr.bf16.mxu0 %v6567_v30  ;;  %p6754_p13 = pneg %p6753_p12 }
  0x37   : > { %2000 = vmatpush1.bf16.msra.mxu1 %v6588_v42 }
  0x38   : > { %5918 = vmatmul.mubr.msk.bf16.gmra.mrb[4].mxu0 %vm585_vm0, %v7032_v31  ;;  %5946 = vmatmul.mubr.msk.bf16.gmra.mrb[4].mxu1 %vm585_vm0, %v7032_v31  ;;  %p6761_p3 = pnand %p6760_p2, %p6754_p13 }
  0x39   : > { %686 = vmatprep.mubr.bf16.mxu0 %v9314_v2  ;;  %1415 = vmatpush1.bf16.msra.mxu0 %v6565_v32 }
  0x3a   : > { %1416 = vmatprep.subr.bf16.mxu0 %v6573_v33  ;;  %1196 = vmatprep.mubr.bf16.mxu1 %v9314_v2 }
  0x3b   : > { %2001 = vmatprep.subr.bf16.mxu1 %v6594_v43 }
  0x3c   : > { %2002 = vmatpush1.bf16.msra.mxu1 %v6592_v45 }
  0x3d   : > { %1417 = vmatpush1.bf16.msra.mxu0 %v6571_v34  ;;  %2003 = vmatprep.subr.bf16.mxu1 %v6597_v47 }
  0x3e   : > { %1418 = vmatprep.subr.bf16.mxu0 %v6578_v35 }
  0x40   : > { %5919 = vmatmul.mubr.msk.bf16.gmra.mrb[8].mxu0 %vm585_vm0, %v7059_v38  ;;  %5947 = vmatmul.mubr.msk.bf16.gmra.mrb[8].mxu1 %vm585_vm0, %v7059_v38 }
  0x41   : > { %696 = vmatprep.mubr.bf16.mxu0 %v9314_v2  ;;  %1419 = vmatpush1.bf16.msra.mxu0 %v6576_v39 }
  0x42   : > { %1420 = vmatprep.subr.bf16.mxu0 %v6587_v40  ;;  %1206 = vmatprep.mubr.bf16.mxu1 %v9314_v2 }
  0x43   : > { %2004 = vmatpush1.bf16.msra.mxu1 %v6595_v48 }
  0x44   : > { %2005 = vmatprep.subr.bf16.mxu1 %v6601_v50 }
  0x45   : > { %1421 = vmatpush1.bf16.msra.mxu0 %v6585_v44 }
  0x46   : > { %2584 = vmatprep.subr.bf16.mxu0 %v6607_v49 }
  0x47   : > { %2006 = vmatpush1.bf16.msra.mxu1 %v6599_v51 }
  0x48   : > { %5920 = vmatmul.mubr.msk.bf16.gmra.mrb[12].mxu0 %vm585_vm0, %v7089_v46  ;;  %5948 = vmatmul.mubr.msk.bf16.gmra.mrb[12].mxu1 %vm585_vm0, %v7089_v46 }
  0x49   : > { %706 = vmatprep.mubr.bf16.mxu0 %v9314_v2  ;;  %1216 = vmatprep.mubr.bf16.mxu1 %v9314_v2 }
  0x4a   : > { %2007 = vmatprep.subr.bf16.mxu1 %v6604_v53 }
  0x4b   : > { %2008 = vmatpush1.bf16.msra.mxu1 %v6602_v54 }
  0x50   : > { %5921 = vmatmul.mubr.msk.bf16.gmra.mrb[16].mxu0 %vm585_vm0, %v7112_v52  ;;  %5949 = vmatmul.mubr.msk.bf16.gmra.mrb[16].mxu1 %vm585_vm0, %v7112_v52 }
  0x51   : > { %716 = vmatprep.mubr.bf16.mxu0 %v9314_v2  ;;  %1226 = vmatprep.mubr.bf16.mxu1 %v9314_v2 }
  0x58   : > { %5922 = vmatmul.mubr.msk.bf16.gmra.mrb[20].mxu0 %vm585_vm0, %v7127_v55  ;;  %5950 = vmatmul.mubr.msk.bf16.gmra.mrb[20].mxu1 %vm585_vm0, %v7127_v55 }
  0x59   : > { %726 = vmatprep.mubr.bf16.mxu0 %v9314_v2  ;;  %1236 = vmatprep.mubr.bf16.mxu1 %v9314_v2 }
  0x60   : > { %5923 = vmatmul.mubr.msk.bf16.gmra.mrb[24].mxu0 %vm585_vm0, %v7136_v56  ;;  %5951 = vmatmul.mubr.msk.bf16.gmra.mrb[24].mxu1 %vm585_vm0, %v7136_v56 }
  0x61   : > { %736 = vmatprep.mubr.bf16.mxu0 %v9314_v2  ;;  %1246 = vmatprep.mubr.bf16.mxu1 %v9314_v2 }
  0x68   : > { %5924 = vmatmul.mubr.msk.bf16.gmra.mrb[28].mxu0 %vm585_vm0, %v7145_v57  ;;  %5952 = vmatmul.mubr.msk.bf16.gmra.mrb[28].mxu1 %vm585_vm0, %v7145_v57 }
  0x69   : > { %746 = vmatprep.mubr.bf16.mxu0 %v9314_v2  ;;  %1256 = vmatprep.mubr.bf16.mxu1 %v9314_v2 }
  0x70   : > { %5925 = vmatmul.mubr.msk.bf16.gmra.mrb[32].mxu0 %vm585_vm0, %v7154_v58  ;;  %5953 = vmatmul.mubr.msk.bf16.gmra.mrb[32].mxu1 %vm585_vm0, %v7154_v58 }
  0x71   : > { %756 = vmatprep.mubr.bf16.mxu0 %v9314_v2  ;;  %1266 = vmatprep.mubr.bf16.mxu1 %v9314_v2 }
  0x78   : > { %5926 = vmatmul.mubr.msk.bf16.gmra.mrb[36].mxu0 %vm585_vm0, %v7163_v59  ;;  %5954 = vmatmul.mubr.msk.bf16.gmra.mrb[36].mxu1 %vm585_vm0, %v7163_v59 }
  0x79   : > { %766 = vmatprep.mubr.bf16.mxu0 %v9314_v2  ;;  %1276 = vmatprep.mubr.bf16.mxu1 %v9314_v2 }
  0x80   : > { %5927 = vmatmul.mubr.msk.bf16.gmra.mrb[40].mxu0 %vm585_vm0, %v7173_v60  ;;  %5955 = vmatmul.mubr.msk.bf16.gmra.mrb[40].mxu1 %vm585_vm0, %v7173_v60 }
  0x81   : > { %776 = vmatprep.mubr.bf16.mxu0 %v9314_v2  ;;  %1286 = vmatprep.mubr.bf16.mxu1 %v9314_v2 }
  0x88   : > { %5928 = vmatmul.mubr.msk.bf16.gmra.mrb[44].mxu0 %vm585_vm0, %v7182_v61  ;;  %5956 = vmatmul.mubr.msk.bf16.gmra.mrb[44].mxu1 %vm585_vm0, %v7182_v61 }
  0x89   : > { %786 = vmatprep.mubr.bf16.mxu0 %v9314_v2  ;;  %1296 = vmatprep.mubr.bf16.mxu1 %v9314_v2 }
  0x90   : > { %5929 = vmatmul.mubr.msk.bf16.gmra.mrb[48].mxu0 %vm585_vm0, %v7191_v62  ;;  %5957 = vmatmul.mubr.msk.bf16.gmra.mrb[48].mxu1 %vm585_vm0, %v7191_v62 }
  0x91   : > { %796 = vmatprep.mubr.bf16.mxu0 %v9314_v2  ;;  %1306 = vmatprep.mubr.bf16.mxu1 %v9314_v2 }
  0x98   : > { %5930 = vmatmul.mubr.msk.bf16.gmra.mrb[52].mxu0 %vm585_vm0, %v7200_v63  ;;  %5958 = vmatmul.mubr.msk.bf16.gmra.mrb[52].mxu1 %vm585_vm0, %v7200_v63 }
  0x99   : > { %806 = vmatprep.mubr.bf16.mxu0 %v9314_v2  ;;  %1316 = vmatprep.mubr.bf16.mxu1 %v9314_v2 }
  0xa0   : > { %5931 = vmatmul.mubr.msk.bf16.gmra.mrb[56].mxu0 %vm585_vm0, %v7209_v0  ;;  %5959 = vmatmul.mubr.msk.bf16.gmra.mrb[56].mxu1 %vm585_vm0, %v7209_v0 }
  0xa1   : > { %816 = vmatprep.mubr.bf16.mxu0 %v9314_v2  ;;  %1326 = vmatprep.mubr.bf16.mxu1 %v9314_v2 }
  0xa8   : > { %5932 = vmatmul.mubr.msk.bf16.gmra.mrb[60].mxu0 %vm585_vm0, %v7218_v1  ;;  %5960 = vmatmul.mubr.msk.bf16.gmra.mrb[60].mxu1 %vm585_vm0, %v7218_v1 }
  0xa9   : > { %1442 = vmatprep.mubr.bf16.mxu0 %v9314_v2  ;;  %2029 = vmatprep.mubr.bf16.mxu1 %v9314_v2 }
  0xb0   : > { %5985 = vmatmul.mubr.msk.bf16.vlgmr.msra.gmra.mrb[64].mxu0 %vm585_vm0, %v7011_v26  ;;  %6025 = vmatmul.mubr.msk.bf16.vlgmr.msra.gmra.mrb[64].mxu1 %vm585_vm0, %v7011_v26 }
  0xb1   : > { %2585 = vmatpush1.bf16.msra.mxu0 %v6605_v3  ;;  %1452 = vmatprep.mubr.bf16.mxu0 %v9314_v2 }
  0xb2   : > { %2586 = vmatprep.subr.bf16.mxu0 %v6610_v4  ;;  %2039 = vmatprep.mubr.bf16.mxu1 %v9314_v2 }
  0xb5   : > { %2587 = vmatpush1.bf16.msra.mxu0 %v6608_v5 }
  0xb6   : > { %2588 = vmatprep.subr.bf16.mxu0 %v6613_v6 }
  0xb8   : > { %5986 = vmatmul.mubr.msk.bf16.gmra.mrb[68].mxu0 %vm585_vm0, %v7032_v31  ;;  %6026 = vmatmul.mubr.msk.bf16.gmra.mrb[68].mxu1 %vm585_vm0, %v7032_v31 }
  0xb9   : > { %1462 = vmatprep.mubr.bf16.mxu0 %v9314_v2  ;;  %2589 = vmatpush1.bf16.msra.mxu0 %v6611_v7 }
  0xba   : > { %2590 = vmatprep.subr.bf16.mxu0 %v6616_v8  ;;  %2049 = vmatprep.mubr.bf16.mxu1 %v9314_v2 }
  0xbd   : > { %2591 = vmatpush1.bf16.msra.mxu0 %v6614_v9 }
  0xbe   : > { %2592 = vmatprep.subr.bf16.mxu0 %v6619_v10 }
  0xc0   : > { %5987 = vmatmul.mubr.msk.bf16.gmra.mrb[72].mxu0 %vm585_vm0, %v7059_v38  ;;  %6027 = vmatmul.mubr.msk.bf16.gmra.mrb[72].mxu1 %vm585_vm0, %v7059_v38 }
  0xc1   : > { %1472 = vmatprep.mubr.bf16.mxu0 %v9314_v2  ;;  %2593 = vmatpush1.bf16.msra.mxu0 %v6617_v11 }
  0xc2   : > { %2594 = vmatprep.subr.bf16.mxu0 %v6622_v12  ;;  %2059 = vmatprep.mubr.bf16.mxu1 %v9314_v2 }
  0xc5   : > { %2595 = vmatpush1.bf16.msra.mxu0 %v6620_v13 }
  0xc8   : > { %5988 = vmatmul.mubr.msk.bf16.gmra.mrb[76].mxu0 %vm585_vm0, %v7089_v46  ;;  %6028 = vmatmul.mubr.msk.bf16.gmra.mrb[76].mxu1 %vm585_vm0, %v7089_v46 }
  0xc9   : > { %1482 = vmatprep.mubr.bf16.mxu0 %v9314_v2  ;;  %2069 = vmatprep.mubr.bf16.mxu1 %v9314_v2 }
  0xd0   : > { %5989 = vmatmul.mubr.msk.bf16.gmra.mrb[80].mxu0 %vm585_vm0, %v7112_v52  ;;  %6029 = vmatmul.mubr.msk.bf16.gmra.mrb[80].mxu1 %vm585_vm0, %v7112_v52 }
  0xd1   : > { %1492 = vmatprep.mubr.bf16.mxu0 %v9314_v2  ;;  %2079 = vmatprep.mubr.bf16.mxu1 %v9314_v2 }
  0xd8   : > { %5990 = vmatmul.mubr.msk.bf16.gmra.mrb[84].mxu0 %vm585_vm0, %v7127_v55  ;;  %6030 = vmatmul.mubr.msk.bf16.gmra.mrb[84].mxu1 %vm585_vm0, %v7127_v55 }
  0xd9   : > { %1502 = vmatprep.mubr.bf16.mxu0 %v9314_v2  ;;  %2089 = vmatprep.mubr.bf16.mxu1 %v9314_v2 }
  0xe0   : > { %5991 = vmatmul.mubr.msk.bf16.gmra.mrb[88].mxu0 %vm585_vm0, %v7136_v56  ;;  %6031 = vmatmul.mubr.msk.bf16.gmra.mrb[88].mxu1 %vm585_vm0, %v7136_v56 }
  0xe1   : > { %1512 = vmatprep.mubr.bf16.mxu0 %v9314_v2  ;;  %2099 = vmatprep.mubr.bf16.mxu1 %v9314_v2 }
  0xe8   : > { %5992 = vmatmul.mubr.msk.bf16.gmra.mrb[92].mxu0 %vm585_vm0, %v7145_v57  ;;  %6032 = vmatmul.mubr.msk.bf16.gmra.mrb[92].mxu1 %vm585_vm0, %v7145_v57 }
  0xe9   : > { %1522 = vmatprep.mubr.bf16.mxu0 %v9314_v2  ;;  %2109 = vmatprep.mubr.bf16.mxu1 %v9314_v2 }
  0xf0   : > { %5993 = vmatmul.mubr.msk.bf16.gmra.mrb[96].mxu0 %vm585_vm0, %v7154_v58  ;;  %6033 = vmatmul.mubr.msk.bf16.gmra.mrb[96].mxu1 %vm585_vm0, %v7154_v58 }
  0xf1   : > { %1532 = vmatprep.mubr.bf16.mxu0 %v9314_v2  ;;  %2119 = vmatprep.mubr.bf16.mxu1 %v9314_v2 }
  0xf8   : > { %5994 = vmatmul.mubr.msk.bf16.gmra.mrb[100].mxu0 %vm585_vm0, %v7163_v59  ;;  %6034 = vmatmul.mubr.msk.bf16.gmra.mrb[100].mxu1 %vm585_vm0, %v7163_v59 }
  0xf9   : > { %1542 = vmatprep.mubr.bf16.mxu0 %v9314_v2  ;;  %2129 = vmatprep.mubr.bf16.mxu1 %v9314_v2 }
 0x100   : > { %5995 = vmatmul.mubr.msk.bf16.gmra.mrb[104].mxu0 %vm585_vm0, %v7173_v60  ;;  %6035 = vmatmul.mubr.msk.bf16.gmra.mrb[104].mxu1 %vm585_vm0, %v7173_v60 }
 0x101   : > { %1552 = vmatprep.mubr.bf16.mxu0 %v9314_v2  ;;  %2139 = vmatprep.mubr.bf16.mxu1 %v9314_v2 }
 0x103   : > { %v668_v14 = vpop.f32.mrb[0].mxu0  ;;  %v1178_v17 = vpop.f32.mrb[0].mxu1 }
 0x104   : > { %v670_v15 = vpop.f32.mrb[1].mxu0  ;;  %v892_v18 = vrot.slane %v668_v14, 1  ;;  %v1180_v21 = vpop.f32.mrb[1].mxu1 }
 0x105   : > { %v672_v16 = vpop.f32.mrb[2].mxu0  ;;  %v895_v22 = vrot.slane %v670_v15, 1  ;;  %v1182_v24 = vpop.f32.mrb[2].mxu1 }
 0x106   : > { %v893_v19 = vrot.slane %v672_v16, 1  ;;  %v674_v20 = vpop.f32.mrb[3].mxu0  ;;  %v1184_v26 = vpop.f32.mrb[3].mxu1 }
 0x107   : > { %v896_v23 = vrot.slane %v674_v20, 1 }
 0x108   : > { %v894_v25 = vsel %vm891_vm1, %v892_v18, %v893_v19  ;;  %5996 = vmatmul.mubr.msk.bf16.gmra.mrb[108].mxu0 %vm585_vm0, %v7182_v61  ;;  %6036 = vmatmul.mubr.msk.bf16.gmra.mrb[108].mxu1 %vm585_vm0, %v7182_v61 }
 0x109   : > { %v7328_v27 = vadd.f32 %v1178_v17, %v894_v25  ;;  %v897_v28 = vsel %vm891_vm1, %v895_v22, %v896_v23  ;;  %1562 = vmatprep.mubr.bf16.mxu0 %v9314_v2  ;;  %2149 = vmatprep.mubr.bf16.mxu1 %v9314_v2 }
 0x10a   : > { %v7332_v29 = vadd.f32 %v1180_v21, %v897_v28 }
 0x10b   : > { %v678_v30 = vpop.f32.mrb[4].mxu0  ;;  %v1188_v36 = vpop.f32.mrb[4].mxu1 }
 0x10c   : > { %v898_v32 = vrot.slane %v678_v30, 1  ;;  %v680_v33 = vpop.f32.mrb[5].mxu0  ;;  %v1190_v41 = vpop.f32.mrb[5].mxu1 }
 0x10d   : > { %v900_v34 = vrot.slane %v680_v33, 1  ;;  %v682_v35 = vpop.f32.mrb[6].mxu0  ;;  %v1192_v45 = vpop.f32.mrb[6].mxu1 }
 0x10e   : > { %v902_v37 = vrot.slane %v682_v35, 1  ;;  %v684_v39 = vpop.f32.mrb[7].mxu0  ;;  %v899_v40 = vsel %vm891_vm1, %v893_v19, %v898_v32  ;;  %v1194_v49 = vpop.f32.mrb[7].mxu1 }
 0x10f   : > { %v904_v42 = vrot.slane %v684_v39, 1  ;;  %v7338_v43 = vadd.f32 %v1182_v24, %v899_v40  ;;  %v901_v44 = vsel %vm891_vm1, %v896_v23, %v900_v34 }
 0x110   : > { %v7341_v47 = vadd.f32 %v1184_v26, %v901_v44  ;;  %v903_v48 = vsel %vm891_vm1, %v898_v32, %v902_v37  ;;  %5997 = vmatmul.mubr.msk.bf16.gmra.mrb[112].mxu0 %vm585_vm0, %v7191_v62  ;;  %6037 = vmatmul.mubr.msk.bf16.gmra.mrb[112].mxu1 %vm585_vm0, %v7191_v62 }
 0x111   : > { %v7346_v50 = vadd.f32 %v1188_v36, %v903_v48  ;;  %v905_v51 = vsel %vm891_vm1, %v900_v34, %v904_v42  ;;  %1572 = vmatprep.mubr.bf16.mxu0 %v9314_v2  ;;  %2159 = vmatprep.mubr.bf16.mxu1 %v9314_v2 }
 0x112   : > { %v7350_v53 = vadd.f32 %v1190_v41, %v905_v51 }
 0x113   : > { %v688_v54 = vpop.f32.mrb[8].mxu0  ;;  %v1198_v7 = vpop.f32.mrb[8].mxu1 }
 0x114   : > { %v906_v3 = vrot.slane %v688_v54, 1  ;;  %v690_v4 = vpop.f32.mrb[9].mxu0  ;;  %v1200_v11 = vpop.f32.mrb[9].mxu1 }
 0x115   : > { %v908_v5 = vrot.slane %v690_v4, 1  ;;  %v692_v6 = vpop.f32.mrb[10].mxu0  ;;  %v1202_v15 = vpop.f32.mrb[10].mxu1 }
 0x116   : > { %v910_v8 = vrot.slane %v692_v6, 1  ;;  %v694_v9 = vpop.f32.mrb[11].mxu0  ;;  %v907_v10 = vsel %vm891_vm1, %v902_v37, %v906_v3  ;;  %v1204_v18 = vpop.f32.mrb[11].mxu1 }
 0x117   : > { %v912_v12 = vrot.slane %v694_v9, 1  ;;  %v7356_v13 = vadd.f32 %v1192_v45, %v907_v10  ;;  %v909_v14 = vsel %vm891_vm1, %v904_v42, %v908_v5 }
 0x118   : > { %v7359_v16 = vadd.f32 %v1194_v49, %v909_v14  ;;  %v911_v17 = vsel %vm891_vm1, %v906_v3, %v910_v8  ;;  %5998 = vmatmul.mubr.msk.bf16.gmra.mrb[116].mxu0 %vm585_vm0, %v7200_v63  ;;  %6038 = vmatmul.mubr.msk.bf16.gmra.mrb[116].mxu1 %vm585_vm0, %v7200_v63 }
 0x119   : > { %v7364_v19 = vadd.f32 %v1198_v7, %v911_v17  ;;  %v913_v20 = vsel %vm891_vm1, %v908_v5, %v912_v12  ;;  %1582 = vmatprep.mubr.bf16.mxu0 %v9314_v2  ;;  %2169 = vmatprep.mubr.bf16.mxu1 %v9314_v2 }
 0x11a   : > { %v7368_v21 = vadd.f32 %v1200_v11, %v913_v20 }
 0x11b   : > { %v698_v22 = vpop.f32.mrb[12].mxu0  ;;  %v1208_v28 = vpop.f32.mrb[12].mxu1 }
 0x11c   : > { %v914_v23 = vrot.slane %v698_v22, 1  ;;  %v700_v24 = vpop.f32.mrb[13].mxu0  ;;  %v1210_v34 = vpop.f32.mrb[13].mxu1 }
 0x11d   : > { %v916_v25 = vrot.slane %v700_v24, 1  ;;  %v702_v26 = vpop.f32.mrb[14].mxu0  ;;  %v1212_v39 = vpop.f32.mrb[14].mxu1 }
 0x11e   : > { %v918_v30 = vrot.slane %v702_v26, 1  ;;  %v704_v32 = vpop.f32.mrb[15].mxu0  ;;  %v915_v33 = vsel %vm891_vm1, %v910_v8, %v914_v23  ;;  %v1214_v41 = vpop.f32.mrb[15].mxu1 }
 0x11f   : > { %v920_v35 = vrot.slane %v704_v32, 1  ;;  %v7374_v36 = vadd.f32 %v1202_v15, %v915_v33  ;;  %v917_v37 = vsel %vm891_vm1, %v912_v12, %v916_v25 }
 0x120   : > { %v7377_v63 = vadd.f32 %v1204_v18, %v917_v37  ;;  %v919_v40 = vsel %vm891_vm1, %v914_v23, %v918_v30  ;;  %5999 = vmatmul.mubr.msk.bf16.gmra.mrb[120].mxu0 %vm585_vm0, %v7209_v0  ;;  %6039 = vmatmul.mubr.msk.bf16.gmra.mrb[120].mxu1 %vm585_vm0, %v7209_v0 }
 0x121   : > { %v7382_v42 = vadd.f32 %v1208_v28, %v919_v40  ;;  %v921_v44 = vsel %vm891_vm1, %v916_v25, %v920_v35  ;;  %1592 = vmatprep.mubr.bf16.mxu0 %v9314_v2  ;;  %2179 = vmatprep.mubr.bf16.mxu1 %v9314_v2 }
 0x122   : > { %v7386_v45 = vadd.f32 %v1210_v34, %v921_v44  ;;  %v6747_v44 = vld [vmem:[%s6990_s30] sm:$0xff]  }
 0x123   : > { %v708_v48 = vpop.f32.mrb[16].mxu0  ;;  %v1218_v4 = vpop.f32.mrb[16].mxu1 }
 0x124   : > { %v922_v49 = vrot.slane %v708_v48, 1  ;;  %v710_v51 = vpop.f32.mrb[17].mxu0  ;;  %v1220_v8 = vpop.f32.mrb[17].mxu1 }
 0x125   : > { %v924_v54 = vrot.slane %v710_v51, 1  ;;  %v712_v3 = vpop.f32.mrb[18].mxu0  ;;  %v1222_v12 = vpop.f32.mrb[18].mxu1 }
 0x126   : > { %v926_v5 = vrot.slane %v712_v3, 1  ;;  %v714_v6 = vpop.f32.mrb[19].mxu0  ;;  %v923_v7 = vsel %vm891_vm1, %v918_v30, %v922_v49  ;;  %v1224_v15 = vpop.f32.mrb[19].mxu1 }
 0x127   : > { %v928_v9 = vrot.slane %v714_v6, 1  ;;  %v7392_v10 = vadd.f32 %v1212_v39, %v923_v7  ;;  %v925_v11 = vsel %vm891_vm1, %v920_v35, %v924_v54 }
 0x128   : > { %v7395_v0 = vadd.f32 %v1214_v41, %v925_v11  ;;  %v927_v14 = vsel %vm891_vm1, %v922_v49, %v926_v5  ;;  %6000 = vmatmul.mubr.msk.bf16.gmra.mrb[124].mxu0 %vm585_vm0, %v7218_v1  ;;  %6040 = vmatmul.mubr.msk.bf16.gmra.mrb[124].mxu1 %vm585_vm0, %v7218_v1 }
 0x129   : > { %v7400_v17 = vadd.f32 %v1218_v4, %v927_v14  ;;  %v929_v18 = vsel %vm891_vm1, %v924_v54, %v928_v9  ;;  %2616 = vmatprep.mubr.bf16.mxu0 %v9314_v2  ;;  %3531 = vmatprep.mubr.bf16.mxu1 %v9314_v2 }
 0x12a   : > { %v7404_v20 = vadd.f32 %v1220_v8, %v929_v18 }
 0x12b   : > { %v718_v22 = vpop.f32.mrb[20].mxu0  ;;  %v1228_v28 = vpop.f32.mrb[20].mxu1 }
 0x12c   : > { %v930_v23 = vrot.slane %v718_v22, 1  ;;  %v720_v24 = vpop.f32.mrb[21].mxu0  ;;  %v1230_v34 = vpop.f32.mrb[21].mxu1 }
 0x12d   : > { %v932_v25 = vrot.slane %v720_v24, 1  ;;  %v722_v26 = vpop.f32.mrb[22].mxu0  ;;  %v1232_v1 = vpop.f32.mrb[22].mxu1 }
 0x12e   : > { %v934_v30 = vrot.slane %v722_v26, 1  ;;  %v724_v32 = vpop.f32.mrb[23].mxu0  ;;  %v931_v33 = vsel %vm891_vm1, %v926_v5, %v930_v23  ;;  %v1234_v48 = vpop.f32.mrb[23].mxu1 }
 0x12f   : > { %v936_v35 = vrot.slane %v724_v32, 1  ;;  %v7410_v37 = vadd.f32 %v1222_v12, %v931_v33  ;;  %v933_v39 = vsel %vm891_vm1, %v928_v9, %v932_v25 }
 0x130   : > { %v7413_v40 = vadd.f32 %v1224_v15, %v933_v39  ;;  %v935_v41 = vsel %vm891_vm1, %v930_v23, %v934_v30  ;;  %6065 = vmatmul.mubr.msk.bf16.vlgmr.msra.gmra.mrb[128].mxu0 %vm585_vm0, %v6747_v44 }
 0x131   : > { %v7418_v49 = vadd.f32 %v1228_v28, %v935_v41  ;;  %v937_v51 = vsel %vm891_vm1, %v932_v25, %v936_v35  ;;  %2626 = vmatprep.mubr.bf16.mxu0 %v9314_v2 }
 0x132   : > { %v7422_v54 = vadd.f32 %v1230_v34, %v937_v51 }
 0x133   : > { %v728_v3 = vpop.f32.mrb[24].mxu0  ;;  %v1238_v8 = vpop.f32.mrb[24].mxu1 }
 0x134   : > { %v938_v4 = vrot.slane %v728_v3, 1  ;;  %v730_v5 = vpop.f32.mrb[25].mxu0  ;;  %v1240_v14 = vpop.f32.mrb[25].mxu1 }
 0x135   : > { %v940_v6 = vrot.slane %v730_v5, 1  ;;  %v732_v7 = vpop.f32.mrb[26].mxu0  ;;  %v1242_v23 = vpop.f32.mrb[26].mxu1 }
 0x136   : > { %v942_v9 = vrot.slane %v732_v7, 1  ;;  %v734_v11 = vpop.f32.mrb[27].mxu0  ;;  %v939_v12 = vsel %vm891_vm1, %v934_v30, %v938_v4  ;;  %v1244_v26 = vpop.f32.mrb[27].mxu1 }
 0x137   : > { %v944_v15 = vrot.slane %v734_v11, 1  ;;  %v7425_v18 = vadd.f32 %v1232_v1, %v939_v12  ;;  %v941_v22 = vsel %vm891_vm1, %v936_v35, %v940_v6 }
 0x138   : > { %v7428_v24 = vadd.f32 %v1234_v48, %v941_v22  ;;  %v943_v25 = vsel %vm891_vm1, %v938_v4, %v942_v9  ;;  %6066 = vmatmul.mubr.msk.bf16.gmra.mrb[132].mxu0 %vm585_vm0, %v7032_v31 }
 0x139   : > { %v7433_v28 = vadd.f32 %v1238_v8, %v943_v25  ;;  %v945_v32 = vsel %vm891_vm1, %v940_v6, %v944_v15  ;;  %2636 = vmatprep.mubr.bf16.mxu0 %v9314_v2 }
 0x13a   : > { %v7437_v30 = vadd.f32 %v1240_v14, %v945_v32 }
 0x13b   : > { %v738_v33 = vpop.f32.mrb[28].mxu0  ;;  %v1248_v41 = vpop.f32.mrb[28].mxu1 }
 0x13c   : > { %v946_v34 = vrot.slane %v738_v33, 1  ;;  %v740_v35 = vpop.f32.mrb[29].mxu0  ;;  %v1250_v31 = vpop.f32.mrb[29].mxu1 }
 0x13d   : > { %v948_v39 = vrot.slane %v740_v35, 1  ;;  %v742_v1 = vpop.f32.mrb[30].mxu0  ;;  %v1252_v6 = vpop.f32.mrb[30].mxu1 }
 0x13e   : > { %v950_v44 = vrot.slane %v742_v1, 1  ;;  %v744_v48 = vpop.f32.mrb[31].mxu0  ;;  %v947_v51 = vsel %vm891_vm1, %v942_v9, %v946_v34  ;;  %v1254_v11 = vpop.f32.mrb[31].mxu1 }
 0x13f   : > { %v952_v3 = vrot.slane %v744_v48, 1  ;;  %v7440_v4 = vadd.f32 %v1242_v23, %v947_v51  ;;  %v949_v5 = vsel %vm891_vm1, %v944_v15, %v948_v39 }
 0x140   : > { %v7443_v7 = vadd.f32 %v1244_v26, %v949_v5  ;;  %v951_v8 = vsel %vm891_vm1, %v946_v34, %v950_v44  ;;  %6067 = vmatmul.mubr.msk.bf16.gmra.mrb[136].mxu0 %vm585_vm0, %v7059_v38 }
 0x141   : > { %v7448_v12 = vadd.f32 %v1248_v41, %v951_v8  ;;  %v953_v14 = vsel %vm891_vm1, %v948_v39, %v952_v3  ;;  %2646 = vmatprep.mubr.bf16.mxu0 %v9314_v2 }
 0x142   : > { %v7452_v9 = vadd.f32 %v1250_v31, %v953_v14 }
 0x143   : > { %v748_v22 = vpop.f32.mrb[32].mxu0  ;;  %v1258_v32 = vpop.f32.mrb[32].mxu1 }
 0x144   : > { %v954_v23 = vrot.slane %v748_v22, 1  ;;  %v750_v15 = vpop.f32.mrb[33].mxu0  ;;  %v1260_v38 = vpop.f32.mrb[33].mxu1 }
 0x145   : > { %v956_v25 = vrot.slane %v750_v15, 1  ;;  %v752_v26 = vpop.f32.mrb[34].mxu0  ;;  %v1262_v48 = vpop.f32.mrb[34].mxu1 }
 0x146   : > { %v958_v33 = vrot.slane %v752_v26, 1  ;;  %v754_v34 = vpop.f32.mrb[35].mxu0  ;;  %v955_v35 = vsel %vm891_vm1, %v950_v44, %v954_v23  ;;  %v1264_v5 = vpop.f32.mrb[35].mxu1 }
 0x147   : > { %v960_v1 = vrot.slane %v754_v34, 1  ;;  %v7455_v41 = vadd.f32 %v1252_v6, %v955_v35  ;;  %v957_v39 = vsel %vm891_vm1, %v952_v3, %v956_v25 }
 0x148   : > { %v7458_v51 = vadd.f32 %v1254_v11, %v957_v39  ;;  %v959_v31 = vsel %vm891_vm1, %v954_v23, %v958_v33  ;;  %6068 = vmatmul.mubr.msk.bf16.gmra.mrb[140].mxu0 %vm585_vm0, %v7089_v46 }
 0x149   : > { %v7463_v8 = vadd.f32 %v1258_v32, %v959_v31  ;;  %v961_v14 = vsel %vm891_vm1, %v956_v25, %v960_v1  ;;  %2656 = vmatprep.mubr.bf16.mxu0 %v9314_v2 }
 0x14a   : > { %v7467_v44 = vadd.f32 %v1260_v38, %v961_v14 }
 0x14b   : > { %v758_v6 = vpop.f32.mrb[36].mxu0  ;;  %v1268_v26 = vpop.f32.mrb[36].mxu1 }
 0x14c   : > { %9336 = vst [vmem:[#allocation9_spill] sm:$0xff] %v7467_v44  ;;  %v962_v22 = vrot.slane %v758_v6, 1  ;;  %v760_v3 = vpop.f32.mrb[37].mxu0  ;;  %v1270_v46 = vpop.f32.mrb[37].mxu1 }
 0x14d   : > { %v964_v15 = vrot.slane %v760_v3, 1  ;;  %v762_v11 = vpop.f32.mrb[38].mxu0  ;;  %v1272_v31 = vpop.f32.mrb[38].mxu1 }
 0x14e   : > { %v966_v34 = vrot.slane %v762_v11, 1  ;;  %v764_v23 = vpop.f32.mrb[39].mxu0  ;;  %v963_v35 = vsel %vm891_vm1, %v958_v33, %v962_v22  ;;  %v1274_v14 = vpop.f32.mrb[39].mxu1  ;;  %v9340_v33 = vmov 0  }
 0x14f   : > { %v968_v39 = vrot.slane %v764_v23, 1  ;;  %v7470_v32 = vadd.f32 %v1262_v48, %v963_v35  ;;  %v965_v25 = vsel %vm891_vm1, %v960_v1, %v964_v15 }
 0x150   : > { %v7473_v2 = vadd.f32 %v1264_v5, %v965_v25  ;;  %v967_v38 = vsel %vm891_vm1, %v962_v22, %v966_v34  ;;  %6069 = vmatmul.mubr.msk.bf16.gmra.mrb[144].mxu0 %vm585_vm0, %v7112_v52 }
 0x151   : > { %9337 = vst [vmem:[#allocation10_spill] sm:$0xff] %v7470_v32  ;;  %v7478_v6 = vadd.f32 %v1268_v26, %v967_v38  ;;  %v969_v3 = vsel %vm891_vm1, %v964_v15, %v968_v39  ;;  %2666 = vmatprep.mubr.bf16.mxu0 %v9340_v33 }
 0x152   : > { %9338 = vst [vmem:[#allocation11_spill] sm:$0xff] %v7473_v2  ;;  %v7482_v11 = vadd.f32 %v1270_v46, %v969_v3 }
 0x153   : > { %9339 = vst [vmem:[#allocation12_spill] sm:$0xff] %v7478_v6  ;;  %v768_v48 = vpop.f32.mrb[40].mxu0  ;;  %v1278_v25 = vpop.f32.mrb[40].mxu1 }
 0x154   : > { %v970_v23 = vrot.slane %v768_v48, 1  ;;  %v770_v1 = vpop.f32.mrb[41].mxu0  ;;  %v1280_v52 = vpop.f32.mrb[41].mxu1 }
 0x155   : > { %v972_v35 = vrot.slane %v770_v1, 1  ;;  %v772_v5 = vpop.f32.mrb[42].mxu0  ;;  %v1282_v38 = vpop.f32.mrb[42].mxu1 }
 0x156   : > { %v974_v2 = vrot.slane %v772_v5, 1  ;;  %v774_v22 = vpop.f32.mrb[43].mxu0  ;;  %v971_v32 = vsel %vm891_vm1, %v966_v34, %v970_v23  ;;  %v1284_v3 = vpop.f32.mrb[43].mxu1 }
 0x157   : > { %v976_v44 = vrot.slane %v774_v22, 1  ;;  %v7485_v26 = vadd.f32 %v1272_v31, %v971_v32  ;;  %v973_v15 = vsel %vm891_vm1, %v968_v39, %v972_v35 }
 0x158   : > { %v7488_v6 = vadd.f32 %v1274_v14, %v973_v15  ;;  %v975_v46 = vsel %vm891_vm1, %v970_v23, %v974_v2  ;;  %6070 = vmatmul.mubr.msk.bf16.gmra.mrb[148].mxu0 %vm585_vm0, %v7127_v55 }
 0x159   : > { %9341 = vst [vmem:[#allocation13_spill] sm:$0xff] %v7485_v26  ;;  %v7493_v48 = vadd.f32 %v1278_v25, %v975_v46  ;;  %v977_v1 = vsel %vm891_vm1, %v972_v35, %v976_v44  ;;  %2676 = vmatprep.mubr.bf16.mxu0 %v9340_v33 }
 0x15a   : > { %9342 = vst [vmem:[#allocation14_spill] sm:$0xff] %v7488_v6  ;;  %v7497_v34 = vadd.f32 %v1280_v52, %v977_v1 }
 0x15b   : > { %9343 = vst [vmem:[#allocation15_spill] sm:$0xff] %v7493_v48  ;;  %v778_v32 = vpop.f32.mrb[44].mxu0  ;;  %v1288_v22 = vpop.f32.mrb[44].mxu1 }
 0x15c   : > { %v978_v31 = vrot.slane %v778_v32, 1  ;;  %v780_v39 = vpop.f32.mrb[45].mxu0  ;;  %v1290_v55 = vpop.f32.mrb[45].mxu1 }
 0x15d   : > { %v980_v5 = vrot.slane %v780_v39, 1  ;;  %v782_v14 = vpop.f32.mrb[46].mxu0  ;;  %v1292_v46 = vpop.f32.mrb[46].mxu1 }
 0x15e   : > { %v982_v15 = vrot.slane %v782_v14, 1  ;;  %v784_v23 = vpop.f32.mrb[47].mxu0  ;;  %v979_v6 = vsel %vm891_vm1, %v974_v2, %v978_v31  ;;  %v1294_v1 = vpop.f32.mrb[47].mxu1 }
 0x15f   : > { %v984_v26 = vrot.slane %v784_v23, 1  ;;  %v7500_v25 = vadd.f32 %v1282_v38, %v979_v6  ;;  %v981_v35 = vsel %vm891_vm1, %v976_v44, %v980_v5  ;;  %v6623_v44 = vld [vmem:[%s9304_s3 + $0x58] ss:$8 sps:$4 sm:$0xff]   ;;  %v6625_v6 = vld [vmem:[%s9304_s3 + $0x5c] ss:$8 sps:$4 sm:$0xff]  }
 0x160   : > { %v7503_v48 = vadd.f32 %v1284_v3, %v981_v35  ;;  %v983_v52 = vsel %vm891_vm1, %v978_v31, %v982_v15  ;;  %6071 = vmatmul.mubr.msk.bf16.gmra.mrb[152].mxu0 %vm585_vm0, %v7136_v56  ;;  %3499 = vmatprep.subr.bf16.mxu1 %v6625_v6 }
 0x161   : > { %v7508_v32 = vadd.f32 %v1288_v22, %v983_v52  ;;  %v985_v39 = vsel %vm891_vm1, %v980_v5, %v984_v26  ;;  %2686 = vmatprep.mubr.bf16.mxu0 %v9340_v33  ;;  %3500 = vmatpush1.bf16.msra.mxu1 %v6623_v44 }
 0x162   : > { %9344 = vst [vmem:[#allocation16_spill] sm:$0xff] %v7503_v48  ;;  %v7512_v2 = vadd.f32 %v1290_v55, %v985_v39 }
 0x163   : > { %9345 = vst [vmem:[#allocation17_spill] sm:$0xff] %v7508_v32  ;;  %v788_v38 = vpop.f32.mrb[48].mxu0  ;;  %v1298_v22 = vpop.f32.mrb[48].mxu1 }
 0x164   : > { %9346 = vst [vmem:[#allocation18_spill] sm:$0xff] %v7512_v2  ;;  %v986_v3 = vrot.slane %v788_v38, 1  ;;  %v790_v56 = vpop.f32.mrb[49].mxu0  ;;  %v1300_v35 = vpop.f32.mrb[49].mxu1 }
 0x165   : > { %v988_v31 = vrot.slane %v790_v56, 1  ;;  %v792_v14 = vpop.f32.mrb[50].mxu0  ;;  %v1302_v32 = vpop.f32.mrb[50].mxu1 }
 0x166   : > { %v990_v5 = vrot.slane %v792_v14, 1  ;;  %v794_v23 = vpop.f32.mrb[51].mxu0  ;;  %v987_v55 = vsel %vm891_vm1, %v982_v15, %v986_v3  ;;  %v1304_v6 = vpop.f32.mrb[51].mxu1 }
 0x167   : > { %v992_v52 = vrot.slane %v794_v23, 1  ;;  %v7521_v39 = vadd.f32 %v1292_v46, %v987_v55  ;;  %v989_v2 = vsel %vm891_vm1, %v984_v26, %v988_v31 }
 0x168   : > { %v7524_v48 = vadd.f32 %v1294_v1, %v989_v2  ;;  %v991_v38 = vsel %vm891_vm1, %v986_v3, %v990_v5  ;;  %6072 = vmatmul.mubr.msk.bf16.gmra.mrb[156].mxu0 %vm585_vm0, %v7145_v57 }
 0x169   : > { %9347 = vst [vmem:[#allocation19_spill] sm:$0xff] %v7521_v39  ;;  %v7529_v44 = vadd.f32 %v1298_v22, %v991_v38  ;;  %v993_v56 = vsel %vm891_vm1, %v988_v31, %v992_v52  ;;  %2696 = vmatprep.mubr.bf16.mxu0 %v9340_v33 }
 0x16a   : > { %9348 = vst [vmem:[#allocation20_spill] sm:$0xff] %v7524_v48  ;;  %v7533_v15 = vadd.f32 %v1300_v35, %v993_v56 }
 0x16b   : > { %9349 = vst [vmem:[#allocation21_spill] sm:$0xff] %v7529_v44  ;;  %v798_v46 = vpop.f32.mrb[52].mxu0  ;;  %v1308_v2 = vpop.f32.mrb[52].mxu1 }
 0x16c   : > { %v994_v14 = vrot.slane %v798_v46, 1  ;;  %v800_v26 = vpop.f32.mrb[53].mxu0  ;;  %v1310_v57 = vpop.f32.mrb[53].mxu1 }
 0x16d   : > { %v996_v23 = vrot.slane %v800_v26, 1  ;;  %v802_v1 = vpop.f32.mrb[54].mxu0  ;;  %v1312_v38 = vpop.f32.mrb[54].mxu1 }
 0x16e   : > { %v998_v55 = vrot.slane %v802_v1, 1  ;;  %v804_v3 = vpop.f32.mrb[55].mxu0  ;;  %v995_v48 = vsel %vm891_vm1, %v990_v5, %v994_v14  ;;  %v1314_v56 = vpop.f32.mrb[55].mxu1 }
 0x16f   : > { %v1000_v39 = vrot.slane %v804_v3, 1  ;;  %v7536_v22 = vadd.f32 %v1302_v32, %v995_v48  ;;  %v997_v31 = vsel %vm891_vm1, %v992_v52, %v996_v23 }
 0x170   : > { %v7539_v44 = vadd.f32 %v1304_v6, %v997_v31  ;;  %v999_v35 = vsel %vm891_vm1, %v994_v14, %v998_v55  ;;  %6073 = vmatmul.mubr.msk.bf16.gmra.mrb[160].mxu0 %vm585_vm0, %v7154_v58 }
 0x171   : > { %9350 = vst [vmem:[#allocation22_spill] sm:$0xff] %v7536_v22  ;;  %v7544_v46 = vadd.f32 %v1308_v2, %v999_v35  ;;  %v1001_v26 = vsel %vm891_vm1, %v996_v23, %v1000_v39  ;;  %2706 = vmatprep.mubr.bf16.mxu0 %v9340_v33 }
 0x172   : > { %9351 = vst [vmem:[#allocation23_spill] sm:$0xff] %v7539_v44  ;;  %v7548_v5 = vadd.f32 %v1310_v57, %v1001_v26 }
 0x173   : > { %9352 = vst [vmem:[#allocation24_spill] sm:$0xff] %v7544_v46  ;;  %v808_v48 = vpop.f32.mrb[56].mxu0  ;;  %v1318_v3 = vpop.f32.mrb[56].mxu1 }
 0x174   : > { %v1002_v32 = vrot.slane %v808_v48, 1  ;;  %v810_v52 = vpop.f32.mrb[57].mxu0  ;;  %v1320_v58 = vpop.f32.mrb[57].mxu1  ;;  %v6626_v48 = vld [vmem:[%s9304_s3 + $0x68] ss:$8 sps:$4 sm:$0xff]  }
 0x175   : > { %v1004_v1 = vrot.slane %v810_v52, 1  ;;  %v812_v6 = vpop.f32.mrb[58].mxu0  ;;  %v1322_v35 = vpop.f32.mrb[58].mxu1 }
 0x176   : > { %v1006_v31 = vrot.slane %v812_v6, 1  ;;  %v814_v14 = vpop.f32.mrb[59].mxu0  ;;  %v1003_v44 = vsel %vm891_vm1, %v998_v55, %v1002_v32  ;;  %v1324_v26 = vpop.f32.mrb[59].mxu1 }
 0x177   : > { %v1008_v22 = vrot.slane %v814_v14, 1  ;;  %v7551_v2 = vadd.f32 %v1312_v38, %v1003_v44  ;;  %v1005_v23 = vsel %vm891_vm1, %v1000_v39, %v1004_v1  ;;  %v6628_v44 = vld [vmem:[%s9304_s3 + $0x6c] ss:$8 sps:$4 sm:$0xff]  }
 0x178   : > { %v7554_v46 = vadd.f32 %v1314_v56, %v1005_v23  ;;  %v1007_v57 = vsel %vm891_vm1, %v1002_v32, %v1006_v31  ;;  %6074 = vmatmul.mubr.msk.bf16.gmra.mrb[164].mxu0 %vm585_vm0, %v7163_v59  ;;  %3501 = vmatprep.subr.bf16.mxu1 %v6628_v44 }
 0x179   : > { %9353 = vst [vmem:[#allocation25_spill] sm:$0xff] %v7551_v2  ;;  %v7565_v55 = vadd.f32 %v1318_v3, %v1007_v57  ;;  %v1009_v39 = vsel %vm891_vm1, %v1004_v1, %v1008_v22  ;;  %2716 = vmatprep.mubr.bf16.mxu0 %v9340_v33  ;;  %3502 = vmatpush1.bf16.msra.mxu1 %v6626_v48 }
 0x17a   : > { %9354 = vst [vmem:[#allocation26_spill] sm:$0xff] %v7554_v46  ;;  %v7569_v38 = vadd.f32 %v1320_v58, %v1009_v39 }
 0x17b   : > { %9355 = vst [vmem:[#allocation27_spill] sm:$0xff] %v7565_v55  ;;  %v818_v56 = vpop.f32.mrb[60].mxu0  ;;  %v1328_v14 = vpop.f32.mrb[60].mxu1 }
 0x17c   : > { %v1010_v59 = vrot.slane %v818_v56, 1  ;;  %v820_v32 = vpop.f32.mrb[61].mxu0  ;;  %v1330_v3 = vpop.f32.mrb[61].mxu1 }
 0x17d   : > { %v1012_v52 = vrot.slane %v820_v32, 1  ;;  %v822_v6 = vpop.f32.mrb[62].mxu0  ;;  %v1332_v58 = vpop.f32.mrb[62].mxu1 }
 0x17e   : > { %v1011_v23 = vsel %vm891_vm1, %v1006_v31, %v1010_v59  ;;  %v1014_v46 = vrot.slane %v822_v6, 1  ;;  %v824_v2 = vpop.f32.mrb[63].mxu0  ;;  %v1334_v56 = vpop.f32.mrb[63].mxu1 }
 0x17f   : > { %v7572_v57 = vadd.f32 %v1322_v35, %v1011_v23  ;;  %v1013_v1 = vsel %vm891_vm1, %v1008_v22, %v1012_v52  ;;  %v1016_v55 = vrot.slane %v824_v2, 1 }
 0x180   : > { %v7575_v39 = vadd.f32 %v1324_v26, %v1013_v1  ;;  %v1015_v48 = vsel %vm891_vm1, %v1010_v59, %v1014_v46  ;;  %v1082_v44 = vsel %vm891_vm1, %v1014_v46, 0.0  ;;  %6075 = vmatmul.mubr.msk.bf16.gmra.mrb[168].mxu0 %vm585_vm0, %v7173_v60 }
 0x181   : > { %v7581_v31 = vadd.f32 %v1328_v14, %v1015_v48  ;;  %v1017_v32 = vsel %vm891_vm1, %v1012_v52, %v1016_v55  ;;  %v7584_v35 = vadd.f32 %v1332_v58, %v1082_v44  ;;  %v1083_v22 = vsel %vm891_vm1, %v1016_v55, 0.0  ;;  %2726 = vmatprep.mubr.bf16.mxu0 %v9340_v33 }
 0x182   : > { %9356 = vst [vmem:[#allocation28_spill] sm:$0xff] %v7575_v39  ;;  %v7588_v2 = vadd.f32 %v1330_v3, %v1017_v32  ;;  %v7590_v26 = vadd.f32 %v1334_v56, %v1083_v22 }
 0x183   : > { %9357 = vst [vmem:[#allocation29_spill] sm:$0xff] %v7581_v31  ;;  %9358 = vst [vmem:[#allocation30_spill] sm:$0xff] %v7584_v35  ;;  %v1444_v59 = vpop.f32.mrb[64].mxu0  ;;  %v2031_v60 = vpop.f32.mrb[64].mxu1 }
 0x184   : > { %9359 = vst [vmem:[#allocation31_spill] sm:$0xff] %v7588_v2  ;;  %9360 = vst [vmem:[#allocation32_spill] sm:$0xff] %v7590_v26  ;;  %v1446_v46 = vpop.f32.mrb[65].mxu0  ;;  %v1668_v23 = vrot.slane %v1444_v59, 2  ;;  %v2255_v1 = vrot.slane %v2031_v60, 3  ;;  %v2033_v52 = vpop.f32.mrb[65].mxu1 }
 0x185   : > { %v1448_v6 = vpop.f32.mrb[66].mxu0  ;;  %v1671_v58 = vrot.slane %v1446_v46, 2  ;;  %v2258_v35 = vrot.slane %v2033_v52, 3  ;;  %v2035_v55 = vpop.f32.mrb[66].mxu1 }
 0x186   : > { %v1669_v14 = vrot.slane %v1448_v6, 2  ;;  %v1450_v48 = vpop.f32.mrb[67].mxu0  ;;  %v2256_v32 = vrot.slane %v2035_v55, 3  ;;  %v2037_v56 = vpop.f32.mrb[67].mxu1 }
 0x187   : > { %v1672_v44 = vrot.slane %v1450_v48, 2  ;;  %v2259_v6 = vrot.slane %v2037_v56, 3 }
 0x188   : > { %v1670_v3 = vsel %vm1667_vm2, %v1668_v23, %v1669_v14  ;;  %6076 = vmatmul.mubr.msk.bf16.gmra.mrb[172].mxu0 %vm585_vm0, %v7182_v61  ;;  %v2257_v60 = vsel %vm2254_vm3, %v2255_v1, %v2256_v32 }
 0x189   : > { %v1860_v22 = vadd.f32 %v1670_v3, %v7328_v27  ;;  %v1673_v59 = vsel %vm1667_vm2, %v1671_v58, %v1672_v44  ;;  %2736 = vmatprep.mubr.bf16.mxu0 %v9340_v33  ;;  %v2260_v23 = vsel %vm2254_vm3, %v2258_v35, %v2259_v6 }
 0x18a   : > { %v1861_v46 = vadd.f32 %v1673_v59, %v7332_v29 }
 0x18b   : > { %v7600_v48 = vadd.f32 %v2257_v60, %v1860_v22  ;;  %v1454_v52 = vpop.f32.mrb[68].mxu0  ;;  %v2041_v3 = vpop.f32.mrb[68].mxu1 }
 0x18c   : > { %v7603_v55 = vadd.f32 %v2260_v23, %v1861_v46  ;;  %v1674_v26 = vrot.slane %v1454_v52, 2  ;;  %v1456_v61 = vpop.f32.mrb[69].mxu0  ;;  %v2261_v31 = vrot.slane %v2041_v3, 3  ;;  %v2043_v29 = vpop.f32.mrb[69].mxu1 }
 0x18d   : > { %v1676_v2 = vrot.slane %v1456_v61, 2  ;;  %v1458_v27 = vpop.f32.mrb[70].mxu0  ;;  %v2263_v35 = vrot.slane %v2043_v29, 3  ;;  %v2045_v60 = vpop.f32.mrb[70].mxu1 }
 0x18e   : > { %9361 = vst [vmem:[#allocation33_spill] sm:$0xff] %v7603_v55  ;;  %v1675_v58 = vsel %vm1667_vm2, %v1669_v14, %v1674_v26  ;;  %v1678_v56 = vrot.slane %v1458_v27, 2  ;;  %v1460_v39 = vpop.f32.mrb[71].mxu0  ;;  %v2262_v52 = vsel %vm2254_vm3, %v2256_v32, %v2261_v31  ;;  %v2265_v61 = vrot.slane %v2045_v60, 3  ;;  %v2047_v55 = vpop.f32.mrb[71].mxu1 }
 0x18f   : > { %v1862_v1 = vadd.f32 %v1675_v58, %v7338_v43  ;;  %v1677_v22 = vsel %vm1667_vm2, %v1672_v44, %v1676_v2  ;;  %v1680_v59 = vrot.slane %v1460_v39, 2  ;;  %v2264_v39 = vsel %vm2254_vm3, %v2259_v6, %v2263_v35  ;;  %v6632_v60 = vld [vmem:[%s9304_s3 + $0xb0] ss:$8 sps:$4 sm:$0xff]  }
 0x190   : > { %v1863_v46 = vadd.f32 %v1677_v22, %v7341_v47  ;;  %v1679_v23 = vsel %vm1667_vm2, %v1674_v26, %v1678_v56  ;;  %6077 = vmatmul.mubr.msk.bf16.gmra.mrb[176].mxu0 %vm585_vm0, %v7191_v62  ;;  %v2266_v44 = vsel %vm2254_vm3, %v2261_v31, %v2265_v61  ;;  %v2267_v32 = vrot.slane %v2047_v55, 3  ;;  %v6629_v62 = vld [vmem:[%s9304_s3 + $0x78] ss:$8 sps:$4 sm:$0xff]   ;;  %v6634_v31 = vld [vmem:[%s9304_s3 + $0xb4] ss:$8 sps:$4 sm:$0xff]  }
 0x191   : > { %v1864_v14 = vadd.f32 %v1679_v23, %v7346_v50  ;;  %v7614_v27 = vadd.f32 %v2262_v52, %v1862_v1  ;;  %v1681_v43 = vsel %vm1667_vm2, %v1676_v2, %v1680_v59  ;;  %2746 = vmatprep.mubr.bf16.mxu0 %v9340_v33  ;;  %v6631_v50 = vld [vmem:[%s9304_s3 + $0x7c] ss:$8 sps:$4 sm:$0xff]   ;;  %3987 = vmatprep.subr.bf16.mxu0 %v6634_v31 }
 0x192   : > { %v1865_v47 = vadd.f32 %v1681_v43, %v7350_v53  ;;  %v7620_v26 = vadd.f32 %v2264_v39, %v1863_v46  ;;  %v2268_v3 = vsel %vm2254_vm3, %v2263_v35, %v2267_v32  ;;  %3503 = vmatprep.subr.bf16.mxu1 %v6631_v50  ;;  %3988 = vmatpush1.bf16.msra.mxu0 %v6632_v60 }
 0x193   : > { %v7629_v2 = vadd.f32 %v2266_v44, %v1864_v14  ;;  %v1464_v6 = vpop.f32.mrb[72].mxu0  ;;  %v2051_v22 = vpop.f32.mrb[72].mxu1  ;;  %3504 = vmatpush1.bf16.msra.mxu1 %v6629_v62 }
 0x194   : > { %v1682_v58 = vrot.slane %v1464_v6, 2  ;;  %v1466_v53 = vpop.f32.mrb[73].mxu0  ;;  %v7635_v55 = vadd.f32 %v2268_v3, %v1865_v47  ;;  %v2269_v23 = vrot.slane %v2051_v22, 3  ;;  %v2053_v14 = vpop.f32.mrb[73].mxu1 }
 0x195   : > { %v1684_v29 = vrot.slane %v1466_v53, 2  ;;  %v1468_v1 = vpop.f32.mrb[74].mxu0  ;;  %v2271_v44 = vrot.slane %v2053_v14, 3  ;;  %v2055_v50 = vpop.f32.mrb[74].mxu1 }
 0x196   : > { %v1683_v46 = vsel %vm1667_vm2, %v1678_v56, %v1682_v58  ;;  %v1686_v35 = vrot.slane %v1468_v1, 2  ;;  %v1470_v52 = vpop.f32.mrb[75].mxu0  ;;  %v2270_v56 = vsel %vm2254_vm3, %v2265_v61, %v2269_v23  ;;  %v2273_v3 = vrot.slane %v2055_v50, 3  ;;  %v2057_v53 = vpop.f32.mrb[75].mxu1  ;;  %v6748_v1 = vld [vmem:[%s6990_s30 + $0x68] sm:$0xff]  }
 0x197   : > { %v1866_v43 = vadd.f32 %v1683_v46, %v7356_v13  ;;  %v1685_v39 = vsel %vm1667_vm2, %v1680_v59, %v1684_v29  ;;  %v1688_v47 = vrot.slane %v1470_v52, 2  ;;  %v6637_v13 = vld [vmem:[%s9304_s3 + $0xc4] ss:$8 sps:$4 sm:$0xff]   ;;  %v6635_v61 = vld [vmem:[%s9304_s3 + $0xc0] ss:$8 sps:$4 sm:$0xff]   ;;  %v2275_v52 = vrot.slane %v2057_v53, 3 }
 0x198   : > { %v1867_v62 = vadd.f32 %v1685_v39, %v7359_v16  ;;  %v1687_v6 = vsel %vm1667_vm2, %v1682_v58, %v1686_v35  ;;  %6078 = vmatmul.mubr.msk.bf16.gmra.mrb[180].mxu0 %vm585_vm0, %v6748_v1  ;;  %v2272_v16 = vsel %vm2254_vm3, %v2267_v32, %v2271_v44  ;;  %v2274_v46 = vsel %vm2254_vm3, %v2269_v23, %v2273_v3  ;;  %v6640_v39 = vld [vmem:[%s9304_s3 + $0xd4] ss:$8 sps:$4 sm:$0xff]   ;;  %v6638_v23 = vld [vmem:[%s9304_s3 + $0xd0] ss:$8 sps:$4 sm:$0xff]  }
 0x199   : > { %v1868_v59 = vadd.f32 %v1687_v6, %v7364_v19  ;;  %v7652_v31 = vadd.f32 %v2270_v56, %v1866_v43  ;;  %v1689_v22 = vsel %vm1667_vm2, %v1684_v29, %v1688_v47  ;;  %2756 = vmatprep.mubr.bf16.mxu0 %v9340_v33  ;;  %3989 = vmatprep.subr.bf16.mxu0 %v6637_v13 }
 0x19a   : > { %v1869_v58 = vadd.f32 %v1689_v22, %v7368_v21  ;;  %v7661_v60 = vadd.f32 %v2272_v16, %v1867_v62  ;;  %3990 = vmatpush1.bf16.msra.mxu0 %v6635_v61  ;;  %v2276_v32 = vsel %vm2254_vm3, %v2271_v44, %v2275_v52 }
 0x19b   : > { %v7664_v19 = vadd.f32 %v2274_v46, %v1868_v59  ;;  %v1474_v14 = vpop.f32.mrb[76].mxu0  ;;  %v2061_v6 = vpop.f32.mrb[76].mxu1  ;;  %3991 = vmatprep.subr.bf16.mxu0 %v6640_v39 }
 0x19c   : > { %v1690_v29 = vrot.slane %v1474_v14, 2  ;;  %v1476_v43 = vpop.f32.mrb[77].mxu0  ;;  %v7670_v50 = vadd.f32 %v2276_v32, %v1869_v58  ;;  %v2277_v44 = vrot.slane %v2061_v6, 3  ;;  %v2063_v13 = vpop.f32.mrb[77].mxu1  ;;  %v6641_v6 = vld [vmem:[%s9304_s3 + $0x88] ss:$8 sps:$4 sm:$0xff]  }
 0x19d   : > { %v1692_v21 = vrot.slane %v1476_v43, 2  ;;  %v1478_v62 = vpop.f32.mrb[78].mxu0  ;;  %v2279_v61 = vrot.slane %v2063_v13, 3  ;;  %v2065_v58 = vpop.f32.mrb[78].mxu1 }
 0x19e   : > { %v1691_v56 = vsel %vm1667_vm2, %v1686_v35, %v1690_v29  ;;  %v1694_v53 = vrot.slane %v1478_v62, 2  ;;  %v1480_v1 = vpop.f32.mrb[79].mxu0  ;;  %3992 = vmatpush1.bf16.msra.mxu0 %v6638_v23  ;;  %v2278_v35 = vsel %vm2254_vm3, %v2273_v3, %v2277_v44  ;;  %v2281_v32 = vrot.slane %v2065_v58, 3  ;;  %v2067_v43 = vpop.f32.mrb[79].mxu1  ;;  %v6749_v62 = vld [vmem:[%s6990_s30 + $0x70] sm:$0xff]  }
 0x19f   : > { %v1870_v59 = vadd.f32 %v1691_v56, %v7374_v36  ;;  %v1693_v22 = vsel %vm1667_vm2, %v1688_v47, %v1692_v21  ;;  %v1696_v16 = vrot.slane %v1480_v1, 2  ;;  %v6643_v36 = vld [vmem:[%s9304_s3 + $0x8c] ss:$8 sps:$4 sm:$0xff]   ;;  %v2280_v3 = vsel %vm2254_vm3, %v2275_v52, %v2279_v61  ;;  %v6644_v23 = vld [vmem:[%s9304_s3 + $0xe0] ss:$8 sps:$4 sm:$0xff]  }
 0x1a0   : > { %v1871_v46 = vadd.f32 %v1693_v22, %v7377_v63  ;;  %v1695_v14 = vsel %vm1667_vm2, %v1690_v29, %v1694_v53  ;;  %6079 = vmatmul.mubr.msk.bf16.gmra.mrb[184].mxu0 %vm585_vm0, %v6749_v62  ;;  %v6646_v47 = vld [vmem:[%s9304_s3 + $0xe4] ss:$8 sps:$4 sm:$0xff]   ;;  %v2283_v13 = vrot.slane %v2067_v43, 3  ;;  %3505 = vmatprep.subr.bf16.mxu1 %v6643_v36  ;;  %v6647_v62 = vld [vmem:[%s9304_s3 + $0x98] ss:$8 sps:$4 sm:$0xff]  }
 0x1a1   : > { %v1872_v39 = vadd.f32 %v1695_v14, %v7382_v42  ;;  %v7690_v63 = vadd.f32 %v2278_v35, %v1870_v59  ;;  %v1697_v29 = vsel %vm1667_vm2, %v1692_v21, %v1696_v16  ;;  %2766 = vmatprep.mubr.bf16.mxu0 %v9340_v33  ;;  %v2282_v42 = vsel %vm2254_vm3, %v2277_v44, %v2281_v32  ;;  %v6652_v44 = vld [vmem:[%s9304_s3 + $0xf4] ss:$8 sps:$4 sm:$0xff]  }
 0x1a2   : > { %v1873_v56 = vadd.f32 %v1697_v29, %v7386_v45  ;;  %v7702_v1 = vadd.f32 %v2280_v3, %v1871_v46  ;;  %3993 = vmatprep.subr.bf16.mxu0 %v6646_v47  ;;  %3506 = vmatpush1.bf16.msra.mxu1 %v6641_v6  ;;  %v2284_v59 = vsel %vm2254_vm3, %v2279_v61, %v2283_v13  ;;  %v6649_v45 = vld [vmem:[%s9304_s3 + $0x9c] ss:$8 sps:$4 sm:$0xff]   ;;  %v6650_v3 = vld [vmem:[%s9304_s3 + $0xf0] ss:$8 sps:$4 sm:$0xff]  }
 0x1a3   : > { %v7705_v52 = vadd.f32 %v2282_v42, %v1872_v39  ;;  %v1484_v21 = vpop.f32.mrb[80].mxu0  ;;  %3994 = vmatpush1.bf16.msra.mxu0 %v6644_v23  ;;  %v2071_v43 = vpop.f32.mrb[80].mxu1  ;;  %3507 = vmatprep.subr.bf16.mxu1 %v6649_v45 }
 0x1a4   : > { %v1698_v22 = vrot.slane %v1484_v21, 2  ;;  %v1486_v58 = vpop.f32.mrb[81].mxu0  ;;  %v7714_v46 = vadd.f32 %v2284_v59, %v1873_v56  ;;  %v2285_v47 = vrot.slane %v2071_v43, 3  ;;  %v2073_v29 = vpop.f32.mrb[81].mxu1  ;;  %3995 = vmatprep.subr.bf16.mxu0 %v6652_v44  ;;  %v6750_v43 = vld [vmem:[%s6990_s30 + $0x78] sm:$0xff]   ;;  %s6320_s30 = sshll.u32 %s6900_s21, 7 }
 0x1a5   : > { %v1700_v14 = vrot.slane %v1486_v58, 2  ;;  %v1488_v35 = vpop.f32.mrb[82].mxu0  ;;  %v2287_v42 = vrot.slane %v2073_v29, 3  ;;  %v2075_v21 = vpop.f32.mrb[82].mxu1  ;;  %s9259_s25 = scalar_lea.hbm %s9312_s11, %s6320_s30  ;;  %s5798_s21 = scalar_lea.sflag [#allocation5], %s378_s26 }
 0x1a6   : > { %v1699_v61 = vsel %vm1667_vm2, %v1694_v53, %v1698_v22  ;;  %v1702_v36 = vrot.slane %v1488_v35, 2  ;;  %v1490_v39 = vpop.f32.mrb[83].mxu0  ;;  %3508 = vmatpush1.bf16.msra.mxu1 %v6647_v62  ;;  %v2286_v58 = vsel %vm2254_vm3, %v2281_v32, %v2285_v47  ;;  %v2289_v45 = vrot.slane %v2075_v21, 3  ;;  %v2077_v35 = vpop.f32.mrb[83].mxu1 }
 0x1a7   : > { %v1874_v6 = vadd.f32 %v1699_v61, %v7392_v10  ;;  %v1701_v23 = vsel %vm1667_vm2, %v1696_v16, %v1700_v14  ;;  %v1704_v56 = vrot.slane %v1490_v39, 2  ;;  %v6091_v10 = vld [vmem:[%s9304_s3 + $0xa8] sm:$0x33]  ;;  %v6144_v16 = vld [vmem:[%s9304_s3 + $0x100] sm:$0x33]  ;;  %v2288_v32 = vsel %vm2254_vm3, %v2283_v13, %v2287_v42  ;;  %3996 = vmatpush1.bf16.msra.mxu0 %v6650_v3 }
 0x1a8   : > { %v1875_v53 = vadd.f32 %v1701_v23, %v7395_v0  ;;  %v1703_v59 = vsel %vm1667_vm2, %v1698_v22, %v1702_v36  ;;  %6080 = vmatmul.mubr.msk.bf16.gmra.mrb[188].mxu0 %vm585_vm0, %v6750_v43  ;;  %v2290_v39 = vsel %vm2254_vm3, %v2285_v47, %v2289_v45  ;;  %v2291_v29 = vrot.slane %v2077_v35, 3 }
 0x1a9   : > { %v1876_v44 = vadd.f32 %v1703_v59, %v7400_v17  ;;  %v7737_v0 = vadd.f32 %v2286_v58, %v1874_v6  ;;  %v1705_v22 = vsel %vm1667_vm2, %v1700_v14, %v1704_v56  ;;  %4019 = vmatprep.mubr.bf16.mxu0 %v9340_v33  ;;  %v6103_v17 = vcombine.high %v6091_v10, %v6091_v10 }
 0x1aa   : > { %v1877_v62 = vadd.f32 %v1705_v22, %v7404_v20  ;;  %v7742_v61 = vadd.f32 %v2288_v32, %v1875_v53  ;;  %v6156_v6 = vcombine.high %v6144_v16, %v6144_v16  ;;  %v2292_v14 = vsel %vm2254_vm3, %v2287_v42, %v2291_v29 }
 0x1ab   : > { %v7746_v23 = vadd.f32 %v2290_v39, %v1876_v44  ;;  %v1494_v21 = vpop.f32.mrb[84].mxu0  ;;  %v6102_v3 = vcombine.low %v6091_v10, %v6091_v10  ;;  %v2081_v43 = vpop.f32.mrb[84].mxu1  ;;  %6104 = vmatprep.subr.msk.bf16.mxu1 %vm3492_vm4, %v6103_v17  ;;  %v6155_v47 = vcombine.low %v6144_v16, %v6144_v16 }
 0x1ac   : > { %v1706_v59 = vrot.slane %v1494_v21, 2  ;;  %v1496_v13 = vpop.f32.mrb[85].mxu0  ;;  %v7749_v58 = vadd.f32 %v2292_v14, %v1877_v62  ;;  %6157 = vmatprep.subr.msk.bf16.mxu0 %vm3492_vm4, %v6156_v6  ;;  %v2293_v22 = vrot.slane %v2081_v43, 3  ;;  %v2083_v39 = vpop.f32.mrb[85].mxu1 }
 0x1ad   : > { %v1708_v20 = vrot.slane %v1496_v13, 2  ;;  %v1498_v53 = vpop.f32.mrb[86].mxu0  ;;  %v3494_v42 = vsel %vm3492_vm4, %v6102_v3, 0  ;;  %v2295_v14 = vrot.slane %v2083_v39, 3  ;;  %v2085_v13 = vpop.f32.mrb[86].mxu1  ;;  %v3982_v39 = vsel %vm3492_vm4, %v6155_v47, 0 }
 0x1ae   : > { %v1707_v35 = vsel %vm1667_vm2, %v1702_v36, %v1706_v59  ;;  %v1710_v44 = vrot.slane %v1498_v53, 2  ;;  %v1500_v32 = vpop.f32.mrb[87].mxu0  ;;  %3510 = vmatpush1.bf16.msra.mxu1 %v3494_v42  ;;  %v2294_v36 = vsel %vm2254_vm3, %v2289_v45, %v2293_v22  ;;  %v2297_v6 = vrot.slane %v2085_v13, 3  ;;  %v2087_v53 = vpop.f32.mrb[87].mxu1  ;;  %3998 = vmatpush1.bf16.msra.mxu0 %v3982_v39 }
 0x1af   : > { %v1878_v10 = vadd.f32 %v1707_v35, %v7410_v37  ;;  %v1709_v62 = vsel %vm1667_vm2, %v1704_v56, %v1708_v20  ;;  %v1712_v21 = vrot.slane %v1500_v32, 2  ;;  %v2296_v56 = vsel %vm2254_vm3, %v2291_v29, %v2295_v14 }
 0x1b0   : > { %v1879_v17 = vadd.f32 %v1709_v62, %v7413_v40  ;;  %v1711_v16 = vsel %vm1667_vm2, %v1706_v59, %v1710_v44  ;;  %v2298_v40 = vsel %vm2254_vm3, %v2293_v22, %v2297_v6  ;;  %v2299_v32 = vrot.slane %v2087_v53, 3 }
 0x1b1   : > { %v1880_v43 = vadd.f32 %v1711_v16, %v7418_v49  ;;  %v7761_v33 = vadd.f32 %v2294_v36, %v1878_v10  ;;  %v1713_v37 = vsel %vm1667_vm2, %v1708_v20, %v1712_v21 }
 0x1b2   : > { %v1881_v3 = vadd.f32 %v1713_v37, %v7422_v54  ;;  %v7766_v35 = vadd.f32 %v2296_v56, %v1879_v17  ;;  %v2300_v49 = vsel %vm2254_vm3, %v2295_v14, %v2299_v32 }
 0x1b3   : > { %v7769_v59 = vadd.f32 %v2298_v40, %v1880_v43  ;;  %v1504_v45 = vpop.f32.mrb[88].mxu0  ;;  %v2091_v54 = vpop.f32.mrb[88].mxu1 }
 0x1b4   : > { %v1714_v42 = vrot.slane %v1504_v45, 2  ;;  %v1506_v10 = vpop.f32.mrb[89].mxu0  ;;  %v7773_v20 = vadd.f32 %v2300_v49, %v1881_v3  ;;  %v2301_v22 = vrot.slane %v2091_v54, 3  ;;  %v2093_v36 = vpop.f32.mrb[89].mxu1 }
 0x1b5   : > { %v1716_v29 = vrot.slane %v1506_v10, 2  ;;  %v1508_v62 = vpop.f32.mrb[90].mxu0  ;;  %v2303_v14 = vrot.slane %v2093_v36, 3  ;;  %v2095_v37 = vpop.f32.mrb[90].mxu1 }
 0x1b6   : > { %v1715_v13 = vsel %vm1667_vm2, %v1710_v44, %v1714_v42  ;;  %v1718_v17 = vrot.slane %v1508_v62, 2  ;;  %v1510_v16 = vpop.f32.mrb[91].mxu0  ;;  %v2302_v40 = vsel %vm2254_vm3, %v2297_v6, %v2301_v22  ;;  %v2305_v45 = vrot.slane %v2095_v37, 3  ;;  %v2097_v39 = vpop.f32.mrb[91].mxu1 }
 0x1b7   : > { %v1882_v53 = vadd.f32 %v1715_v13, %v7425_v18  ;;  %v1717_v47 = vsel %vm1667_vm2, %v1712_v21, %v1716_v29  ;;  %v1720_v43 = vrot.slane %v1510_v16, 2  ;;  %v2304_v18 = vsel %vm2254_vm3, %v2299_v32, %v2303_v14 }
 0x1b8   : > { %v1883_v56 = vadd.f32 %v1717_v47, %v7428_v24  ;;  %v1719_v3 = vsel %vm1667_vm2, %v1714_v42, %v1718_v17  ;;  %v2306_v24 = vsel %vm2254_vm3, %v2301_v22, %v2305_v45  ;;  %v2307_v54 = vrot.slane %v2097_v39, 3 }
 0x1b9   : > { %v1884_v44 = vadd.f32 %v1719_v3, %v7433_v28  ;;  %v7782_v49 = vadd.f32 %v2302_v40, %v1882_v53  ;;  %v1721_v10 = vsel %vm1667_vm2, %v1716_v29, %v1720_v43 }
 0x1ba   : > { %v1885_v21 = vadd.f32 %v1721_v10, %v7437_v30  ;;  %v7787_v62 = vadd.f32 %v2304_v18, %v1883_v56  ;;  %v2308_v13 = vsel %vm2254_vm3, %v2303_v14, %v2307_v54 }
 0x1bb   : > { %v7790_v42 = vadd.f32 %v2306_v24, %v1884_v44  ;;  %v1514_v6 = vpop.f32.mrb[92].mxu0  ;;  %v2101_v47 = vpop.f32.mrb[92].mxu1 }
 0x1bc   : > { %v1722_v16 = vrot.slane %v1514_v6, 2  ;;  %v1516_v28 = vpop.f32.mrb[93].mxu0  ;;  %v7793_v36 = vadd.f32 %v2308_v13, %v1885_v21  ;;  %v2309_v37 = vrot.slane %v2101_v47, 3  ;;  %v2103_v3 = vpop.f32.mrb[93].mxu1 }
 0x1bd   : > { %v1724_v53 = vrot.slane %v1516_v28, 2  ;;  %v1518_v29 = vpop.f32.mrb[94].mxu0  ;;  %v2311_v44 = vrot.slane %v2103_v3, 3  ;;  %v2105_v14 = vpop.f32.mrb[94].mxu1 }
 0x1be   : > { %v1723_v32 = vsel %vm1667_vm2, %v1718_v17, %v1722_v16  ;;  %v1726_v30 = vrot.slane %v1518_v29, 2  ;;  %v1520_v56 = vpop.f32.mrb[95].mxu0  ;;  %v2310_v21 = vsel %vm2254_vm3, %v2305_v45, %v2309_v37  ;;  %v2313_v24 = vrot.slane %v2105_v14, 3  ;;  %v2107_v6 = vpop.f32.mrb[95].mxu1 }
 0x1bf   : > { %v1886_v22 = vadd.f32 %v1723_v32, %v7440_v4  ;;  %v1725_v40 = vsel %vm1667_vm2, %v1720_v43, %v1724_v53  ;;  %v1728_v39 = vrot.slane %v1520_v56, 2  ;;  %v2312_v4 = vsel %vm2254_vm3, %v2307_v54, %v2311_v44 }
 0x1c0   : > { %v1887_v10 = vadd.f32 %v1725_v40, %v7443_v7  ;;  %v1727_v18 = vsel %vm1667_vm2, %v1722_v16, %v1726_v30  ;;  %v2314_v7 = vsel %vm2254_vm3, %v2309_v37, %v2313_v24  ;;  %v2315_v47 = vrot.slane %v2107_v6, 3 }
 0x1c1   : > { %v1888_v17 = vadd.f32 %v1727_v18, %v7448_v12  ;;  %v7802_v13 = vadd.f32 %v2310_v21, %v1886_v22  ;;  %v1729_v28 = vsel %vm1667_vm2, %v1724_v53, %v1728_v39 }
 0x1c2   : > { %v1889_v43 = vadd.f32 %v1729_v28, %v7452_v9  ;;  %v7807_v29 = vadd.f32 %v2312_v4, %v1887_v10  ;;  %v2316_v32 = vsel %vm2254_vm3, %v2311_v44, %v2315_v47 }
 0x1c3   : > { %v7810_v16 = vadd.f32 %v2314_v7, %v1888_v17  ;;  %v1524_v45 = vpop.f32.mrb[96].mxu0  ;;  %v2111_v40 = vpop.f32.mrb[96].mxu1 }
 0x1c4   : > { %v1730_v56 = vrot.slane %v1524_v45, 2  ;;  %v1526_v12 = vpop.f32.mrb[97].mxu0  ;;  %v7813_v3 = vadd.f32 %v2316_v32, %v1889_v43  ;;  %v2317_v14 = vrot.slane %v2111_v40, 3  ;;  %v2113_v18 = vpop.f32.mrb[97].mxu1 }
 0x1c5   : > { %v1732_v22 = vrot.slane %v1526_v12, 2  ;;  %v1528_v53 = vpop.f32.mrb[98].mxu0  ;;  %v2319_v17 = vrot.slane %v2113_v18, 3  ;;  %v2115_v44 = vpop.f32.mrb[98].mxu1 }
 0x1c6   : > { %v1731_v54 = vsel %vm1667_vm2, %v1726_v30, %v1730_v56  ;;  %v1734_v9 = vrot.slane %v1528_v53, 2  ;;  %v1530_v10 = vpop.f32.mrb[99].mxu0  ;;  %v2318_v43 = vsel %vm2254_vm3, %v2313_v24, %v2317_v14  ;;  %v2321_v7 = vrot.slane %v2115_v44, 3  ;;  %v2117_v45 = vpop.f32.mrb[99].mxu1 }
 0x1c7   : > { %v1890_v37 = vadd.f32 %v1731_v54, %v7455_v41  ;;  %v1733_v21 = vsel %vm1667_vm2, %v1728_v39, %v1732_v22  ;;  %v1736_v6 = vrot.slane %v1530_v10, 2  ;;  %v2320_v41 = vsel %vm2254_vm3, %v2315_v47, %v2319_v17  ;;  %v9362_v39 = vld [vmem:[#allocation9_spill] sm:$0xff] }
 0x1c8   : > { %v1891_v28 = vadd.f32 %v1733_v21, %v7458_v51  ;;  %v1735_v4 = vsel %vm1667_vm2, %v1730_v56, %v1734_v9  ;;  %v2322_v51 = vsel %vm2254_vm3, %v2317_v14, %v2321_v7  ;;  %v2323_v54 = vrot.slane %v2117_v45, 3  ;;  %v9365_v14 = vld [vmem:[#allocation10_spill] sm:$0xff] }
 0x1c9   : > { %v1892_v30 = vadd.f32 %v1735_v4, %v7463_v8  ;;  %v7822_v32 = vadd.f32 %v2318_v43, %v1890_v37  ;;  %v1737_v12 = vsel %vm1667_vm2, %v1732_v22, %v1736_v6 }
 0x1ca   : > { %v1893_v53 = vadd.f32 %v1737_v12, %v9362_v39  ;;  %v7827_v40 = vadd.f32 %v2320_v41, %v1891_v28  ;;  %v2324_v10 = vsel %vm2254_vm3, %v2319_v17, %v2323_v54 }
 0x1cb   : > { %v7830_v56 = vadd.f32 %v2322_v51, %v1892_v30  ;;  %v1534_v24 = vpop.f32.mrb[100].mxu0  ;;  %v2121_v44 = vpop.f32.mrb[100].mxu1  ;;  %v9366_v51 = vld [vmem:[#allocation11_spill] sm:$0xff] }
 0x1cc   : > { %v1738_v18 = vrot.slane %v1534_v24, 2  ;;  %v1536_v8 = vpop.f32.mrb[101].mxu0  ;;  %v7833_v37 = vadd.f32 %v2324_v10, %v1893_v53  ;;  %v2325_v28 = vrot.slane %v2121_v44, 3  ;;  %v2123_v12 = vpop.f32.mrb[101].mxu1 }
 0x1cd   : > { %9363 = vst [vmem:[#allocation9_spill] sm:$0xff] %v7830_v56  ;;  %v1740_v21 = vrot.slane %v1536_v8, 2  ;;  %v1538_v22 = vpop.f32.mrb[102].mxu0  ;;  %v2327_v39 = vrot.slane %v2123_v12, 3  ;;  %v2125_v17 = vpop.f32.mrb[102].mxu1 }
 0x1ce   : > { %9364 = vst [vmem:[#allocation34_spill] sm:$0xff] %v7833_v37  ;;  %v1739_v47 = vsel %vm1667_vm2, %v1734_v9, %v1738_v18  ;;  %v1742_v4 = vrot.slane %v1538_v22, 2  ;;  %v1540_v43 = vpop.f32.mrb[103].mxu0  ;;  %v2326_v10 = vsel %vm2254_vm3, %v2321_v7, %v2325_v28  ;;  %v2329_v8 = vrot.slane %v2125_v17, 3  ;;  %v2127_v37 = vpop.f32.mrb[103].mxu1  ;;  %v9367_v9 = vld [vmem:[#allocation12_spill] sm:$0xff] }
 0x1cf   : > { %v1894_v45 = vadd.f32 %v1739_v47, %v9365_v14  ;;  %v1741_v30 = vsel %vm1667_vm2, %v1736_v6, %v1740_v21  ;;  %v1744_v41 = vrot.slane %v1540_v43, 2  ;;  %v2328_v47 = vsel %vm2254_vm3, %v2323_v54, %v2327_v39 }
 0x1d0   : > { %v1895_v24 = vadd.f32 %v1741_v30, %v9366_v51  ;;  %v1743_v53 = vsel %vm1667_vm2, %v1738_v18, %v1742_v4  ;;  %v2330_v12 = vsel %vm2254_vm3, %v2325_v28, %v2329_v8  ;;  %v2331_v14 = vrot.slane %v2127_v37, 3  ;;  %v9371_v28 = vld [vmem:[#allocation13_spill] sm:$0xff] }
 0x1d1   : > { %v1896_v22 = vadd.f32 %v1743_v53, %v9367_v9  ;;  %v7842_v44 = vadd.f32 %v2326_v10, %v1894_v45  ;;  %v1745_v56 = vsel %vm1667_vm2, %v1740_v21, %v1744_v41 }
 0x1d2   : > { %v1897_v6 = vadd.f32 %v1745_v56, %v7482_v11  ;;  %v7847_v43 = vadd.f32 %v2328_v47, %v1895_v24  ;;  %v2332_v30 = vsel %vm2254_vm3, %v2327_v39, %v2331_v14 }
 0x1d3   : > { %v7850_v18 = vadd.f32 %v2330_v12, %v1896_v22  ;;  %v1544_v7 = vpop.f32.mrb[104].mxu0  ;;  %v2131_v10 = vpop.f32.mrb[104].mxu1 }
 0x1d4   : > { %9368 = vst [vmem:[#allocation10_spill] sm:$0xff] %v7847_v43  ;;  %v1746_v17 = vrot.slane %v1544_v7, 2  ;;  %v1546_v51 = vpop.f32.mrb[105].mxu0  ;;  %v7853_v45 = vadd.f32 %v2332_v30, %v1897_v6  ;;  %v2333_v56 = vrot.slane %v2131_v10, 3  ;;  %v2133_v9 = vpop.f32.mrb[105].mxu1  ;;  %v9372_v7 = vld [vmem:[#allocation14_spill] sm:$0xff] }
 0x1d5   : > { %9369 = vst [vmem:[#allocation11_spill] sm:$0xff] %v7850_v18  ;;  %v1748_v53 = vrot.slane %v1546_v51, 2  ;;  %v1548_v21 = vpop.f32.mrb[106].mxu0  ;;  %v2335_v12 = vrot.slane %v2133_v9, 3  ;;  %v2135_v39 = vpop.f32.mrb[106].mxu1 }
 0x1d6   : > { %9370 = vst [vmem:[#allocation12_spill] sm:$0xff] %v7853_v45  ;;  %v1747_v54 = vsel %vm1667_vm2, %v1742_v4, %v1746_v17  ;;  %v1750_v11 = vrot.slane %v1548_v21, 2  ;;  %v1550_v24 = vpop.f32.mrb[107].mxu0  ;;  %v2334_v30 = vsel %vm2254_vm3, %v2329_v8, %v2333_v56  ;;  %v2337_v51 = vrot.slane %v2135_v39, 3  ;;  %v2137_v45 = vpop.f32.mrb[107].mxu1  ;;  %v9373_v4 = vld [vmem:[#allocation15_spill] sm:$0xff] }
 0x1d7   : > { %v1898_v37 = vadd.f32 %v1747_v54, %v9371_v28  ;;  %v1749_v22 = vsel %vm1667_vm2, %v1744_v41, %v1748_v53  ;;  %v1752_v47 = vrot.slane %v1550_v24, 2  ;;  %v2336_v54 = vsel %vm2254_vm3, %v2331_v14, %v2335_v12 }
 0x1d8   : > { %v1899_v18 = vadd.f32 %v1749_v22, %v9372_v7  ;;  %v1751_v6 = vsel %vm1667_vm2, %v1746_v17, %v1750_v11  ;;  %v2338_v9 = vsel %vm2254_vm3, %v2333_v56, %v2337_v51  ;;  %v2339_v28 = vrot.slane %v2137_v45, 3 }
 0x1d9   : > { %v1900_v21 = vadd.f32 %v1751_v6, %v9373_v4  ;;  %v7862_v10 = vadd.f32 %v2334_v30, %v1898_v37  ;;  %v1753_v43 = vsel %vm1667_vm2, %v1748_v53, %v1752_v47 }
 0x1da   : > { %v1901_v41 = vadd.f32 %v1753_v43, %v7497_v34  ;;  %v7867_v24 = vadd.f32 %v2336_v54, %v1899_v18  ;;  %v2340_v22 = vsel %vm2254_vm3, %v2335_v12, %v2339_v28 }
 0x1db   : > { %v7870_v17 = vadd.f32 %v2338_v9, %v1900_v21  ;;  %v1554_v8 = vpop.f32.mrb[108].mxu0  ;;  %v2141_v30 = vpop.f32.mrb[108].mxu1  ;;  %v9376_v9 = vld [vmem:[#allocation16_spill] sm:$0xff] }
 0x1dc   : > { %v1754_v39 = vrot.slane %v1554_v8, 2  ;;  %v1556_v7 = vpop.f32.mrb[109].mxu0  ;;  %v7873_v37 = vadd.f32 %v2340_v22, %v1901_v41  ;;  %v2341_v43 = vrot.slane %v2141_v30, 3  ;;  %v2143_v4 = vpop.f32.mrb[109].mxu1 }
 0x1dd   : > { %9374 = vst [vmem:[#allocation13_spill] sm:$0xff] %v7870_v17  ;;  %v1756_v6 = vrot.slane %v1556_v7, 2  ;;  %v1558_v53 = vpop.f32.mrb[110].mxu0  ;;  %v2343_v54 = vrot.slane %v2143_v4, 3  ;;  %v2145_v12 = vpop.f32.mrb[110].mxu1 }
 0x1de   : > { %9375 = vst [vmem:[#allocation14_spill] sm:$0xff] %v7873_v37  ;;  %v1755_v14 = vsel %vm1667_vm2, %v1750_v11, %v1754_v39  ;;  %v1758_v34 = vrot.slane %v1558_v53, 2  ;;  %v1560_v18 = vpop.f32.mrb[111].mxu0  ;;  %v2342_v22 = vsel %vm2254_vm3, %v2337_v51, %v2341_v43  ;;  %v2345_v7 = vrot.slane %v2145_v12, 3  ;;  %v2147_v37 = vpop.f32.mrb[111].mxu1  ;;  %v9377_v11 = vld [vmem:[#allocation17_spill] sm:$0xff] }
 0x1df   : > { %v1902_v45 = vadd.f32 %v1755_v14, %v7500_v25  ;;  %v1757_v56 = vsel %vm1667_vm2, %v1752_v47, %v1756_v6  ;;  %v1760_v21 = vrot.slane %v1560_v18, 2  ;;  %v2344_v25 = vsel %vm2254_vm3, %v2339_v28, %v2343_v54  ;;  %v9379_v47 = vld [vmem:[#allocation18_spill] sm:$0xff] }
 0x1e0   : > { %v1903_v8 = vadd.f32 %v1757_v56, %v9376_v9  ;;  %v1759_v41 = vsel %vm1667_vm2, %v1754_v39, %v1758_v34  ;;  %v2346_v4 = vsel %vm2254_vm3, %v2341_v43, %v2345_v7  ;;  %v2347_v56 = vrot.slane %v2147_v37, 3  ;;  %v9383_v43 = vld [vmem:[#allocation19_spill] sm:$0xff] }
 0x1e1   : > { %v1904_v53 = vadd.f32 %v1759_v41, %v9377_v11  ;;  %v7882_v30 = vadd.f32 %v2342_v22, %v1902_v45  ;;  %v1761_v17 = vsel %vm1667_vm2, %v1756_v6, %v1760_v21 }
 0x1e2   : > { %v1905_v14 = vadd.f32 %v1761_v17, %v9379_v47  ;;  %v7887_v18 = vadd.f32 %v2344_v25, %v1903_v8  ;;  %v2348_v12 = vsel %vm2254_vm3, %v2343_v54, %v2347_v56 }
 0x1e3   : > { %9378 = vst [vmem:[#allocation15_spill] sm:$0xff] %v7882_v30  ;;  %v7890_v39 = vadd.f32 %v2346_v4, %v1904_v53  ;;  %v1564_v51 = vpop.f32.mrb[112].mxu0  ;;  %v2151_v11 = vpop.f32.mrb[112].mxu1 }
 0x1e4   : > { %9380 = vst [vmem:[#allocation16_spill] sm:$0xff] %v7887_v18  ;;  %v1762_v9 = vrot.slane %v1564_v51, 2  ;;  %v1566_v41 = vpop.f32.mrb[113].mxu0  ;;  %v7893_v45 = vadd.f32 %v2348_v12, %v1905_v14  ;;  %v2349_v8 = vrot.slane %v2151_v11, 3  ;;  %v2153_v47 = vpop.f32.mrb[113].mxu1  ;;  %v9384_v51 = vld [vmem:[#allocation20_spill] sm:$0xff] }
 0x1e5   : > { %9381 = vst [vmem:[#allocation17_spill] sm:$0xff] %v7890_v39  ;;  %v1764_v22 = vrot.slane %v1566_v41, 2  ;;  %v1568_v6 = vpop.f32.mrb[114].mxu0  ;;  %v2351_v39 = vrot.slane %v2153_v47, 3  ;;  %v2155_v54 = vpop.f32.mrb[114].mxu1 }
 0x1e6   : > { %9382 = vst [vmem:[#allocation18_spill] sm:$0xff] %v7893_v45  ;;  %v1763_v28 = vsel %vm1667_vm2, %v1758_v34, %v1762_v9  ;;  %v1766_v17 = vrot.slane %v1568_v6, 2  ;;  %v1570_v25 = vpop.f32.mrb[115].mxu0  ;;  %v2350_v12 = vsel %vm2254_vm3, %v2345_v7, %v2349_v8  ;;  %v2353_v41 = vrot.slane %v2155_v54, 3  ;;  %v2157_v45 = vpop.f32.mrb[115].mxu1  ;;  %v9385_v34 = vld [vmem:[#allocation21_spill] sm:$0xff] }
 0x1e7   : > { %v1906_v37 = vadd.f32 %v1763_v28, %v9383_v43  ;;  %v1765_v53 = vsel %vm1667_vm2, %v1760_v21, %v1764_v22  ;;  %v1768_v4 = vrot.slane %v1570_v25, 2  ;;  %v2352_v28 = vsel %vm2254_vm3, %v2347_v56, %v2351_v39  ;;  %v6659_v7 = vld [vmem:[%s9304_s3 + $0x4] ss:$8 sps:$4 sm:$0xff]  }
 0x1e8   : > { %v1907_v18 = vadd.f32 %v1765_v53, %v9384_v51  ;;  %v1767_v14 = vsel %vm1667_vm2, %v1762_v9, %v1766_v17  ;;  %v2354_v47 = vsel %vm2254_vm3, %v2349_v8, %v2353_v41  ;;  %v2355_v43 = vrot.slane %v2157_v45, 3  ;;  %3801 = vmatprep.subr.bf16.mxu1 %v6659_v7 }
 0x1e9   : > { %v1908_v6 = vadd.f32 %v1767_v14, %v9385_v34  ;;  %v7902_v11 = vadd.f32 %v2350_v12, %v1906_v37  ;;  %v1769_v30 = vsel %vm1667_vm2, %v1764_v22, %v1768_v4  ;;  %v9389_v34 = vld [vmem:[#allocation22_spill] sm:$0xff] }
 0x1ea   : > { %v1909_v21 = vadd.f32 %v1769_v30, %v7533_v15  ;;  %v7907_v25 = vadd.f32 %v2352_v28, %v1907_v18  ;;  %v2356_v37 = vsel %vm2254_vm3, %v2351_v39, %v2355_v43 }
 0x1eb   : > { %v7913_v9 = vadd.f32 %v2354_v47, %v1908_v6  ;;  %v1574_v53 = vpop.f32.mrb[116].mxu0  ;;  %v2161_v18 = vpop.f32.mrb[116].mxu1 }
 0x1ec   : > { %9386 = vst [vmem:[#allocation19_spill] sm:$0xff] %v7907_v25  ;;  %v1770_v54 = vrot.slane %v1574_v53, 2  ;;  %v1576_v22 = vpop.f32.mrb[117].mxu0  ;;  %v7916_v56 = vadd.f32 %v2356_v37, %v1909_v21  ;;  %v2357_v51 = vrot.slane %v2161_v18, 3  ;;  %v2163_v12 = vpop.f32.mrb[117].mxu1 }
 0x1ed   : > { %9387 = vst [vmem:[#allocation20_spill] sm:$0xff] %v7913_v9  ;;  %v1772_v15 = vrot.slane %v1576_v22, 2  ;;  %v1578_v30 = vpop.f32.mrb[118].mxu0  ;;  %v2359_v39 = vrot.slane %v2163_v12, 3  ;;  %v2165_v53 = vpop.f32.mrb[118].mxu1  ;;  %v9390_v9 = vld [vmem:[#allocation23_spill] sm:$0xff] }
 0x1ee   : > { %9388 = vst [vmem:[#allocation21_spill] sm:$0xff] %v7916_v56  ;;  %v1771_v8 = vsel %vm1667_vm2, %v1766_v17, %v1770_v54  ;;  %v1774_v45 = vrot.slane %v1578_v30, 2  ;;  %v1580_v14 = vpop.f32.mrb[119].mxu0  ;;  %v2358_v37 = vsel %vm2254_vm3, %v2353_v41, %v2357_v51  ;;  %v2361_v22 = vrot.slane %v2165_v53, 3  ;;  %v2167_v56 = vpop.f32.mrb[119].mxu1  ;;  %v9391_v17 = vld [vmem:[#allocation24_spill] sm:$0xff] }
 0x1ef   : > { %v1910_v6 = vadd.f32 %v1771_v8, %v9389_v34  ;;  %v1773_v28 = vsel %vm1667_vm2, %v1768_v4, %v1772_v15  ;;  %v1776_v47 = vrot.slane %v1580_v14, 2  ;;  %v2360_v8 = vsel %vm2254_vm3, %v2355_v43, %v2359_v39 }
 0x1f0   : > { %v1911_v7 = vadd.f32 %v1773_v28, %v9390_v9  ;;  %v1775_v21 = vsel %vm1667_vm2, %v1770_v54, %v1774_v45  ;;  %v2362_v9 = vsel %vm2254_vm3, %v2357_v51, %v2361_v22  ;;  %v2363_v12 = vrot.slane %v2167_v56, 3  ;;  %v9396_v56 = vld [vmem:[#allocation25_spill] sm:$0xff] }
 0x1f1   : > { %v1912_v30 = vadd.f32 %v1775_v21, %v9391_v17  ;;  %v7925_v18 = vadd.f32 %v2358_v37, %v1910_v6  ;;  %v1777_v25 = vsel %vm1667_vm2, %v1772_v15, %v1776_v47  ;;  %v3100_v51 = vlaneseq }
 0x1f2   : > { %v1913_v4 = vadd.f32 %v1777_v25, %v7548_v5  ;;  %v7930_v14 = vadd.f32 %v2360_v8, %v1911_v7  ;;  %v2364_v34 = vsel %vm2254_vm3, %v2359_v39, %v2363_v12 }
 0x1f3   : > { %9392 = vst [vmem:[#allocation22_spill] sm:$0xff] %v7925_v18  ;;  %v7933_v54 = vadd.f32 %v2362_v9, %v1912_v30  ;;  %v1584_v41 = vpop.f32.mrb[120].mxu0  ;;  %v2171_v37 = vpop.f32.mrb[120].mxu1 }
 0x1f4   : > { %9393 = vst [vmem:[#allocation23_spill] sm:$0xff] %v7930_v14  ;;  %v1778_v28 = vrot.slane %v1584_v41, 2  ;;  %v1586_v53 = vpop.f32.mrb[121].mxu0  ;;  %v7936_v6 = vadd.f32 %v2364_v34, %v1913_v4  ;;  %v2365_v25 = vrot.slane %v2171_v37, 3  ;;  %v2173_v17 = vpop.f32.mrb[121].mxu1 }
 0x1f5   : > { %9394 = vst [vmem:[#allocation24_spill] sm:$0xff] %v7933_v54  ;;  %v1780_v21 = vrot.slane %v1586_v53, 2  ;;  %v1588_v15 = vpop.f32.mrb[122].mxu0  ;;  %v2367_v39 = vrot.slane %v2173_v17, 3  ;;  %v2175_v41 = vpop.f32.mrb[122].mxu1  ;;  %v9397_v54 = vld [vmem:[#allocation26_spill] sm:$0xff] }
 0x1f6   : > { %9395 = vst [vmem:[#allocation35_spill] sm:$0xff] %v7936_v6  ;;  %v1779_v43 = vsel %vm1667_vm2, %v1774_v45, %v1778_v28  ;;  %v1782_v5 = vrot.slane %v1588_v15, 2  ;;  %v1590_v7 = vpop.f32.mrb[123].mxu0  ;;  %v2366_v53 = vsel %vm2254_vm3, %v2361_v22, %v2365_v25  ;;  %v2369_v6 = vrot.slane %v2175_v41, 3  ;;  %v2177_v45 = vpop.f32.mrb[123].mxu1  ;;  %v9398_v15 = vld [vmem:[#allocation27_spill] sm:$0xff] }
 0x1f7   : > { %v1914_v30 = vadd.f32 %v1779_v43, %v9396_v56  ;;  %v1781_v8 = vsel %vm1667_vm2, %v1776_v47, %v1780_v21  ;;  %v1784_v9 = vrot.slane %v1590_v7, 2  ;;  %v2368_v43 = vsel %vm2254_vm3, %v2363_v12, %v2367_v39 }
 0x1f8   : > { %v1915_v4 = vadd.f32 %v1781_v8, %v9397_v54  ;;  %v1783_v34 = vsel %vm1667_vm2, %v1778_v28, %v1782_v5  ;;  %v2370_v54 = vsel %vm2254_vm3, %v2365_v25, %v2369_v6  ;;  %v2371_v17 = vrot.slane %v2177_v45, 3 }
 0x1f9   : > { %v1916_v37 = vadd.f32 %v1783_v34, %v9398_v15  ;;  %v7945_v14 = vadd.f32 %v2366_v53, %v1914_v30  ;;  %v1785_v18 = vsel %vm1667_vm2, %v1780_v21, %v1784_v9  ;;  %v7959_v25 = vshrl.u32 %v3100_v51, 7  ;;  %v9406_v51 = vld [vmem:[#allocation30_spill] sm:$0xff] }
 0x1fa   : > { %v1917_v47 = vadd.f32 %v1785_v18, %v7569_v38  ;;  %v7950_v7 = vadd.f32 %v2368_v43, %v1915_v4  ;;  %v2372_v56 = vsel %vm2254_vm3, %v2367_v39, %v2371_v17 }
 0x1fb   : > { %9399 = vst [vmem:[#allocation25_spill] sm:$0xff] %v7945_v14  ;;  %v7953_v28 = vadd.f32 %v2370_v54, %v1916_v37  ;;  %v1594_v22 = vpop.f32.mrb[124].mxu0  ;;  %v2181_v53 = vpop.f32.mrb[124].mxu1  ;;  %9403 = vst [vmem:[#allocation37_spill] sm:$0xff] %v7959_v25 }
 0x1fc   : > { %9400 = vst [vmem:[#allocation26_spill] sm:$0xff] %v7950_v7  ;;  %v1786_v8 = vrot.slane %v1594_v22, 2  ;;  %v1596_v41 = vpop.f32.mrb[125].mxu0  ;;  %v7956_v30 = vadd.f32 %v2372_v56, %v1917_v47  ;;  %v2373_v18 = vrot.slane %v2181_v53, 3  ;;  %v2183_v15 = vpop.f32.mrb[125].mxu1  ;;  %v9404_v47 = vld [vmem:[#allocation28_spill] sm:$0xff] }
 0x1fd   : > { %9401 = vst [vmem:[#allocation27_spill] sm:$0xff] %v7953_v28  ;;  %v1788_v34 = vrot.slane %v1596_v41, 2  ;;  %v1598_v21 = vpop.f32.mrb[126].mxu0  ;;  %v2375_v43 = vrot.slane %v2183_v15, 3  ;;  %v2185_v54 = vpop.f32.mrb[126].mxu1  ;;  %v9405_v53 = vld [vmem:[#allocation29_spill] sm:$0xff] }
 0x1fe   : > { %9402 = vst [vmem:[#allocation36_spill] sm:$0xff] %v7956_v30  ;;  %v1787_v12 = vsel %vm1667_vm2, %v1782_v5, %v1786_v8  ;;  %v1790_v38 = vrot.slane %v1598_v21, 2  ;;  %v1600_v4 = vpop.f32.mrb[127].mxu0  ;;  %v2374_v5 = vsel %vm2254_vm3, %v2369_v6, %v2373_v18  ;;  %v2187_v21 = vpop.f32.mrb[127].mxu1 }
 0x1ff   : > { %v1918_v45 = vadd.f32 %v1787_v12, %v7572_v57  ;;  %v1789_v37 = vsel %vm1667_vm2, %v1784_v9, %v1788_v34  ;;  %v1792_v39 = vrot.slane %v1600_v4, 2  ;;  %v9407_v12 = vld [vmem:[#allocation31_spill] sm:$0xff]  ;;  %v2376_v15 = vsel %vm2254_vm3, %v2371_v17, %v2375_v43 }
 0x200   : > { %v1919_v22 = vadd.f32 %v1789_v37, %v9404_v47  ;;  %v1791_v56 = vsel %vm1667_vm2, %v1786_v8, %v1790_v38  ;;  %v1858_v41 = vsel %vm1667_vm2, %v1790_v38, 0.0  ;;  %v2377_v8 = vrot.slane %v2185_v54, 3  ;;  %v9408_v37 = vld [vmem:[#allocation32_spill] sm:$0xff] }
 0x201   : > { %v1920_v30 = vadd.f32 %v1791_v56, %v9405_v53  ;;  %v1922_v28 = vadd.f32 %v1858_v41, %v9406_v51  ;;  %v7969_v7 = vadd.f32 %v2374_v5, %v1918_v45  ;;  %v1793_v57 = vsel %vm1667_vm2, %v1788_v34, %v1792_v39 }
 0x202   : > { %v1859_v9 = vsel %vm1667_vm2, %v1792_v39, 0.0  ;;  %v1921_v4 = vadd.f32 %v1793_v57, %v9407_v12  ;;  %v7976_v47 = vadd.f32 %v2376_v15, %v1919_v22  ;;  %v2379_v6 = vrot.slane %v2187_v21, 3  ;;  %v3098_v39 = vld [vmem:[%s9303_s2] sm:$0x3]  ;;  %v6671_v15 = vld [vmem:[%s9304_s3 + $0x164] ss:$8 sps:$4 sm:$0xff]  }
 0x203   : > { %v1923_v38 = vadd.f32 %v1859_v9, %v9408_v37  ;;  %v2618_v14 = vpop.f32.mrb[128].mxu0  ;;  %v9317_v56 = vsub.s32 0, %v7959_v25  ;;  %v2378_v45 = vsel %vm2254_vm3, %v2373_v18, %v2377_v8  ;;  %v2445_v41 = vsel %vm2254_vm3, %v2377_v8, 0.0  ;;  %4679 = vmatprep.subr.bf16.mxu0 %v6671_v15 }
 0x204   : > { %v2620_v34 = vpop.f32.mrb[129].mxu0  ;;  %v9318_v17 = vsub.s32 1, %v7959_v25  ;;  %v7985_v54 = vadd.f32 %v2378_v45, %v1920_v30  ;;  %v7987_v22 = vadd.f32 %v2445_v41, %v1922_v28  ;;  %v2380_v5 = vsel %vm2254_vm3, %v2375_v43, %v2379_v6 }
 0x205   : > { %v2446_v21 = vsel %vm2254_vm3, %v2379_v6, 0.0  ;;  %v2622_v53 = vpop.f32.mrb[130].mxu0  ;;  %v7991_v18 = vadd.f32 %v2380_v5, %v1921_v4  ;;  %v2842_v57 = vrot.slane %v2618_v14, 4  ;;  %v2845_v30 = vrot.slane %v2620_v34, 4 }
 0x206   : > { %v7993_v51 = vadd.f32 %v2446_v21, %v1923_v38  ;;  %v2843_v9 = vrot.slane %v2622_v53, 4  ;;  %v2624_v12 = vpop.f32.mrb[131].mxu0  ;;  %v8000_v28 = vrot.slane %v3098_v39, %v9317_v56  ;;  %v8005_v4 = vrot.slane %v3098_v39, %v9318_v17  ;;  %v9409_v38 = vld [vmem:[#allocation33_spill] sm:$0xff] }
 0x207   : > { %v2846_v43 = vrot.slane %v2624_v12, 4 }
 0x208   : > { %v2844_v8 = vsel %vm2841_vm5, %v2842_v57, %v2843_v9 }
 0x209   : > { %v3034_v14 = vadd.f32 %v2844_v8, %v7600_v48  ;;  %v2847_v37 = vsel %vm2841_vm5, %v2845_v30, %v2846_v43 }
 0x20a   : > { %v3035_v6 = vadd.f32 %v2847_v37, %v9409_v38 }
 0x20b   : > { %v3110_v45 = vadd.f32 %v8000_v28, %v3034_v14  ;;  %v2628_v41 = vpop.f32.mrb[132].mxu0 }
 0x20c   : > { %v3111_v34 = vadd.f32 %v8005_v4, %v3035_v6  ;;  %v2848_v5 = vrot.slane %v2628_v41, 4  ;;  %v2630_v21 = vpop.f32.mrb[133].mxu0 }
 0x20d   : > { %v3174_v53 = vmax.f32 %v3110_v45, 0.0  ;;  %v2850_v57 = vrot.slane %v2630_v21, 4  ;;  %v2632_v12 = vpop.f32.mrb[134].mxu0 }
 0x20e   : > { %v3175_v56 = vmax.f32 %v3111_v34, 0.0  ;;  %v2849_v39 = vsel %vm2841_vm5, %v2843_v9, %v2848_v5  ;;  %v2852_v15 = vrot.slane %v2632_v12, 4  ;;  %v2634_v17 = vpop.f32.mrb[135].mxu0 }
 0x20f   : > { %v3036_v48 = vadd.f32 %v2849_v39, %v7614_v27  ;;  %v2851_v30 = vsel %vm2841_vm5, %v2846_v43, %v2850_v57  ;;  %v2854_v8 = vrot.slane %v2634_v17, 4 }
 0x210   : > { %v3238_v14 = vmax.f32 %v3174_v53, %v3175_v56  ;;  %v3037_v37 = vadd.f32 %v2851_v30, %v7620_v26  ;;  %v2853_v38 = vsel %vm2841_vm5, %v2848_v5, %v2852_v15 }
 0x211   : > { %v3112_v6 = vadd.f32 %v8000_v28, %v3036_v48  ;;  %v3038_v45 = vadd.f32 %v2853_v38, %v7629_v2  ;;  %v2855_v41 = vsel %vm2841_vm5, %v2850_v57, %v2854_v8 }
 0x212   : > { %3271 = vst.msk [vmem:[#allocation2] sm:$0xff] %vm3270_vm6, %v3238_v14  ;;  %v3113_v9 = vadd.f32 %v8005_v4, %v3037_v37  ;;  %v3039_v27 = vadd.f32 %v2855_v41, %v7635_v55 }
 0x213   : > { %v3176_v34 = vmax.f32 %v3112_v6, 0.0  ;;  %v3114_v17 = vadd.f32 %v8000_v28, %v3038_v45  ;;  %v2638_v56 = vpop.f32.mrb[136].mxu0 }
 0x214   : > { %v3177_v43 = vmax.f32 %v3113_v9, 0.0  ;;  %v3115_v26 = vadd.f32 %v8005_v4, %v3039_v27  ;;  %v2856_v5 = vrot.slane %v2638_v56, 4  ;;  %v2640_v21 = vpop.f32.mrb[137].mxu0 }
 0x215   : > { %v3178_v53 = vmax.f32 %v3114_v17, 0.0  ;;  %v2858_v12 = vrot.slane %v2640_v21, 4  ;;  %v2642_v2 = vpop.f32.mrb[138].mxu0 }
 0x216   : > { %v3239_v39 = vmax.f32 %v3176_v34, %v3177_v43  ;;  %v3179_v57 = vmax.f32 %v3115_v26, 0.0  ;;  %v2857_v48 = vsel %vm2841_vm5, %v2852_v15, %v2856_v5  ;;  %v2860_v30 = vrot.slane %v2642_v2, 4  ;;  %v2644_v14 = vpop.f32.mrb[139].mxu0 }
 0x217   : > { %v3040_v55 = vadd.f32 %v2857_v48, %v7652_v31  ;;  %v2859_v37 = vsel %vm2841_vm5, %v2854_v8, %v2858_v12  ;;  %v2862_v38 = vrot.slane %v2644_v14, 4 }
 0x218   : > { %3272 = vst.msk [vmem:[#allocation2 + $0x8] sm:$0xff] %vm3270_vm6, %v3239_v39  ;;  %v3240_v6 = vmax.f32 %v3178_v53, %v3179_v57  ;;  %v3041_v45 = vadd.f32 %v2859_v37, %v7661_v60  ;;  %v2861_v41 = vsel %vm2841_vm5, %v2856_v5, %v2860_v30 }
 0x219   : > { %v3116_v9 = vadd.f32 %v8000_v28, %v3040_v55  ;;  %v3042_v27 = vadd.f32 %v2861_v41, %v7664_v19  ;;  %v2863_v15 = vsel %vm2841_vm5, %v2858_v12, %v2862_v38 }
 0x21a   : > { %3273 = vst.msk [vmem:[#allocation2 + $0x10] sm:$0xff] %vm3270_vm6, %v3240_v6  ;;  %v3117_v31 = vadd.f32 %v8005_v4, %v3041_v45  ;;  %v3043_v8 = vadd.f32 %v2863_v15, %v7670_v50 }
 0x21b   : > { %v3180_v34 = vmax.f32 %v3116_v9, 0.0  ;;  %v3118_v17 = vadd.f32 %v8000_v28, %v3042_v27  ;;  %v2648_v56 = vpop.f32.mrb[140].mxu0 }
 0x21c   : > { %v3181_v43 = vmax.f32 %v3117_v31, 0.0  ;;  %v3119_v60 = vadd.f32 %v8005_v4, %v3043_v8  ;;  %v2864_v26 = vrot.slane %v2648_v56, 4  ;;  %v2650_v5 = vpop.f32.mrb[141].mxu0 }
 0x21d   : > { %v3182_v21 = vmax.f32 %v3118_v17, 0.0  ;;  %v2866_v53 = vrot.slane %v2650_v5, 4  ;;  %v2652_v19 = vpop.f32.mrb[142].mxu0 }
 0x21e   : > { %v3241_v2 = vmax.f32 %v3180_v34, %v3181_v43  ;;  %v3183_v12 = vmax.f32 %v3119_v60, 0.0  ;;  %v2865_v39 = vsel %vm2841_vm5, %v2860_v30, %v2864_v26  ;;  %v2868_v57 = vrot.slane %v2652_v19, 4  ;;  %v2654_v48 = vpop.f32.mrb[143].mxu0 }
 0x21f   : > { %v3044_v50 = vadd.f32 %v2865_v39, %v7690_v63  ;;  %v2867_v14 = vsel %vm2841_vm5, %v2862_v38, %v2866_v53  ;;  %v2870_v55 = vrot.slane %v2654_v48, 4  ;;  %v3303_v8 = vld [vmem:[#allocation2] ss:$2 sm:$0xff]  ;;  %v3335_v43 = vld [vmem:[#allocation2 + $0x1] ss:$2 sm:$0xff] }
 0x220   : > { %3274 = vst.msk [vmem:[#allocation2 + $0x18] sm:$0xff] %vm3270_vm6, %v3241_v2  ;;  %v3242_v37 = vmax.f32 %v3182_v21, %v3183_v12  ;;  %v3045_v6 = vadd.f32 %v2867_v14, %v7702_v1  ;;  %v2869_v45 = vsel %vm2841_vm5, %v2864_v26, %v2868_v57  ;;  %v3366_v14 = vmax.f32 %v3303_v8, %v3335_v43 }
 0x221   : > { %v3120_v41 = vadd.f32 %v8000_v28, %v3044_v50  ;;  %v3046_v9 = vadd.f32 %v2869_v45, %v7705_v52  ;;  %v2871_v30 = vsel %vm2841_vm5, %v2866_v53, %v2870_v55 }
 0x222   : > { %3275 = vst.msk [vmem:[#allocation2 + $0x20] sm:$0xff] %vm3270_vm6, %v3242_v37  ;;  %v3121_v63 = vadd.f32 %v8005_v4, %v3045_v6  ;;  %v3047_v38 = vadd.f32 %v2871_v30, %v7714_v46 }
 0x223   : > { %v3184_v27 = vmax.f32 %v3120_v41, 0.0  ;;  %v3122_v15 = vadd.f32 %v8000_v28, %v3046_v9  ;;  %v2658_v31 = vpop.f32.mrb[144].mxu0 }
 0x224   : > { %v3185_v1 = vmax.f32 %v3121_v63, 0.0  ;;  %v3123_v34 = vadd.f32 %v8005_v4, %v3047_v38  ;;  %v2872_v17 = vrot.slane %v2658_v31, 4  ;;  %v2660_v56 = vpop.f32.mrb[145].mxu0  ;;  %v6669_v38 = vld [vmem:[%s9304_s3 + $0x160] ss:$8 sps:$4 sm:$0xff]  }
 0x225   : > { %v3186_v52 = vmax.f32 %v3122_v15, 0.0  ;;  %v2874_v60 = vrot.slane %v2660_v56, 4  ;;  %v2662_v26 = vpop.f32.mrb[146].mxu0  ;;  %v6662_v31 = vld [vmem:[%s9304_s3 + $0x14] ss:$8 sps:$4 sm:$0xff]  }
 0x226   : > { %v3243_v5 = vmax.f32 %v3184_v27, %v3185_v1  ;;  %v3187_v21 = vmax.f32 %v3123_v34, 0.0  ;;  %v2873_v53 = vsel %vm2841_vm5, %v2868_v57, %v2872_v17  ;;  %v2876_v19 = vrot.slane %v2662_v26, 4  ;;  %v2664_v46 = vpop.f32.mrb[147].mxu0  ;;  %v6660_v26 = vld [vmem:[%s9304_s3 + $0x10] ss:$8 sps:$4 sm:$0xff]  }
 0x227   : > { %v3048_v2 = vadd.f32 %v2873_v53, %v7737_v0  ;;  %v2875_v12 = vsel %vm2841_vm5, %v2870_v55, %v2874_v60  ;;  %v2878_v39 = vrot.slane %v2664_v46, 4  ;;  %v3305_v48 = vld [vmem:[#allocation2 + $0x10] ss:$2 sm:$0xff]  ;;  %v3337_v50 = vld [vmem:[#allocation2 + $0x11] ss:$2 sm:$0xff] }
 0x228   : > { %3276 = vst.msk [vmem:[#allocation2 + $0x28] sm:$0xff] %vm3270_vm6, %v3243_v5  ;;  %v3244_v37 = vmax.f32 %v3186_v52, %v3187_v21  ;;  %v3049_v6 = vadd.f32 %v2875_v12, %v7742_v61  ;;  %v2877_v45 = vsel %vm2841_vm5, %v2872_v17, %v2876_v19  ;;  %v3367_v41 = vmax.f32 %v3305_v48, %v3337_v50  ;;  %v6657_v61 = vld [vmem:[%s9304_s3] ss:$8 sps:$4 sm:$0xff]   ;;  %v6675_v12 = vld [vmem:[%s9304_s3 + $0x170] ss:$8 sps:$4 sm:$0xff]  }
 0x229   : > { %v3124_v57 = vadd.f32 %v8000_v28, %v3048_v2  ;;  %v3050_v9 = vadd.f32 %v2877_v45, %v7746_v23  ;;  %v2879_v0 = vsel %vm2841_vm5, %v2874_v60, %v2878_v39  ;;  %v9410_v60 = vmov 0  }
 0x22a   : > { %3277 = vst.msk [vmem:[#allocation2 + $0x30] sm:$0xff] %vm3270_vm6, %v3244_v37  ;;  %v3125_v55 = vadd.f32 %v8005_v4, %v3049_v6  ;;  %v3051_v30 = vadd.f32 %v2879_v0, %v7749_v58  ;;  %v8065_v63 = vpack.c.bf16 %v3367_v41, %v3366_v14  ;;  %v6677_v58 = vld [vmem:[%s9304_s3 + $0x174] ss:$8 sps:$4 sm:$0xff]   ;;  %v6665_v37 = vld [vmem:[%s9304_s3 + $0x24] ss:$8 sps:$4 sm:$0xff]  }
 0x22b   : > { %v3188_v27 = vmax.f32 %v3124_v57, 0.0  ;;  %v3126_v23 = vadd.f32 %v8000_v28, %v3050_v9  ;;  %v2668_v15 = vpop.f32.mrb[148].mxu0  ;;  %v6663_v9 = vld [vmem:[%s9304_s3 + $0x20] ss:$8 sps:$4 sm:$0xff]  }
 0x22c   : > { %v3189_v8 = vmax.f32 %v3125_v55, 0.0  ;;  %v3127_v1 = vadd.f32 %v8005_v4, %v3051_v30  ;;  %v2880_v34 = vrot.slane %v2668_v15, 4  ;;  %v2670_v17 = vpop.f32.mrb[149].mxu0  ;;  %6105 = vmatmul.mubr.msk.bf16.vlgmr.msra.gmra.mrb[128].mxu1 %vm3270_vm6, %v8065_v63  ;;  %6158 = vmatmul.mubr.msk.bf16.vlgmr.msra.gmra.mrb[192].mxu0 %vm3270_vm6, %v8065_v63  ;;  %v8123_v30 = vld [vmem:[%s9304_s3 + $0x50] sm:$0x33] }
 0x22d   : > { %v3190_v56 = vmax.f32 %v3126_v23, 0.0  ;;  %v2882_v43 = vrot.slane %v2670_v17, 4  ;;  %v2672_v52 = vpop.f32.mrb[150].mxu0  ;;  %3541 = vmatprep.mubr.bf16.mxu1 %v9410_v60  ;;  %4029 = vmatprep.mubr.bf16.mxu0 %v9410_v60  ;;  %v6683_v23 = vld [vmem:[%s9304_s3 + $0x194] ss:$8 sps:$4 sm:$0xff]  }
 0x22e   : > { %v3245_v5 = vmax.f32 %v3188_v27, %v3189_v8  ;;  %v3191_v21 = vmax.f32 %v3127_v1, 0.0  ;;  %v2881_v53 = vsel %vm2841_vm5, %v2876_v19, %v2880_v34  ;;  %v2884_v46 = vrot.slane %v2672_v52, 4  ;;  %v2674_v2 = vpop.f32.mrb[151].mxu0  ;;  %3802 = vmatpush1.bf16.msra.mxu1 %v6657_v61  ;;  %4680 = vmatpush1.bf16.msra.mxu0 %v6669_v38  ;;  %v6680_v19 = vld [vmem:[%s9304_s3 + $0x184] ss:$8 sps:$4 sm:$0xff]  }
 0x22f   : > { %v3052_v48 = vadd.f32 %v2881_v53, %v7761_v33  ;;  %v2883_v50 = vsel %vm2841_vm5, %v2878_v39, %v2882_v43  ;;  %v2886_v14 = vrot.slane %v2674_v2, 4  ;;  %3803 = vmatprep.subr.bf16.mxu1 %v6662_v31  ;;  %4681 = vmatprep.subr.bf16.mxu0 %v6677_v58  ;;  %v3339_v1 = vld [vmem:[#allocation2 + $0x21] ss:$2 sm:$0xff] }
 0x230   : > { %3278 = vst.msk [vmem:[#allocation2 + $0x38] sm:$0xff] %vm3270_vm6, %v3245_v5  ;;  %v3246_v6 = vmax.f32 %v3190_v56, %v3191_v21  ;;  %v3053_v45 = vadd.f32 %v2883_v50, %v7766_v35  ;;  %v2885_v33 = vsel %vm2841_vm5, %v2880_v34, %v2884_v46  ;;  %v6668_v35 = vld [vmem:[%s9304_s3 + $0x34] ss:$8 sps:$4 sm:$0xff]   ;;  %v6666_v34 = vld [vmem:[%s9304_s3 + $0x30] ss:$8 sps:$4 sm:$0xff]   ;;  %v6124_v5 = vcombine.high %v8123_v30, %v8123_v30 }
 0x231   : > { %v3128_v39 = vadd.f32 %v8000_v28, %v3052_v48  ;;  %v3054_v41 = vadd.f32 %v2885_v33, %v7769_v59  ;;  %v2887_v57 = vsel %vm2841_vm5, %v2882_v43, %v2886_v14  ;;  %v6678_v59 = vld [vmem:[%s9304_s3 + $0x180] ss:$8 sps:$4 sm:$0xff]   ;;  %v6674_v52 = vld [vmem:[%s9304_s3 + $0x44] ss:$8 sps:$4 sm:$0xff]  }
 0x232   : > { %3279 = vst.msk [vmem:[#allocation2 + $0x40] sm:$0xff] %vm3270_vm6, %v3246_v6  ;;  %v3129_v0 = vadd.f32 %v8005_v4, %v3053_v45  ;;  %v3055_v55 = vadd.f32 %v2887_v57, %v7773_v20  ;;  %3804 = vmatpush1.bf16.msra.mxu1 %v6660_v26  ;;  %4682 = vmatpush1.bf16.msra.mxu0 %v6675_v12  ;;  %v3307_v20 = vld [vmem:[#allocation2 + $0x20] ss:$2 sm:$0xff]  ;;  %v6681_v26 = vld [vmem:[%s9304_s3 + $0x190] ss:$8 sps:$4 sm:$0xff]  }
 0x233   : > { %v3192_v61 = vmax.f32 %v3128_v39, 0.0  ;;  %v3130_v38 = vadd.f32 %v8000_v28, %v3054_v41  ;;  %v2678_v27 = vpop.f32.mrb[152].mxu0  ;;  %3805 = vmatprep.subr.bf16.mxu1 %v6665_v37  ;;  %4683 = vmatprep.subr.bf16.mxu0 %v6680_v19  ;;  %v6688_v50 = vld [vmem:[%s9304_s3 + $0x1a4] ss:$8 sps:$4 sm:$0xff]   ;;  %v3368_v39 = vmax.f32 %v3307_v20, %v3339_v1 }
 0x234   : > { %v3193_v15 = vmax.f32 %v3129_v0, 0.0  ;;  %v3131_v31 = vadd.f32 %v8005_v4, %v3055_v55  ;;  %v2888_v58 = vrot.slane %v2678_v27, 4  ;;  %v2680_v8 = vpop.f32.mrb[153].mxu0 }
 0x235   : > { %v3194_v17 = vmax.f32 %v3130_v38, 0.0  ;;  %v2890_v56 = vrot.slane %v2680_v8, 4  ;;  %v2682_v43 = vpop.f32.mrb[154].mxu0  ;;  %v6672_v38 = vld [vmem:[%s9304_s3 + $0x40] ss:$8 sps:$4 sm:$0xff]  }
 0x236   : > { %v3247_v21 = vmax.f32 %v3192_v61, %v3193_v15  ;;  %v3195_v53 = vmax.f32 %v3131_v31, 0.0  ;;  %v2889_v2 = vsel %vm2841_vm5, %v2884_v46, %v2888_v58  ;;  %v2892_v12 = vrot.slane %v2682_v43, 4  ;;  %v2684_v48 = vpop.f32.mrb[155].mxu0  ;;  %3806 = vmatpush1.bf16.msra.mxu1 %v6663_v9  ;;  %4684 = vmatpush1.bf16.msra.mxu0 %v6678_v59 }
 0x237   : > { %v3056_v37 = vadd.f32 %v2889_v2, %v7782_v49  ;;  %v2891_v19 = vsel %vm2841_vm5, %v2886_v14, %v2890_v56  ;;  %v2894_v6 = vrot.slane %v2684_v48, 4  ;;  %v3309_v45 = vld [vmem:[#allocation2 + $0x30] ss:$2 sm:$0xff]  ;;  %v3341_v33 = vld [vmem:[#allocation2 + $0x31] ss:$2 sm:$0xff]  ;;  %3807 = vmatprep.subr.bf16.mxu1 %v6668_v35  ;;  %4685 = vmatprep.subr.bf16.mxu0 %v6683_v23  ;;  %v6123_v35 = vcombine.low %v8123_v30, %v8123_v30 }
 0x238   : > { %3280 = vst.msk [vmem:[#allocation2 + $0x48] sm:$0xff] %vm3270_vm6, %v3247_v21  ;;  %v3248_v46 = vmax.f32 %v3194_v17, %v3195_v53  ;;  %v3057_v41 = vadd.f32 %v2891_v19, %v7787_v62  ;;  %v2893_v57 = vsel %vm2841_vm5, %v2888_v58, %v2892_v12  ;;  %v3369_v9 = vmax.f32 %v3309_v45, %v3341_v33  ;;  %v6208_v49 = vld [vmem:[%s9304_s3 + $0x1b0] sm:$0x33] }
 0x239   : > { %v3132_v14 = vadd.f32 %v8000_v28, %v3056_v37  ;;  %v3058_v0 = vadd.f32 %v2893_v57, %v7790_v42  ;;  %v2895_v55 = vsel %vm2841_vm5, %v2890_v56, %v2894_v6  ;;  %v6686_v42 = vld [vmem:[%s9304_s3 + $0x1a0] ss:$8 sps:$4 sm:$0xff]   ;;  %v6220_v15 = vcombine.high %v6208_v49, %v6208_v49 }
 0x23a   : > { %3281 = vst.msk [vmem:[#allocation2 + $0x50] sm:$0xff] %vm3270_vm6, %v3248_v46  ;;  %v3133_v62 = vadd.f32 %v8005_v4, %v3057_v41  ;;  %v3059_v59 = vadd.f32 %v2895_v55, %v7793_v36  ;;  %v8161_v61 = vpack.c.bf16 %v3369_v9, %v3368_v39  ;;  %3808 = vmatpush1.bf16.msra.mxu1 %v6666_v34  ;;  %v3796_v43 = vsel %vm3492_vm4, %v6123_v35, 0 }
 0x23b   : > { %4686 = vmatpush1.bf16.msra.mxu0 %v6681_v26  ;;  %v3196_v27 = vmax.f32 %v3132_v14, 0.0  ;;  %v3134_v20 = vadd.f32 %v8000_v28, %v3058_v0  ;;  %v2688_v23 = vpop.f32.mrb[156].mxu0  ;;  %3809 = vmatprep.subr.bf16.mxu1 %v6674_v52  ;;  %v6219_v36 = vcombine.low %v6208_v49, %v6208_v49 }
 0x23c   : > { %4687 = vmatprep.subr.bf16.mxu0 %v6688_v50  ;;  %v3197_v31 = vmax.f32 %v3133_v62, 0.0  ;;  %v3135_v58 = vadd.f32 %v8005_v4, %v3059_v59  ;;  %v2896_v8 = vrot.slane %v2688_v23, 4  ;;  %v2690_v1 = vpop.f32.mrb[157].mxu0  ;;  %6106 = vmatmul.mubr.msk.bf16.gmra.mrb[132].mxu1 %vm3270_vm6, %v8161_v61 }
 0x23d   : > { %6159 = vmatmul.mubr.msk.bf16.gmra.mrb[196].mxu0 %vm3270_vm6, %v8161_v61  ;;  %v3198_v34 = vmax.f32 %v3134_v20, 0.0  ;;  %v2898_v17 = vrot.slane %v2690_v1, 4  ;;  %v2692_v56 = vpop.f32.mrb[158].mxu0  ;;  %3551 = vmatprep.mubr.bf16.mxu1 %v9410_v60  ;;  %v4674_v19 = vsel %vm3492_vm4, %v6219_v36, 0 }
 0x23e   : > { %4039 = vmatprep.mubr.bf16.mxu0 %v9410_v60  ;;  %v3249_v52 = vmax.f32 %v3196_v27, %v3197_v31  ;;  %v3199_v26 = vmax.f32 %v3135_v58, 0.0  ;;  %v2897_v21 = vsel %vm2841_vm5, %v2892_v12, %v2896_v8  ;;  %v2900_v53 = vrot.slane %v2692_v56, 4  ;;  %v2694_v2 = vpop.f32.mrb[159].mxu0  ;;  %3810 = vmatpush1.bf16.msra.mxu1 %v6672_v38  ;;  %v6693_v12 = vld [vmem:[%s9304_s3 + $0x10c] ss:$8 sps:$4 sm:$0xff]  }
 0x23f   : > { %4688 = vmatpush1.bf16.msra.mxu0 %v6686_v42  ;;  %v3060_v48 = vadd.f32 %v2897_v21, %v7802_v13  ;;  %v2899_v50 = vsel %vm2841_vm5, %v2894_v6, %v2898_v17  ;;  %v2902_v37 = vrot.slane %v2694_v2, 4  ;;  %6125 = vmatprep.subr.msk.bf16.mxu1 %vm3492_vm4, %v6124_v5  ;;  %v3311_v9 = vld [vmem:[#allocation2 + $0x40] ss:$2 sm:$0xff]  ;;  %v3343_v55 = vld [vmem:[#allocation2 + $0x41] ss:$2 sm:$0xff] }
 0x240   : > { %6221 = vmatprep.subr.msk.bf16.mxu0 %vm3492_vm4, %v6220_v15  ;;  %3282 = vst.msk [vmem:[#allocation2 + $0x58] sm:$0xff] %vm3270_vm6, %v3249_v52  ;;  %v3250_v45 = vmax.f32 %v3198_v34, %v3199_v26  ;;  %v3061_v13 = vadd.f32 %v2899_v50, %v7807_v29  ;;  %v2901_v6 = vsel %vm2841_vm5, %v2896_v8, %v2900_v53  ;;  %v9411_v52 = vld [vmem:[#allocation9_spill] sm:$0xff] }
 0x241   : > { %v3136_v33 = vadd.f32 %v8000_v28, %v3060_v48  ;;  %v3062_v30 = vadd.f32 %v2901_v6, %v7810_v16  ;;  %v2903_v5 = vsel %vm2841_vm5, %v2898_v17, %v2902_v37  ;;  %v3370_v8 = vmax.f32 %v3311_v9, %v3343_v55 }
 0x242   : > { %3283 = vst.msk [vmem:[#allocation2 + $0x60] sm:$0xff] %vm3270_vm6, %v3250_v45  ;;  %v3137_v39 = vadd.f32 %v8005_v4, %v3061_v13  ;;  %v3063_v46 = vadd.f32 %v2903_v5, %v7813_v3  ;;  %3812 = vmatpush1.bf16.msra.mxu1 %v3796_v43 }
 0x243   : > { %4690 = vmatpush1.bf16.msra.mxu0 %v4674_v19  ;;  %v3200_v41 = vmax.f32 %v3136_v33, 0.0  ;;  %v3138_v57 = vadd.f32 %v8000_v28, %v3062_v30  ;;  %v2698_v29 = vpop.f32.mrb[160].mxu0  ;;  %4333 = vmatprep.subr.bf16.mxu1 %v6693_v12 }
 0x244   : > { %v3201_v49 = vmax.f32 %v3137_v39, 0.0  ;;  %v3139_v14 = vadd.f32 %v8005_v4, %v3063_v46  ;;  %v2904_v16 = vrot.slane %v2698_v29, 4  ;;  %v2700_v0 = vpop.f32.mrb[161].mxu0 }
 0x245   : > { %v3202_v35 = vmax.f32 %v3138_v57, 0.0  ;;  %v2906_v62 = vrot.slane %v2700_v0, 4  ;;  %v2702_v59 = vpop.f32.mrb[162].mxu0 }
 0x246   : > { %v3251_v38 = vmax.f32 %v3200_v41, %v3201_v49  ;;  %v3203_v42 = vmax.f32 %v3139_v14, 0.0  ;;  %v2905_v3 = vsel %vm2841_vm5, %v2900_v53, %v2904_v16  ;;  %v2908_v27 = vrot.slane %v2702_v59, 4  ;;  %v2704_v20 = vpop.f32.mrb[163].mxu0  ;;  %v9412_v53 = vld [vmem:[#allocation34_spill] sm:$0xff] }
 0x247   : > { %v3064_v23 = vadd.f32 %v2905_v3, %v7822_v32  ;;  %v2907_v15 = vsel %vm2841_vm5, %v2902_v37, %v2906_v62  ;;  %v2910_v36 = vrot.slane %v2704_v20, 4  ;;  %v3313_v31 = vld [vmem:[#allocation2 + $0x50] ss:$2 sm:$0xff]  ;;  %v3345_v58 = vld [vmem:[#allocation2 + $0x51] ss:$2 sm:$0xff] }
 0x248   : > { %3284 = vst.msk [vmem:[#allocation2 + $0x68] sm:$0xff] %vm3270_vm6, %v3251_v38  ;;  %v3252_v1 = vmax.f32 %v3202_v35, %v3203_v42  ;;  %v3065_v34 = vadd.f32 %v2907_v15, %v7827_v40  ;;  %v2909_v17 = vsel %vm2841_vm5, %v2904_v16, %v2908_v27  ;;  %v3371_v56 = vmax.f32 %v3313_v31, %v3345_v58  ;;  %v9413_v16 = vld [vmem:[#allocation10_spill] sm:$0xff]  ;;  %v9415_v42 = vld [vmem:[#allocation12_spill] sm:$0xff] }
 0x249   : > { %v3140_v43 = vadd.f32 %v8000_v28, %v3064_v23  ;;  %v3066_v26 = vadd.f32 %v2909_v17, %v9411_v52  ;;  %v2911_v32 = vsel %vm2841_vm5, %v2906_v62, %v2910_v36  ;;  %v9414_v62 = vld [vmem:[#allocation11_spill] sm:$0xff] }
 0x24a   : > { %3285 = vst.msk [vmem:[#allocation2 + $0x70] sm:$0xff] %vm3270_vm6, %v3252_v1  ;;  %v3141_v21 = vadd.f32 %v8005_v4, %v3065_v34  ;;  %v3067_v2 = vadd.f32 %v2911_v32, %v9412_v53  ;;  %v8213_v48 = vpack.c.bf16 %v3371_v56, %v3370_v8 }
 0x24b   : > { %v3204_v50 = vmax.f32 %v3140_v43, 0.0  ;;  %v3142_v40 = vadd.f32 %v8000_v28, %v3066_v26  ;;  %v2708_v37 = vpop.f32.mrb[164].mxu0 }
 0x24c   : > { %v3205_v19 = vmax.f32 %v3141_v21, 0.0  ;;  %v3143_v12 = vadd.f32 %v8005_v4, %v3067_v2  ;;  %v2912_v45 = vrot.slane %v2708_v37, 4  ;;  %v2710_v13 = vpop.f32.mrb[165].mxu0  ;;  %6107 = vmatmul.mubr.msk.bf16.gmra.mrb[136].mxu1 %vm3270_vm6, %v8213_v48  ;;  %6160 = vmatmul.mubr.msk.bf16.gmra.mrb[200].mxu0 %vm3270_vm6, %v8213_v48 }
 0x24d   : > { %v3206_v6 = vmax.f32 %v3142_v40, 0.0  ;;  %v2914_v33 = vrot.slane %v2710_v13, 4  ;;  %v2712_v30 = vpop.f32.mrb[166].mxu0  ;;  %3561 = vmatprep.mubr.bf16.mxu1 %v9410_v60  ;;  %4049 = vmatprep.mubr.bf16.mxu0 %v9410_v60 }
 0x24e   : > { %v3253_v5 = vmax.f32 %v3204_v50, %v3205_v19  ;;  %v3207_v39 = vmax.f32 %v3143_v12, 0.0  ;;  %v2913_v46 = vsel %vm2841_vm5, %v2908_v27, %v2912_v45  ;;  %v2916_v41 = vrot.slane %v2712_v30, 4  ;;  %v2714_v57 = vpop.f32.mrb[167].mxu0  ;;  %v9416_v30 = vld [vmem:[#allocation13_spill] sm:$0xff] }
 0x24f   : > { %v3068_v29 = vadd.f32 %v2913_v46, %v7842_v44  ;;  %v2915_v9 = vsel %vm2841_vm5, %v2910_v36, %v2914_v33  ;;  %v2918_v49 = vrot.slane %v2714_v57, 4  ;;  %v3315_v15 = vld [vmem:[#allocation2 + $0x60] ss:$2 sm:$0xff]  ;;  %v3347_v1 = vld [vmem:[#allocation2 + $0x61] ss:$2 sm:$0xff]  ;;  %v9417_v46 = vld [vmem:[#allocation14_spill] sm:$0xff] }
 0x250   : > { %3286 = vst.msk [vmem:[#allocation2 + $0x78] sm:$0xff] %vm3270_vm6, %v3253_v5  ;;  %v3254_v14 = vmax.f32 %v3206_v6, %v3207_v39  ;;  %v3069_v0 = vadd.f32 %v2915_v9, %v9413_v16  ;;  %v2917_v55 = vsel %vm2841_vm5, %v2912_v45, %v2916_v41  ;;  %v3372_v19 = vmax.f32 %v3315_v15, %v3347_v1 }
 0x251   : > { %v3144_v35 = vadd.f32 %v8000_v28, %v3068_v29  ;;  %v3070_v59 = vadd.f32 %v2917_v55, %v9414_v62  ;;  %v2919_v38 = vsel %vm2841_vm5, %v2914_v33, %v2918_v49 }
 0x252   : > { %3287 = vst.msk [vmem:[#allocation2 + $0x80] sm:$0xff] %vm3270_vm6, %v3254_v14  ;;  %v3145_v44 = vadd.f32 %v8005_v4, %v3069_v0  ;;  %v3071_v3 = vadd.f32 %v2919_v38, %v9415_v42 }
 0x253   : > { %v3208_v27 = vmax.f32 %v3144_v35, 0.0  ;;  %v3146_v20 = vadd.f32 %v8000_v28, %v3070_v59  ;;  %v2718_v23 = vpop.f32.mrb[168].mxu0 }
 0x254   : > { %v3209_v36 = vmax.f32 %v3145_v44, 0.0  ;;  %v3147_v31 = vadd.f32 %v8005_v4, %v3071_v3  ;;  %v2920_v58 = vrot.slane %v2718_v23, 4  ;;  %v2720_v8 = vpop.f32.mrb[169].mxu0 }
 0x255   : > { %v3210_v34 = vmax.f32 %v3146_v20, 0.0  ;;  %v2922_v17 = vrot.slane %v2720_v8, 4  ;;  %v2722_v56 = vpop.f32.mrb[170].mxu0 }
 0x256   : > { %v3255_v43 = vmax.f32 %v3208_v27, %v3209_v36  ;;  %v3211_v52 = vmax.f32 %v3147_v31, 0.0  ;;  %v2921_v26 = vsel %vm2841_vm5, %v2916_v41, %v2920_v58  ;;  %v2924_v32 = vrot.slane %v2722_v56, 4  ;;  %v2724_v21 = vpop.f32.mrb[171].mxu0  ;;  %v9418_v27 = vld [vmem:[#allocation15_spill] sm:$0xff]  ;;  %v9419_v31 = vld [vmem:[#allocation16_spill] sm:$0xff] }
 0x257   : > { %v3072_v53 = vadd.f32 %v2921_v26, %v7862_v10  ;;  %v2923_v2 = vsel %vm2841_vm5, %v2918_v49, %v2922_v17  ;;  %v2926_v50 = vrot.slane %v2724_v21, 4  ;;  %v3317_v40 = vld [vmem:[#allocation2 + $0x70] ss:$2 sm:$0xff]  ;;  %v3349_v37 = vld [vmem:[#allocation2 + $0x71] ss:$2 sm:$0xff] }
 0x258   : > { %3288 = vst.msk [vmem:[#allocation2 + $0x88] sm:$0xff] %vm3270_vm6, %v3255_v43  ;;  %v3256_v12 = vmax.f32 %v3210_v34, %v3211_v52  ;;  %v3073_v45 = vadd.f32 %v2923_v2, %v7867_v24  ;;  %v2925_v13 = vsel %vm2841_vm5, %v2920_v58, %v2924_v32  ;;  %v3373_v6 = vmax.f32 %v3317_v40, %v3349_v37  ;;  %v9420_v34 = vld [vmem:[#allocation17_spill] sm:$0xff]  ;;  %v9421_v52 = vld [vmem:[#allocation18_spill] sm:$0xff] }
 0x259   : > { %v3148_v33 = vadd.f32 %v8000_v28, %v3072_v53  ;;  %v3074_v5 = vadd.f32 %v2925_v13, %v9416_v30  ;;  %v2927_v10 = vsel %vm2841_vm5, %v2922_v17, %v2926_v50 }
 0x25a   : > { %3289 = vst.msk [vmem:[#allocation2 + $0x90] sm:$0xff] %vm3270_vm6, %v3256_v12  ;;  %v3149_v39 = vadd.f32 %v8005_v4, %v3073_v45  ;;  %v3075_v41 = vadd.f32 %v2927_v10, %v9417_v46  ;;  %v8249_v57 = vpack.c.bf16 %v3373_v6, %v3372_v19 }
 0x25b   : > { %v3212_v29 = vmax.f32 %v3148_v33, 0.0  ;;  %v3150_v24 = vadd.f32 %v8000_v28, %v3074_v5  ;;  %v2728_v9 = vpop.f32.mrb[172].mxu0 }
 0x25c   : > { %v3213_v49 = vmax.f32 %v3149_v39, 0.0  ;;  %v3151_v14 = vadd.f32 %v8005_v4, %v3075_v41  ;;  %v2928_v16 = vrot.slane %v2728_v9, 4  ;;  %v2730_v0 = vpop.f32.mrb[173].mxu0  ;;  %6108 = vmatmul.mubr.msk.bf16.gmra.mrb[140].mxu1 %vm3270_vm6, %v8249_v57  ;;  %6161 = vmatmul.mubr.msk.bf16.gmra.mrb[204].mxu0 %vm3270_vm6, %v8249_v57 }
 0x25d   : > { %v3214_v55 = vmax.f32 %v3150_v24, 0.0  ;;  %v2930_v35 = vrot.slane %v2730_v0, 4  ;;  %v2732_v62 = vpop.f32.mrb[174].mxu0  ;;  %3571 = vmatprep.mubr.bf16.mxu1 %v9410_v60  ;;  %4059 = vmatprep.mubr.bf16.mxu0 %v9410_v60 }
 0x25e   : > { %v3257_v59 = vmax.f32 %v3212_v29, %v3213_v49  ;;  %v3215_v38 = vmax.f32 %v3151_v14, 0.0  ;;  %v2929_v44 = vsel %vm2841_vm5, %v2924_v32, %v2928_v16  ;;  %v2932_v42 = vrot.slane %v2732_v62, 4  ;;  %v2734_v3 = vpop.f32.mrb[175].mxu0 }
 0x25f   : > { %v3076_v20 = vadd.f32 %v2929_v44, %v9418_v27  ;;  %v2931_v23 = vsel %vm2841_vm5, %v2926_v50, %v2930_v35  ;;  %v2934_v15 = vrot.slane %v2734_v3, 4  ;;  %v3319_v2 = vld [vmem:[#allocation2 + $0x80] ss:$2 sm:$0xff]  ;;  %v3351_v12 = vld [vmem:[#allocation2 + $0x81] ss:$2 sm:$0xff] }
 0x260   : > { %3290 = vst.msk [vmem:[#allocation2 + $0x98] sm:$0xff] %vm3270_vm6, %v3257_v59  ;;  %v3258_v36 = vmax.f32 %v3214_v55, %v3215_v38  ;;  %v3077_v58 = vadd.f32 %v2931_v23, %v9419_v31  ;;  %v2933_v8 = vsel %vm2841_vm5, %v2928_v16, %v2932_v42  ;;  %v3374_v49 = vmax.f32 %v3319_v2, %v3351_v12  ;;  %v9422_v16 = vld [vmem:[#allocation19_spill] sm:$0xff]  ;;  %v9423_v59 = vld [vmem:[#allocation20_spill] sm:$0xff] }
 0x261   : > { %v3152_v1 = vadd.f32 %v8000_v28, %v3076_v20  ;;  %v3078_v17 = vadd.f32 %v2933_v8, %v9420_v34  ;;  %v2935_v56 = vsel %vm2841_vm5, %v2930_v35, %v2934_v15 }
 0x262   : > { %3291 = vst.msk [vmem:[#allocation2 + $0xa0] sm:$0xff] %vm3270_vm6, %v3258_v36  ;;  %v3153_v43 = vadd.f32 %v8005_v4, %v3077_v58  ;;  %v3079_v26 = vadd.f32 %v2935_v56, %v9421_v52 }
 0x263   : > { %v3216_v32 = vmax.f32 %v3152_v1, 0.0  ;;  %v3154_v21 = vadd.f32 %v8000_v28, %v3078_v17  ;;  %v2738_v53 = vpop.f32.mrb[176].mxu0 }
 0x264   : > { %v3217_v50 = vmax.f32 %v3153_v43, 0.0  ;;  %v3155_v40 = vadd.f32 %v8005_v4, %v3079_v26  ;;  %v2936_v37 = vrot.slane %v2738_v53, 4  ;;  %v2740_v19 = vpop.f32.mrb[177].mxu0 }
 0x265   : > { %v3218_v45 = vmax.f32 %v3154_v21, 0.0  ;;  %v2938_v13 = vrot.slane %v2740_v19, 4  ;;  %v2742_v6 = vpop.f32.mrb[178].mxu0  ;;  %v9425_v21 = vld [vmem:[#allocation22_spill] sm:$0xff] }
 0x266   : > { %v3259_v33 = vmax.f32 %v3216_v32, %v3217_v50  ;;  %v3219_v30 = vmax.f32 %v3155_v40, 0.0  ;;  %v2937_v5 = vsel %vm2841_vm5, %v2932_v42, %v2936_v37  ;;  %v2940_v10 = vrot.slane %v2742_v6, 4  ;;  %v2744_v39 = vpop.f32.mrb[179].mxu0  ;;  %v9424_v42 = vld [vmem:[#allocation21_spill] sm:$0xff] }
 0x267   : > { %v3080_v46 = vadd.f32 %v2937_v5, %v7902_v11  ;;  %v2939_v41 = vsel %vm2841_vm5, %v2934_v15, %v2938_v13  ;;  %v2942_v29 = vrot.slane %v2744_v39, 4  ;;  %v3321_v24 = vld [vmem:[#allocation2 + $0x90] ss:$2 sm:$0xff]  ;;  %v3353_v9 = vld [vmem:[#allocation2 + $0x91] ss:$2 sm:$0xff]  ;;  %v9428_v5 = vld [vmem:[#allocation35_spill] sm:$0xff] }
 0x268   : > { %3292 = vst.msk [vmem:[#allocation2 + $0xa8] sm:$0xff] %vm3270_vm6, %v3259_v33  ;;  %v3260_v14 = vmax.f32 %v3218_v45, %v3219_v30  ;;  %v3081_v0 = vadd.f32 %v2939_v41, %v9422_v16  ;;  %v2941_v55 = vsel %vm2841_vm5, %v2936_v37, %v2940_v10  ;;  %v3375_v35 = vmax.f32 %v3321_v24, %v3353_v9  ;;  %v9426_v37 = vld [vmem:[#allocation23_spill] sm:$0xff] }
 0x269   : > { %v3156_v62 = vadd.f32 %v8000_v28, %v3080_v46  ;;  %v3082_v38 = vadd.f32 %v2941_v55, %v9423_v59  ;;  %v2943_v11 = vsel %vm2841_vm5, %v2938_v13, %v2942_v29  ;;  %v9427_v13 = vld [vmem:[#allocation24_spill] sm:$0xff] }
 0x26a   : > { %3293 = vst.msk [vmem:[#allocation2 + $0xb0] sm:$0xff] %vm3270_vm6, %v3260_v14  ;;  %v3157_v44 = vadd.f32 %v8005_v4, %v3081_v0  ;;  %v3083_v3 = vadd.f32 %v2943_v11, %v9424_v42  ;;  %v8285_v27 = vpack.c.bf16 %v3375_v35, %v3374_v49  ;;  %v9429_v42 = vld [vmem:[#allocation25_spill] sm:$0xff] }
 0x26b   : > { %v3220_v20 = vmax.f32 %v3156_v62, 0.0  ;;  %v3158_v23 = vadd.f32 %v8000_v28, %v3082_v38  ;;  %v2748_v15 = vpop.f32.mrb[180].mxu0 }
 0x26c   : > { %v3221_v36 = vmax.f32 %v3157_v44, 0.0  ;;  %v3159_v31 = vadd.f32 %v8005_v4, %v3083_v3  ;;  %v2944_v58 = vrot.slane %v2748_v15, 4  ;;  %v2750_v8 = vpop.f32.mrb[181].mxu0  ;;  %6109 = vmatmul.mubr.msk.bf16.gmra.mrb[144].mxu1 %vm3270_vm6, %v8285_v27  ;;  %6162 = vmatmul.mubr.msk.bf16.gmra.mrb[208].mxu0 %vm3270_vm6, %v8285_v27 }
 0x26d   : > { %v3222_v1 = vmax.f32 %v3158_v23, 0.0  ;;  %v2946_v34 = vrot.slane %v2750_v8, 4  ;;  %v2752_v17 = vpop.f32.mrb[182].mxu0  ;;  %3581 = vmatprep.mubr.bf16.mxu1 %v9410_v60  ;;  %4069 = vmatprep.mubr.bf16.mxu0 %v9410_v60  ;;  %v9430_v8 = vld [vmem:[#allocation26_spill] sm:$0xff] }
 0x26e   : > { %v3261_v56 = vmax.f32 %v3220_v20, %v3221_v36  ;;  %v3223_v43 = vmax.f32 %v3159_v31, 0.0  ;;  %v2945_v52 = vsel %vm2841_vm5, %v2940_v10, %v2944_v58  ;;  %v2948_v26 = vrot.slane %v2752_v17, 4  ;;  %v2754_v32 = vpop.f32.mrb[183].mxu0 }
 0x26f   : > { %v3084_v53 = vadd.f32 %v2945_v52, %v9425_v21  ;;  %v2947_v2 = vsel %vm2841_vm5, %v2942_v29, %v2946_v34  ;;  %v2950_v50 = vrot.slane %v2754_v32, 4  ;;  %v3323_v29 = vld [vmem:[#allocation2 + $0xa0] ss:$2 sm:$0xff]  ;;  %v3355_v16 = vld [vmem:[#allocation2 + $0xa1] ss:$2 sm:$0xff] }
 0x270   : > { %3294 = vst.msk [vmem:[#allocation2 + $0xb8] sm:$0xff] %vm3270_vm6, %v3261_v56  ;;  %v3262_v40 = vmax.f32 %v3222_v1, %v3223_v43  ;;  %v3085_v19 = vadd.f32 %v2947_v2, %v9426_v37  ;;  %v2949_v12 = vsel %vm2841_vm5, %v2944_v58, %v2948_v26  ;;  %v3376_v31 = vmax.f32 %v3323_v29, %v3355_v16  ;;  %v9431_v43 = vld [vmem:[#allocation27_spill] sm:$0xff]  ;;  %v9432_v21 = vld [vmem:[#allocation36_spill] sm:$0xff] }
 0x271   : > { %v3160_v45 = vadd.f32 %v8000_v28, %v3084_v53  ;;  %v3086_v6 = vadd.f32 %v2949_v12, %v9427_v13  ;;  %v2951_v33 = vsel %vm2841_vm5, %v2946_v34, %v2950_v50 }
 0x272   : > { %3295 = vst.msk [vmem:[#allocation2 + $0xc0] sm:$0xff] %vm3270_vm6, %v3262_v40  ;;  %v3161_v30 = vadd.f32 %v8005_v4, %v3085_v19  ;;  %v3087_v10 = vadd.f32 %v2951_v33, %v9428_v5 }
 0x273   : > { %v3224_v39 = vmax.f32 %v3160_v45, 0.0  ;;  %v3162_v46 = vadd.f32 %v8000_v28, %v3086_v6  ;;  %v2758_v41 = vpop.f32.mrb[184].mxu0 }
 0x274   : > { %v3225_v24 = vmax.f32 %v3161_v30, 0.0  ;;  %v3163_v9 = vadd.f32 %v8005_v4, %v3087_v10  ;;  %v2952_v49 = vrot.slane %v2758_v41, 4  ;;  %v2760_v14 = vpop.f32.mrb[185].mxu0 }
 0x275   : > { %v3226_v0 = vmax.f32 %v3162_v46, 0.0  ;;  %v2954_v55 = vrot.slane %v2760_v14, 4  ;;  %v2762_v35 = vpop.f32.mrb[186].mxu0 }
 0x276   : > { %v3263_v62 = vmax.f32 %v3224_v39, %v3225_v24  ;;  %v3227_v59 = vmax.f32 %v3163_v9, 0.0  ;;  %v2953_v38 = vsel %vm2841_vm5, %v2948_v26, %v2952_v49  ;;  %v2956_v11 = vrot.slane %v2762_v35, 4  ;;  %v2764_v44 = vpop.f32.mrb[187].mxu0 }
 0x277   : > { %v3088_v3 = vadd.f32 %v2953_v38, %v9429_v42  ;;  %v2955_v20 = vsel %vm2841_vm5, %v2950_v50, %v2954_v55  ;;  %v2958_v23 = vrot.slane %v2764_v44, 4  ;;  %v3325_v15 = vld [vmem:[#allocation2 + $0xb0] ss:$2 sm:$0xff]  ;;  %v3357_v36 = vld [vmem:[#allocation2 + $0xb1] ss:$2 sm:$0xff] }
 0x278   : > { %3296 = vst.msk [vmem:[#allocation2 + $0xc8] sm:$0xff] %vm3270_vm6, %v3263_v62  ;;  %v3264_v58 = vmax.f32 %v3226_v0, %v3227_v59  ;;  %v3089_v1 = vadd.f32 %v2955_v20, %v9430_v8  ;;  %v2957_v34 = vsel %vm2841_vm5, %v2952_v49, %v2956_v11  ;;  %v3377_v17 = vmax.f32 %v3325_v15, %v3357_v36 }
 0x279   : > { %v3164_v56 = vadd.f32 %v8000_v28, %v3088_v3  ;;  %v3090_v52 = vadd.f32 %v2957_v34, %v9431_v43  ;;  %v2959_v26 = vsel %vm2841_vm5, %v2954_v55, %v2958_v23 }
 0x27a   : > { %3297 = vst.msk [vmem:[#allocation2 + $0xd0] sm:$0xff] %vm3270_vm6, %v3264_v58  ;;  %v3165_v32 = vadd.f32 %v8005_v4, %v3089_v1  ;;  %v3091_v53 = vadd.f32 %v2959_v26, %v9432_v21  ;;  %v8321_v2 = vpack.c.bf16 %v3377_v17, %v3376_v31 }
 0x27b   : > { %v3228_v50 = vmax.f32 %v3164_v56, 0.0  ;;  %v3166_v40 = vadd.f32 %v8000_v28, %v3090_v52  ;;  %v2768_v37 = vpop.f32.mrb[188].mxu0 }
 0x27c   : > { %v3229_v19 = vmax.f32 %v3165_v32, 0.0  ;;  %v3167_v12 = vadd.f32 %v8005_v4, %v3091_v53  ;;  %v2960_v45 = vrot.slane %v2768_v37, 4  ;;  %v2770_v13 = vpop.f32.mrb[189].mxu0  ;;  %6110 = vmatmul.mubr.msk.bf16.gmra.mrb[148].mxu1 %vm3270_vm6, %v8321_v2  ;;  %6163 = vmatmul.mubr.msk.bf16.gmra.mrb[212].mxu0 %vm3270_vm6, %v8321_v2  ;;  %v6696_v37 = vld [vmem:[%s9304_s3 + $0x11c] ss:$8 sps:$4 sm:$0xff]  }
 0x27d   : > { %v3230_v6 = vmax.f32 %v3166_v40, 0.0  ;;  %v2962_v33 = vrot.slane %v2770_v13, 4  ;;  %v2772_v30 = vpop.f32.mrb[190].mxu0  ;;  %3591 = vmatprep.mubr.bf16.mxu1 %v9410_v60  ;;  %4079 = vmatprep.mubr.bf16.mxu0 %v9410_v60  ;;  %v6691_v40 = vld [vmem:[%s9304_s3 + $0x108] ss:$8 sps:$4 sm:$0xff]  }
 0x27e   : > { %v3265_v5 = vmax.f32 %v3228_v50, %v3229_v19  ;;  %v3231_v10 = vmax.f32 %v3167_v12, 0.0  ;;  %v2961_v39 = vsel %vm2841_vm5, %v2956_v11, %v2960_v45  ;;  %v2964_v46 = vrot.slane %v2772_v30, 4  ;;  %v2774_v41 = vpop.f32.mrb[191].mxu0  ;;  %v6694_v19 = vld [vmem:[%s9304_s3 + $0x118] ss:$8 sps:$4 sm:$0xff]  }
 0x27f   : > { %v3092_v29 = vadd.f32 %v2961_v39, %v7969_v7  ;;  %v2963_v24 = vsel %vm2841_vm5, %v2958_v23, %v2962_v33  ;;  %v2966_v9 = vrot.slane %v2774_v41, 4  ;;  %v3327_v36 = vld [vmem:[#allocation2 + $0xc0] ss:$2 sm:$0xff]  ;;  %v3359_v31 = vld [vmem:[#allocation2 + $0xc1] ss:$2 sm:$0xff] }
 0x280   : > { %3298 = vst.msk [vmem:[#allocation2 + $0xd8] sm:$0xff] %vm3270_vm6, %v3265_v5  ;;  %v3266_v49 = vmax.f32 %v3230_v6, %v3231_v10  ;;  %v3093_v14 = vadd.f32 %v2963_v24, %v7976_v47  ;;  %v2965_v16 = vsel %vm2841_vm5, %v2960_v45, %v2964_v46  ;;  %v3032_v0 = vsel %vm2841_vm5, %v2964_v46, 0.0  ;;  %v6699_v12 = vld [vmem:[%s9304_s3 + $0x12c] ss:$8 sps:$4 sm:$0xff]   ;;  %v6697_v45 = vld [vmem:[%s9304_s3 + $0x128] ss:$8 sps:$4 sm:$0xff]  }
 0x281   : > { %v3168_v55 = vadd.f32 %v8000_v28, %v3092_v29  ;;  %v3094_v35 = vadd.f32 %v2965_v16, %v7985_v54  ;;  %v3096_v62 = vadd.f32 %v3032_v0, %v7987_v22  ;;  %v2967_v7 = vsel %vm2841_vm5, %v2962_v33, %v2966_v9  ;;  %v6702_v13 = vld [vmem:[%s9304_s3 + $0x13c] ss:$8 sps:$4 sm:$0xff]   ;;  %v6700_v6 = vld [vmem:[%s9304_s3 + $0x138] ss:$8 sps:$4 sm:$0xff]   ;;  %v6705_v33 = vld [vmem:[%s9304_s3 + $0x14c] ss:$8 sps:$4 sm:$0xff]  }
 0x282   : > { %3299 = vst.msk [vmem:[#allocation2 + $0xe0] sm:$0xff] %vm3270_vm6, %v3266_v49  ;;  %v3169_v59 = vadd.f32 %v8005_v4, %v3093_v14  ;;  %v3033_v38 = vsel %vm2841_vm5, %v2966_v9, 0.0  ;;  %v3095_v47 = vadd.f32 %v2967_v7, %v7991_v18  ;;  %v6176_v30 = vld [vmem:[%s9304_s3 + $0x158] sm:$0x33]  ;;  %v6703_v5 = vld [vmem:[%s9304_s3 + $0x148] ss:$8 sps:$4 sm:$0xff]  }
 0x283   : > { %v3232_v11 = vmax.f32 %v3168_v55, 0.0  ;;  %v3170_v44 = vadd.f32 %v8000_v28, %v3094_v35  ;;  %v3172_v42 = vadd.f32 %v8000_v28, %v3096_v62  ;;  %v3097_v3 = vadd.f32 %v3033_v38, %v7993_v51 }
 0x284   : > { %v3233_v54 = vmax.f32 %v3169_v59, 0.0  ;;  %v3171_v22 = vadd.f32 %v8005_v4, %v3095_v47  ;;  %v3378_v28 = vmax.f32 %v3327_v36, %v3359_v31  ;;  %v6188_v10 = vcombine.high %v6176_v30, %v6176_v30 }
 0x285   : > { %v3234_v20 = vmax.f32 %v3170_v44, 0.0  ;;  %v3236_v23 = vmax.f32 %v3172_v42, 0.0  ;;  %v3173_v15 = vadd.f32 %v8005_v4, %v3097_v3  ;;  %v6187_v39 = vcombine.low %v6176_v30, %v6176_v30 }
 0x286   : > { %v3267_v58 = vmax.f32 %v3232_v11, %v3233_v54  ;;  %v3235_v8 = vmax.f32 %v3171_v22, 0.0 }
 0x287   : > { %v3237_v1 = vmax.f32 %v3173_v15, 0.0  ;;  %v3329_v18 = vld [vmem:[#allocation2 + $0xd0] ss:$2 sm:$0xff]  ;;  %v3361_v34 = vld [vmem:[#allocation2 + $0xd1] ss:$2 sm:$0xff]  ;;  %v4328_v46 = vsel %vm3492_vm4, %v6187_v39, 0 }
 0x288   : > { %3300 = vst.msk [vmem:[#allocation2 + $0xe8] sm:$0xff] %vm3270_vm6, %v3267_v58  ;;  %v3268_v17 = vmax.f32 %v3234_v20, %v3235_v8  ;;  %v3379_v56 = vmax.f32 %v3329_v18, %v3361_v34 }
 0x289   : > { %v3269_v51 = vmax.f32 %v3236_v23, %v3237_v1 }
 0x28a   : > { %3301 = vst.msk [vmem:[#allocation2 + $0xf0] sm:$0xff] %vm3270_vm6, %v3268_v17  ;;  %v8353_v43 = vpack.c.bf16 %v3379_v56, %v3378_v28 }
 0x28b   : > { %3302 = vst.msk [vmem:[#allocation2 + $0xf8] sm:$0xff] %vm3270_vm6, %v3269_v51 }
 0x28c   : > { %6111 = vmatmul.mubr.msk.bf16.gmra.mrb[152].mxu1 %vm3270_vm6, %v8353_v43  ;;  %6164 = vmatmul.mubr.msk.bf16.gmra.mrb[216].mxu0 %vm3270_vm6, %v8353_v43 }
 0x28d   : > { %3601 = vmatprep.mubr.bf16.mxu1 %v9410_v60  ;;  %4089 = vmatprep.mubr.bf16.mxu0 %v9410_v60 }
 0x28f   : > { %v3331_v4 = vld [vmem:[#allocation2 + $0xe0] ss:$2 sm:$0xff]  ;;  %v3363_v52 = vld [vmem:[#allocation2 + $0xe1] ss:$2 sm:$0xff] }
 0x290   : > { %v3380_v21 = vmax.f32 %v3331_v4, %v3363_v52 }
 0x292   : > { %v3333_v26 = vld [vmem:[#allocation2 + $0xf0] ss:$2 sm:$0xff]  ;;  %v3365_v32 = vld [vmem:[#allocation2 + $0xf1] ss:$2 sm:$0xff] }
 0x293   : > { %v3381_v53 = vmax.f32 %v3333_v26, %v3365_v32 }
 0x295   : > { %v8362_v50 = vpack.c.bf16 %v3381_v53, %v3380_v21 }
 0x297   : > { %6112 = vmatmul.mubr.msk.bf16.gmra.mrb[156].mxu1 %vm3270_vm6, %v8362_v50  ;;  %6165 = vmatmul.mubr.msk.bf16.gmra.mrb[220].mxu0 %vm3270_vm6, %v8362_v50 }
 0x298   : > { %3833 = vmatprep.mubr.bf16.mxu1 %v9410_v60  ;;  %4711 = vmatprep.mubr.bf16.mxu0 %v9410_v60 }
 0x29f   : > { %6126 = vmatmul.mubr.msk.bf16.vlgmr.msra.gmra.mrb[160].mxu1 %vm3270_vm6, %v8065_v63  ;;  %6222 = vmatmul.mubr.msk.bf16.vlgmr.msra.gmra.mrb[224].mxu0 %vm3270_vm6, %v8065_v63 }
 0x2a0   : > { %4334 = vmatpush1.bf16.msra.mxu1 %v6691_v40  ;;  %3843 = vmatprep.mubr.bf16.mxu1 %v9410_v60 }
 0x2a1   : > { %4721 = vmatprep.mubr.bf16.mxu0 %v9410_v60  ;;  %4335 = vmatprep.subr.bf16.mxu1 %v6696_v37 }
 0x2a4   : > { %4336 = vmatpush1.bf16.msra.mxu1 %v6694_v19 }
 0x2a5   : > { %4337 = vmatprep.subr.bf16.mxu1 %v6699_v12 }
 0x2a7   : > { %6127 = vmatmul.mubr.msk.bf16.gmra.mrb[164].mxu1 %vm3270_vm6, %v8161_v61  ;;  %6223 = vmatmul.mubr.msk.bf16.gmra.mrb[228].mxu0 %vm3270_vm6, %v8161_v61 }
 0x2a8   : > { %3853 = vmatprep.mubr.bf16.mxu1 %v9410_v60  ;;  %4731 = vmatprep.mubr.bf16.mxu0 %v9410_v60 }
 0x2a9   : > { %4338 = vmatpush1.bf16.msra.mxu1 %v6697_v45 }
 0x2aa   : > { %4339 = vmatprep.subr.bf16.mxu1 %v6702_v13 }
 0x2ad   : > { %4340 = vmatpush1.bf16.msra.mxu1 %v6700_v6 }
 0x2ae   : > { %4341 = vmatprep.subr.bf16.mxu1 %v6705_v33 }
 0x2af   : > { %6128 = vmatmul.mubr.msk.bf16.gmra.mrb[168].mxu1 %vm3270_vm6, %v8213_v48  ;;  %6224 = vmatmul.mubr.msk.bf16.gmra.mrb[232].mxu0 %vm3270_vm6, %v8213_v48 }
 0x2b0   : > { %3863 = vmatprep.mubr.bf16.mxu1 %v9410_v60  ;;  %4741 = vmatprep.mubr.bf16.mxu0 %v9410_v60 }
 0x2b1   : > { %4342 = vmatpush1.bf16.msra.mxu1 %v6703_v5 }
 0x2b2   : > { %6189 = vmatprep.subr.msk.bf16.mxu1 %vm3492_vm4, %v6188_v10 }
 0x2b5   : > { %4344 = vmatpush1.bf16.msra.mxu1 %v4328_v46 }
 0x2b7   : > { %6129 = vmatmul.mubr.msk.bf16.gmra.mrb[172].mxu1 %vm3270_vm6, %v8249_v57  ;;  %6225 = vmatmul.mubr.msk.bf16.gmra.mrb[236].mxu0 %vm3270_vm6, %v8249_v57 }
 0x2b8   : > { %3873 = vmatprep.mubr.bf16.mxu1 %v9410_v60  ;;  %4751 = vmatprep.mubr.bf16.mxu0 %v9410_v60 }
 0x2bf   : > { %6130 = vmatmul.mubr.msk.bf16.gmra.mrb[176].mxu1 %vm3270_vm6, %v8285_v27  ;;  %6226 = vmatmul.mubr.msk.bf16.gmra.mrb[240].mxu0 %vm3270_vm6, %v8285_v27 }
 0x2c0   : > { %3883 = vmatprep.mubr.bf16.mxu1 %v9410_v60  ;;  %4761 = vmatprep.mubr.bf16.mxu0 %v9410_v60 }
 0x2c7   : > { %6131 = vmatmul.mubr.msk.bf16.gmra.mrb[180].mxu1 %vm3270_vm6, %v8321_v2  ;;  %6227 = vmatmul.mubr.msk.bf16.gmra.mrb[244].mxu0 %vm3270_vm6, %v8321_v2 }
 0x2c8   : > { %3893 = vmatprep.mubr.bf16.mxu1 %v9410_v60  ;;  %4771 = vmatprep.mubr.bf16.mxu0 %v9410_v60 }
 0x2cf   : > { %6132 = vmatmul.mubr.msk.bf16.gmra.mrb[184].mxu1 %vm3270_vm6, %v8353_v43  ;;  %6228 = vmatmul.mubr.msk.bf16.gmra.mrb[248].mxu0 %vm3270_vm6, %v8353_v43 }
 0x2d0   : > { %3903 = vmatprep.mubr.bf16.mxu1 %v9410_v60  ;;  %4781 = vmatprep.mubr.bf16.mxu0 %v9410_v60 }
 0x2d7   : > { %6133 = vmatmul.mubr.msk.bf16.gmra.mrb[188].mxu1 %vm3270_vm6, %v8362_v50  ;;  %6229 = vmatmul.mubr.msk.bf16.gmra.mrb[252].mxu0 %vm3270_vm6, %v8362_v50 }
 0x2d8   : > { %4365 = vmatprep.mubr.bf16.mxu1 %v9410_v60 }
 0x2df   : > { %6190 = vmatmul.mubr.msk.bf16.vlgmr.msra.gmra.mrb[192].mxu1 %vm3270_vm6, %v8065_v63 }
 0x2e0   : > { %4375 = vmatprep.mubr.bf16.mxu1 %v9410_v60 }
 0x2e7   : > { %6191 = vmatmul.mubr.msk.bf16.gmra.mrb[196].mxu1 %vm3270_vm6, %v8161_v61 }
 0x2e8   : > { %4385 = vmatprep.mubr.bf16.mxu1 %v9410_v60 }
 0x2ef   : > { %6192 = vmatmul.mubr.msk.bf16.gmra.mrb[200].mxu1 %vm3270_vm6, %v8213_v48 }
 0x2f0   : > { %4395 = vmatprep.mubr.bf16.mxu1 %v9410_v60 }
 0x2f7   : > { %6193 = vmatmul.mubr.msk.bf16.gmra.mrb[204].mxu1 %vm3270_vm6, %v8249_v57 }
 0x2f8   : > { %4405 = vmatprep.mubr.bf16.mxu1 %v9410_v60 }
 0x2ff   : > { %6194 = vmatmul.mubr.msk.bf16.gmra.mrb[208].mxu1 %vm3270_vm6, %v8285_v27  ;;  %v3533_v63 = vpop.f32.mrb[128].mxu1  ;;  %v4021_v41 = vpop.f32.mrb[192].mxu0 }
 0x300   : > { %v3535_v29 = vpop.f32.mrb[129].mxu1  ;;  %v4023_v24 = vpop.f32.mrb[193].mxu0  ;;  %4415 = vmatprep.mubr.bf16.mxu1 %v9410_v60  ;;  %v3644_v49 = vrot.slane %v3533_v63, 1  ;;  %v4132_v48 = vrot.slane %v4021_v41, 2 }
 0x301   : > { %v3537_v61 = vpop.f32.mrb[130].mxu1  ;;  %v4025_v9 = vpop.f32.mrb[194].mxu0  ;;  %v3647_v57 = vrot.slane %v3535_v29, 1  ;;  %v4135_v35 = vrot.slane %v4023_v24, 2 }
 0x302   : > { %v3645_v14 = vrot.slane %v3537_v61, 1  ;;  %v4133_v16 = vrot.slane %v4025_v9, 2  ;;  %v3539_v0 = vpop.f32.mrb[131].mxu1  ;;  %v4027_v55 = vpop.f32.mrb[195].mxu0 }
 0x303   : > { %v3648_v62 = vrot.slane %v3539_v0, 1  ;;  %v4136_v7 = vrot.slane %v4027_v55, 2 }
 0x304   : > { %v8465_v27 = vsel %vm891_vm1, %v3644_v49, %v3645_v14  ;;  %v8468_v59 = vsel %vm1667_vm2, %v4132_v48, %v4133_v16 }
 0x305   : > { %v8471_v38 = vsel %vm891_vm1, %v3647_v57, %v3648_v62  ;;  %v8474_v47 = vsel %vm1667_vm2, %v4135_v35, %v4136_v7 }
 0x307   : > { %6195 = vmatmul.mubr.msk.bf16.gmra.mrb[212].mxu1 %vm3270_vm6, %v8321_v2 }
 0x308   : > { %4425 = vmatprep.mubr.bf16.mxu1 %v9410_v60 }
 0x30f   : > { %6196 = vmatmul.mubr.msk.bf16.gmra.mrb[216].mxu1 %vm3270_vm6, %v8353_v43  ;;  %v3543_v11 = vpop.f32.mrb[132].mxu1 }
 0x310   : > { %v4031_v44 = vpop.f32.mrb[196].mxu0  ;;  %v3650_v42 = vrot.slane %v3543_v11, 1  ;;  %v3545_v54 = vpop.f32.mrb[133].mxu1  ;;  %4435 = vmatprep.mubr.bf16.mxu1 %v9410_v60 }
 0x311   : > { %v4138_v3 = vrot.slane %v4031_v44, 2  ;;  %v4033_v22 = vpop.f32.mrb[197].mxu0  ;;  %v3652_v20 = vrot.slane %v3545_v54, 1  ;;  %v3547_v15 = vpop.f32.mrb[134].mxu1 }
 0x312   : > { %v4140_v23 = vrot.slane %v4033_v22, 2  ;;  %v4035_v36 = vpop.f32.mrb[198].mxu0  ;;  %v3654_v31 = vrot.slane %v3547_v15, 1  ;;  %v3549_v2 = vpop.f32.mrb[135].mxu1  ;;  %v8483_v1 = vsel %vm891_vm1, %v3645_v14, %v3650_v42 }
 0x313   : > { %v4142_v58 = vrot.slane %v4035_v36, 2  ;;  %v4037_v8 = vpop.f32.mrb[199].mxu0  ;;  %v8486_v18 = vsel %vm1667_vm2, %v4133_v16, %v4138_v3  ;;  %v3656_v34 = vrot.slane %v3549_v2, 1  ;;  %v8489_v28 = vsel %vm891_vm1, %v3648_v62, %v3652_v20 }
 0x314   : > { %v4144_v17 = vrot.slane %v4037_v8, 2  ;;  %v8492_v60 = vsel %vm1667_vm2, %v4136_v7, %v4140_v23  ;;  %v8495_v56 = vsel %vm891_vm1, %v3650_v42, %v3654_v31 }
 0x315   : > { %v8498_v51 = vsel %vm1667_vm2, %v4138_v3, %v4142_v58  ;;  %v8501_v43 = vsel %vm891_vm1, %v3652_v20, %v3656_v34 }
 0x316   : > { %v8504_v4 = vsel %vm1667_vm2, %v4140_v23, %v4144_v17 }
 0x317   : > { %6197 = vmatmul.mubr.msk.bf16.gmra.mrb[220].mxu1 %vm3270_vm6, %v8362_v50 }
 0x31f   : > { %v3553_v52 = vpop.f32.mrb[136].mxu1  ;;  %v4041_v26 = vpop.f32.mrb[200].mxu0 }
 0x320   : > { %v3658_v32 = vrot.slane %v3553_v52, 1  ;;  %v4146_v21 = vrot.slane %v4041_v26, 2  ;;  %v3555_v53 = vpop.f32.mrb[137].mxu1  ;;  %v4043_v40 = vpop.f32.mrb[201].mxu0 }
 0x321   : > { %v3660_v37 = vrot.slane %v3555_v53, 1  ;;  %v4148_v19 = vrot.slane %v4043_v40, 2  ;;  %v3557_v12 = vpop.f32.mrb[138].mxu1  ;;  %v4045_v45 = vpop.f32.mrb[202].mxu0 }
 0x322   : > { %v3662_v13 = vrot.slane %v3557_v12, 1  ;;  %v4150_v6 = vrot.slane %v4045_v45, 2  ;;  %v3559_v33 = vpop.f32.mrb[139].mxu1  ;;  %v4047_v30 = vpop.f32.mrb[203].mxu0  ;;  %v8509_v5 = vsel %vm891_vm1, %v3654_v31, %v3658_v32  ;;  %v8512_v10 = vsel %vm1667_vm2, %v4142_v58, %v4146_v21 }
 0x323   : > { %v3664_v50 = vrot.slane %v3559_v33, 1  ;;  %v4152_v39 = vrot.slane %v4047_v30, 2  ;;  %v8515_v46 = vsel %vm891_vm1, %v3656_v34, %v3660_v37  ;;  %v8518_v63 = vsel %vm1667_vm2, %v4144_v17, %v4148_v19 }
 0x324   : > { %v8521_v41 = vsel %vm891_vm1, %v3658_v32, %v3662_v13  ;;  %v8524_v29 = vsel %vm1667_vm2, %v4146_v21, %v4150_v6 }
 0x325   : > { %v8527_v24 = vsel %vm891_vm1, %v3660_v37, %v3664_v50  ;;  %v8530_v61 = vsel %vm1667_vm2, %v4148_v19, %v4152_v39 }
 0x32f   : > { %v3563_v9 = vpop.f32.mrb[140].mxu1  ;;  %v4051_v49 = vpop.f32.mrb[204].mxu0 }
 0x330   : > { %v3666_v48 = vrot.slane %v3563_v9, 1  ;;  %v4154_v14 = vrot.slane %v4051_v49, 2  ;;  %v3565_v16 = vpop.f32.mrb[141].mxu1  ;;  %v4053_v0 = vpop.f32.mrb[205].mxu0 }
 0x331   : > { %v3668_v55 = vrot.slane %v3565_v16, 1  ;;  %v4156_v57 = vrot.slane %v4053_v0, 2  ;;  %v3567_v35 = vpop.f32.mrb[142].mxu1  ;;  %v4055_v62 = vpop.f32.mrb[206].mxu0 }
 0x332   : > { %v3670_v7 = vrot.slane %v3567_v35, 1  ;;  %v4158_v11 = vrot.slane %v4055_v62, 2  ;;  %v3569_v44 = vpop.f32.mrb[143].mxu1  ;;  %v4057_v42 = vpop.f32.mrb[207].mxu0  ;;  %v8533_v3 = vsel %vm891_vm1, %v3662_v13, %v3666_v48  ;;  %v8536_v54 = vsel %vm1667_vm2, %v4150_v6, %v4154_v14 }
 0x333   : > { %v3672_v22 = vrot.slane %v3569_v44, 1  ;;  %v4160_v20 = vrot.slane %v4057_v42, 2  ;;  %v8539_v23 = vsel %vm891_vm1, %v3664_v50, %v3668_v55  ;;  %v8542_v15 = vsel %vm1667_vm2, %v4152_v39, %v4156_v57 }
 0x334   : > { %v8545_v36 = vsel %vm891_vm1, %v3666_v48, %v3670_v7  ;;  %v8548_v31 = vsel %vm1667_vm2, %v4154_v14, %v4158_v11 }
 0x335   : > { %v8551_v58 = vsel %vm891_vm1, %v3668_v55, %v3672_v22  ;;  %v8554_v2 = vsel %vm1667_vm2, %v4156_v57, %v4160_v20 }
 0x33f   : > { %v3573_v8 = vpop.f32.mrb[144].mxu1  ;;  %v4061_v34 = vpop.f32.mrb[208].mxu0 }
 0x340   : > { %v3674_v17 = vrot.slane %v3573_v8, 1  ;;  %v4162_v52 = vrot.slane %v4061_v34, 2  ;;  %v3575_v26 = vpop.f32.mrb[145].mxu1  ;;  %v4063_v32 = vpop.f32.mrb[209].mxu0 }
 0x341   : > { %v3676_v21 = vrot.slane %v3575_v26, 1  ;;  %v4164_v53 = vrot.slane %v4063_v32, 2  ;;  %v3577_v40 = vpop.f32.mrb[146].mxu1  ;;  %v4065_v37 = vpop.f32.mrb[210].mxu0 }
 0x342   : > { %v3678_v19 = vrot.slane %v3577_v40, 1  ;;  %v4166_v12 = vrot.slane %v4065_v37, 2  ;;  %v3579_v45 = vpop.f32.mrb[147].mxu1  ;;  %v4067_v13 = vpop.f32.mrb[211].mxu0  ;;  %v8557_v6 = vsel %vm891_vm1, %v3670_v7, %v3674_v17  ;;  %v8560_v33 = vsel %vm1667_vm2, %v4158_v11, %v4162_v52 }
 0x343   : > { %v3680_v30 = vrot.slane %v3579_v45, 1  ;;  %v4168_v50 = vrot.slane %v4067_v13, 2  ;;  %v8563_v39 = vsel %vm891_vm1, %v3672_v22, %v3676_v21  ;;  %v8566_v9 = vsel %vm1667_vm2, %v4160_v20, %v4164_v53  ;;  %v6708_v13 = vld [vmem:[%s9306_s5 + $0x28] sm:$0xff]  }
 0x344   : > { %v8569_v49 = vsel %vm891_vm1, %v3674_v17, %v3678_v19  ;;  %v8572_v48 = vsel %vm1667_vm2, %v4162_v52, %v4166_v12 }
 0x345   : > { %v8575_v14 = vsel %vm891_vm1, %v3676_v21, %v3680_v30  ;;  %v8578_v16 = vsel %vm1667_vm2, %v4164_v53, %v4168_v50 }
 0x34f   : > { %v3583_v0 = vpop.f32.mrb[148].mxu1  ;;  %v4071_v55 = vpop.f32.mrb[212].mxu0 }
 0x350   : > { %v3682_v57 = vrot.slane %v3583_v0, 1  ;;  %v4170_v35 = vrot.slane %v4071_v55, 2  ;;  %v3585_v62 = vpop.f32.mrb[149].mxu1  ;;  %v4073_v7 = vpop.f32.mrb[213].mxu0 }
 0x351   : > { %v3684_v11 = vrot.slane %v3585_v62, 1  ;;  %v4172_v44 = vrot.slane %v4073_v7, 2  ;;  %v3587_v42 = vpop.f32.mrb[150].mxu1  ;;  %v4075_v22 = vpop.f32.mrb[214].mxu0 }
 0x352   : > { %v3686_v20 = vrot.slane %v3587_v42, 1  ;;  %v4174_v8 = vrot.slane %v4075_v22, 2  ;;  %v3589_v34 = vpop.f32.mrb[151].mxu1  ;;  %v4077_v17 = vpop.f32.mrb[215].mxu0  ;;  %v8581_v52 = vsel %vm891_vm1, %v3678_v19, %v3682_v57  ;;  %v8584_v26 = vsel %vm1667_vm2, %v4166_v12, %v4170_v35 }
 0x353   : > { %v3688_v32 = vrot.slane %v3589_v34, 1  ;;  %v4176_v21 = vrot.slane %v4077_v17, 2  ;;  %v8587_v53 = vsel %vm891_vm1, %v3680_v30, %v3684_v11  ;;  %v8590_v40 = vsel %vm1667_vm2, %v4168_v50, %v4172_v44 }
 0x354   : > { %v8593_v37 = vsel %vm891_vm1, %v3682_v57, %v3686_v20  ;;  %v8596_v45 = vsel %vm1667_vm2, %v4170_v35, %v4174_v8  ;;  %v9321_v30 = vmov 0.0  }
 0x355   : > { %9433 = vst [vmem:[#allocation28_spill] sm:$0xff] %v8596_v45  ;;  %v8599_v19 = vsel %vm891_vm1, %v3684_v11, %v3688_v32  ;;  %v8602_v12 = vsel %vm1667_vm2, %v4172_v44, %v4176_v21  ;;  %6369 = vmatprep.subr.bf16.mxu1 %v9321_v30  ;;  %6425 = vmatprep.subr.bf16.mxu0 %v9321_v30 }
 0x356   : > { %9434 = vst [vmem:[#allocation29_spill] sm:$0xff] %v8602_v12  ;;  %6370 = vmatpush3.bf16.msra.mxu1 %v6708_v13 }
 0x357   : > { %6371 = vmatprep.subr.bf16.mxu1 %v9321_v30 }
 0x35f   : > { %v3593_v50 = vpop.f32.mrb[152].mxu1  ;;  %v4081_v0 = vpop.f32.mrb[216].mxu0 }
 0x360   : > { %v3690_v55 = vrot.slane %v3593_v50, 1  ;;  %v4178_v57 = vrot.slane %v4081_v0, 2  ;;  %v3595_v35 = vpop.f32.mrb[153].mxu1  ;;  %v4083_v62 = vpop.f32.mrb[217].mxu0 }
 0x361   : > { %v3692_v7 = vrot.slane %v3595_v35, 1  ;;  %v4180_v11 = vrot.slane %v4083_v62, 2  ;;  %v3597_v44 = vpop.f32.mrb[154].mxu1  ;;  %v4085_v42 = vpop.f32.mrb[218].mxu0 }
 0x362   : > { %v3694_v22 = vrot.slane %v3597_v44, 1  ;;  %v4182_v34 = vrot.slane %v4085_v42, 2  ;;  %v3599_v17 = vpop.f32.mrb[155].mxu1  ;;  %v4087_v25 = vpop.f32.mrb[219].mxu0  ;;  %v8611_v12 = vsel %vm891_vm1, %v3686_v20, %v3690_v55  ;;  %v8614_v13 = vsel %vm1667_vm2, %v4174_v8, %v4178_v57 }
 0x363   : > { %9435 = vst [vmem:[#allocation30_spill] sm:$0xff] %v8614_v13  ;;  %v3696_v30 = vrot.slane %v3599_v17, 1  ;;  %v4184_v45 = vrot.slane %v4087_v25, 2  ;;  %v8617_v50 = vsel %vm891_vm1, %v3688_v32, %v3692_v7  ;;  %v8620_v0 = vsel %vm1667_vm2, %v4176_v21, %v4180_v11  ;;  %v6709_v25 = vld [vmem:[%s9306_s5 + $0x30] sm:$0xff]  }
 0x364   : > { %9436 = vst [vmem:[#allocation31_spill] sm:$0xff] %v8617_v50  ;;  %9437 = vst [vmem:[#allocation32_spill] sm:$0xff] %v8620_v0  ;;  %v8623_v35 = vsel %vm891_vm1, %v3690_v55, %v3694_v22  ;;  %v8626_v62 = vsel %vm1667_vm2, %v4178_v57, %v4182_v34  ;;  %6372 = vmatpush3.bf16.msra.mxu1 %v6709_v25 }
 0x365   : > { %9438 = vst [vmem:[#allocation33_spill] sm:$0xff] %v8623_v35  ;;  %9439 = vst [vmem:[#allocation9_spill] sm:$0xff] %v8626_v62  ;;  %v8629_v20 = vsel %vm891_vm1, %v3692_v7, %v3696_v30  ;;  %v8632_v8 = vsel %vm1667_vm2, %v4180_v11, %v4184_v45 }
 0x366   : > { %9440 = vst [vmem:[#allocation34_spill] sm:$0xff] %v8629_v20  ;;  %9441 = vst [vmem:[#allocation10_spill] sm:$0xff] %v8632_v8  ;;  %v9444_v20 = vmov 0.0  }
 0x367   : > { %6373 = vmatprep.subr.bf16.mxu1 %v9444_v20  ;;  %6379 = vmatprep.mubr.msk.bf16.mxu1 %vm6817_vm7, %v9444_v20 }
 0x368   : > { %6435 = vmatprep.mubr.msk.bf16.mxu0 %vm6817_vm7, %v9444_v20 }
 0x36a   : > { %v3603_v32 = vpop.f32.mrb[156].mxu1  ;;  %v4091_v44 = vpop.f32.mrb[220].mxu0 }
 0x36b   : > { %v3698_v21 = vrot.slane %v3603_v32, 1  ;;  %v4186_v42 = vrot.slane %v4091_v44, 2  ;;  %v3605_v17 = vpop.f32.mrb[157].mxu1  ;;  %v4093_v55 = vpop.f32.mrb[221].mxu0 }
 0x36c   : > { %v3700_v35 = vrot.slane %v3605_v17, 1  ;;  %v4188_v57 = vrot.slane %v4093_v55, 2  ;;  %v8637_v62 = vpop.f32.mrb[158].mxu1  ;;  %v8639_v7 = vpop.f32.mrb[222].mxu0 }
 0x36d   : > { %9442 = vst [vmem:[#allocation11_spill] sm:$0xff] %v8637_v62  ;;  %9443 = vst [vmem:[#allocation12_spill] sm:$0xff] %v8639_v7  ;;  %v8644_v0 = vpop.f32.mrb[159].mxu1  ;;  %v8646_v13 = vpop.f32.mrb[223].mxu0  ;;  %v8649_v32 = vsel %vm891_vm1, %v3694_v22, %v3698_v21  ;;  %v8652_v25 = vsel %vm1667_vm2, %v4182_v34, %v4186_v42  ;;  %v9448_v8 = vrot.slane %v8637_v62, 1  ;;  %v9450_v22 = vrot.slane %v8639_v7, 2 }
 0x36e   : > { %9445 = vst [vmem:[#allocation13_spill] sm:$0xff] %v8644_v0  ;;  %9446 = vst [vmem:[#allocation14_spill] sm:$0xff] %v8646_v13  ;;  %v9325_v44 = vrot.slane %v8644_v0, 1  ;;  %v8657_v55 = vsel %vm891_vm1, %v3696_v30, %v3700_v35  ;;  %v8660_v11 = vsel %vm1667_vm2, %v4184_v45, %v4188_v57  ;;  %v9452_v30 = vrot.slane %v8646_v13, 2 }
 0x36f   : > { %9447 = vst [vmem:[#allocation15_spill] sm:$0xff] %v8660_v11  ;;  %v8665_v50 = vsel %vm891_vm1, %v3698_v21, %v9448_v8  ;;  %v8670_v34 = vsel %vm1667_vm2, %v4186_v42, %v9450_v22 }
 0x370   : > { %9449 = vst [vmem:[#allocation16_spill] sm:$0xff] %v8665_v50  ;;  %9451 = vst [vmem:[#allocation17_spill] sm:$0xff] %v8670_v34  ;;  %v8675_v17 = vsel %vm891_vm1, %v3700_v35, %v9325_v44  ;;  %v8680_v45 = vsel %vm1667_vm2, %v4188_v57, %v9452_v30 }
 0x371   : > { %9453 = vst [vmem:[#allocation18_spill] sm:$0xff] %v8680_v45 }
 0x372   : > { %v3835_v11 = vpop.f32.mrb[160].mxu1  ;;  %v4713_v62 = vpop.f32.mrb[224].mxu0 }
 0x373   : > { %v3836_v8 = vadd.f32 %v3835_v11, %v8465_v27  ;;  %v3837_v21 = vpop.f32.mrb[161].mxu1  ;;  %v4715_v50 = vpop.f32.mrb[225].mxu0  ;;  %v4824_v35 = vrot.slane %v4713_v62, 4 }
 0x374   : > { %v3838_v7 = vadd.f32 %v3837_v21, %v8471_v38  ;;  %v3839_v42 = vpop.f32.mrb[162].mxu1  ;;  %v4717_v22 = vpop.f32.mrb[226].mxu0  ;;  %v4827_v45 = vrot.slane %v4715_v50, 4 }
 0x375   : > { %v8685_v34 = vadd.f32 %v8468_v59, %v3836_v8  ;;  %v3840_v44 = vadd.f32 %v3839_v42, %v8483_v1  ;;  %v4825_v13 = vrot.slane %v4717_v22, 4  ;;  %v3841_v0 = vpop.f32.mrb[163].mxu1  ;;  %v4719_v57 = vpop.f32.mrb[227].mxu0  ;;  %v6713_v22 = vld [vmem:[%s9306_s5 + $0xa8] sm:$0xff]  }
 0x376   : > { %v8689_v30 = vadd.f32 %v8474_v47, %v3838_v7  ;;  %v3842_v27 = vadd.f32 %v3841_v0, %v8489_v28  ;;  %v4828_v11 = vrot.slane %v4719_v57, 4  ;;  %v6710_v47 = vld [vmem:[%s9306_s5 + $0x38] sm:$0xff]   ;;  %v6712_v28 = vld [vmem:[%s9306_s5 + $0xa0] sm:$0xff]  }
 0x377   : > { %v8693_v38 = vadd.f32 %v8486_v18, %v3840_v44  ;;  %v8696_v21 = vsel %vm2841_vm5, %v4824_v35, %v4825_v13  ;;  %6374 = vmatpush3.bf16.msra.mxu1 %v6710_v47  ;;  %6426 = vmatpush3.bf16.msra.mxu0 %v6712_v28 }
 0x378   : > { %v8699_v59 = vadd.f32 %v8492_v60, %v3842_v27  ;;  %v8702_v1 = vsel %vm2841_vm5, %v4827_v45, %v4828_v11  ;;  %6375 = vmatprep.subr.bf16.mxu1 %v9444_v20  ;;  %6427 = vmatprep.subr.bf16.mxu0 %v9444_v20 }
 0x37a   : > { %v3845_v50 = vpop.f32.mrb[164].mxu1  ;;  %v4723_v18 = vpop.f32.mrb[228].mxu0 }
 0x37b   : > { %v3846_v0 = vadd.f32 %v3845_v50, %v8495_v56  ;;  %v4830_v62 = vrot.slane %v4723_v18, 4  ;;  %v3847_v60 = vpop.f32.mrb[165].mxu1  ;;  %v4725_v7 = vpop.f32.mrb[229].mxu0  ;;  %6428 = vmatpush3.bf16.msra.mxu0 %v6713_v22 }
 0x37c   : > { %v3848_v44 = vadd.f32 %v3847_v60, %v8501_v43  ;;  %v4832_v45 = vrot.slane %v4725_v7, 4  ;;  %v3849_v8 = vpop.f32.mrb[166].mxu1  ;;  %v4727_v42 = vpop.f32.mrb[230].mxu0  ;;  %6429 = vmatprep.subr.bf16.mxu0 %v9444_v20 }
 0x37d   : > { %v8718_v35 = vadd.f32 %v8498_v51, %v3846_v0  ;;  %v8721_v56 = vsel %vm2841_vm5, %v4825_v13, %v4830_v62  ;;  %v3850_v57 = vadd.f32 %v3849_v8, %v8509_v5  ;;  %v4834_v27 = vrot.slane %v4727_v42, 4  ;;  %v3851_v47 = vpop.f32.mrb[167].mxu1  ;;  %v4729_v28 = vpop.f32.mrb[231].mxu0 }
 0x37e   : > { %v8725_v43 = vadd.f32 %v8504_v4, %v3848_v44  ;;  %v8728_v50 = vsel %vm2841_vm5, %v4828_v11, %v4832_v45  ;;  %v3852_v18 = vadd.f32 %v3851_v47, %v8515_v46  ;;  %v4836_v60 = vrot.slane %v4729_v28, 4  ;;  %v6715_v46 = vld [vmem:[%s9306_s5 + $0xb0] sm:$0xff]  }
 0x37f   : > { %v8732_v51 = vadd.f32 %v8512_v10, %v3850_v57  ;;  %v8735_v13 = vsel %vm2841_vm5, %v4830_v62, %v4834_v27  ;;  %6430 = vmatpush3.bf16.msra.mxu0 %v6715_v46  ;;  %v6716_v57 = vld [vmem:[%s9306_s5 + $0xb8] sm:$0xff]  }
 0x380   : > { %v8739_v5 = vadd.f32 %v8518_v63, %v3852_v18  ;;  %v8742_v4 = vsel %vm2841_vm5, %v4832_v45, %v4836_v60  ;;  %v6711_v63 = vld [vmem:[%s9306_s5 + $0x40] sm:$0xff]   ;;  %6431 = vmatprep.subr.bf16.mxu0 %v9444_v20 }
 0x381   : > { %6376 = vmatpush3.bf16.msra.mxu1 %v6711_v63 }
 0x382   : > { %v3855_v11 = vpop.f32.mrb[168].mxu1  ;;  %v4733_v0 = vpop.f32.mrb[232].mxu0  ;;  %6377 = vmatprep.subr.bf16.mxu1 %v9444_v20 }
 0x383   : > { %v3856_v10 = vadd.f32 %v3855_v11, %v8521_v41  ;;  %v4838_v7 = vrot.slane %v4733_v0, 4  ;;  %v3857_v62 = vpop.f32.mrb[169].mxu1  ;;  %v4735_v44 = vpop.f32.mrb[233].mxu0  ;;  %6432 = vmatpush3.bf16.msra.mxu0 %v6716_v57 }
 0x384   : > { %v3858_v45 = vadd.f32 %v3857_v62, %v8527_v24  ;;  %v4840_v8 = vrot.slane %v4735_v44, 4  ;;  %v3859_v42 = vpop.f32.mrb[170].mxu1  ;;  %v4737_v22 = vpop.f32.mrb[234].mxu0  ;;  %6433 = vmatprep.subr.bf16.mxu0 %v9444_v20 }
 0x385   : > { %v8757_v41 = vadd.f32 %v8524_v29, %v3856_v10  ;;  %v8760_v47 = vsel %vm2841_vm5, %v4834_v27, %v4838_v7  ;;  %v3860_v28 = vadd.f32 %v3859_v42, %v8533_v3  ;;  %v4842_v18 = vrot.slane %v4737_v22, 4  ;;  %v3861_v46 = vpop.f32.mrb[171].mxu1  ;;  %v4739_v11 = vpop.f32.mrb[235].mxu0 }
 0x386   : > { %v8764_v24 = vadd.f32 %v8530_v61, %v3858_v45  ;;  %v8767_v0 = vsel %vm2841_vm5, %v4836_v60, %v4840_v8  ;;  %v3862_v62 = vadd.f32 %v3861_v46, %v8539_v23  ;;  %v4844_v44 = vrot.slane %v4739_v11, 4  ;;  %v6714_v61 = vld [vmem:[%s9306_s5 + $0x48] sm:$0xff]  }
 0x387   : > { %v8772_v29 = vadd.f32 %v8536_v54, %v3860_v28  ;;  %v8775_v3 = vsel %vm2841_vm5, %v4838_v7, %v4842_v18  ;;  %v6717_v54 = vld [vmem:[%s9306_s5 + $0xc0] sm:$0xff]   ;;  %6378 = vmatpush3.bf16.msra.mxu1 %v6714_v61 }
 0x388   : > { %v8782_v27 = vadd.f32 %v8542_v15, %v3862_v62  ;;  %v8785_v23 = vsel %vm2841_vm5, %v4840_v8, %v4844_v44  ;;  %6434 = vmatpush3.bf16.msra.mxu0 %v6717_v54  ;;  %6383 = vmatprep.subr.bf16.mxu1 %v9444_v20 }
 0x389   : > { %6459 = vmatprep.subr.bf16.mxu0 %v9444_v20 }
 0x38a   : > { %v3865_v60 = vpop.f32.mrb[172].mxu1  ;;  %v4743_v10 = vpop.f32.mrb[236].mxu0 }
 0x38b   : > { %v3866_v7 = vadd.f32 %v3865_v60, %v8545_v36  ;;  %v4846_v63 = vrot.slane %v4743_v10, 4  ;;  %v3867_v45 = vpop.f32.mrb[173].mxu1  ;;  %v4745_v42 = vpop.f32.mrb[237].mxu0 }
 0x38c   : > { %v3868_v15 = vadd.f32 %v3867_v45, %v8551_v58  ;;  %v4848_v8 = vrot.slane %v4745_v42, 4  ;;  %v3869_v22 = vpop.f32.mrb[174].mxu1  ;;  %v4747_v57 = vpop.f32.mrb[238].mxu0 }
 0x38d   : > { %v8799_v28 = vadd.f32 %v8548_v31, %v3866_v7  ;;  %v8802_v36 = vsel %vm2841_vm5, %v4842_v18, %v4846_v63  ;;  %v3870_v46 = vadd.f32 %v3869_v22, %v8557_v6  ;;  %v4850_v11 = vrot.slane %v4747_v57, 4  ;;  %v3871_v58 = vpop.f32.mrb[175].mxu1  ;;  %v4749_v62 = vpop.f32.mrb[239].mxu0 }
 0x38e   : > { %v8806_v61 = vadd.f32 %v8554_v2, %v3868_v15  ;;  %v8809_v54 = vsel %vm2841_vm5, %v4844_v44, %v4848_v8  ;;  %v3872_v60 = vadd.f32 %v3871_v58, %v8563_v39  ;;  %v4852_v10 = vrot.slane %v4749_v62, 4 }
 0x38f   : > { %v8813_v31 = vadd.f32 %v8560_v33, %v3870_v46  ;;  %v8816_v18 = vsel %vm2841_vm5, %v4846_v63, %v4850_v11 }
 0x390   : > { %v8819_v6 = vadd.f32 %v8566_v9, %v3872_v60  ;;  %v8822_v7 = vsel %vm2841_vm5, %v4848_v8, %v4852_v10 }
 0x392   : > { %v3875_v2 = vpop.f32.mrb[176].mxu1  ;;  %v4753_v45 = vpop.f32.mrb[240].mxu0 }
 0x393   : > { %v3876_v44 = vadd.f32 %v3875_v2, %v8569_v49  ;;  %v4854_v42 = vrot.slane %v4753_v45, 4  ;;  %v3877_v15 = vpop.f32.mrb[177].mxu1  ;;  %v4755_v39 = vpop.f32.mrb[241].mxu0 }
 0x394   : > { %v3878_v22 = vadd.f32 %v3877_v15, %v8575_v14  ;;  %v4856_v33 = vrot.slane %v4755_v39, 4  ;;  %v3879_v57 = vpop.f32.mrb[178].mxu1  ;;  %v4757_v46 = vpop.f32.mrb[242].mxu0 }
 0x395   : > { %v8827_v63 = vadd.f32 %v8572_v48, %v3876_v44  ;;  %v8830_v9 = vsel %vm2841_vm5, %v4850_v11, %v4854_v42  ;;  %v3880_v8 = vadd.f32 %v3879_v57, %v8581_v52  ;;  %v4858_v58 = vrot.slane %v4757_v46, 4  ;;  %v3881_v62 = vpop.f32.mrb[179].mxu1  ;;  %v4759_v60 = vpop.f32.mrb[243].mxu0 }
 0x396   : > { %v8834_v49 = vadd.f32 %v8578_v16, %v3878_v22  ;;  %v8837_v2 = vsel %vm2841_vm5, %v4852_v10, %v4856_v33  ;;  %v3882_v14 = vadd.f32 %v3881_v62, %v8587_v53  ;;  %v4860_v45 = vrot.slane %v4759_v60, 4 }
 0x397   : > { %v8841_v48 = vadd.f32 %v8584_v26, %v3880_v8  ;;  %v8844_v11 = vsel %vm2841_vm5, %v4854_v42, %v4858_v58  ;;  %v9455_v42 = vld [vmem:[#allocation28_spill] sm:$0xff] }
 0x398   : > { %v8847_v52 = vadd.f32 %v8590_v40, %v3882_v14  ;;  %v8850_v44 = vsel %vm2841_vm5, %v4856_v33, %v4860_v45 }
 0x39a   : > { %9454 = vst [vmem:[#allocation19_spill] sm:$0xff] %v8847_v52  ;;  %v3885_v16 = vpop.f32.mrb[180].mxu1  ;;  %v4763_v15 = vpop.f32.mrb[244].mxu0  ;;  %v9460_v52 = vld [vmem:[#allocation30_spill] sm:$0xff] }
 0x39b   : > { %v3886_v10 = vadd.f32 %v3885_v16, %v8593_v37  ;;  %v4862_v39 = vrot.slane %v4763_v15, 4  ;;  %v3887_v22 = vpop.f32.mrb[181].mxu1  ;;  %v4765_v53 = vpop.f32.mrb[245].mxu0  ;;  %v9456_v37 = vld [vmem:[#allocation29_spill] sm:$0xff] }
 0x39c   : > { %v3888_v57 = vadd.f32 %v3887_v22, %v8599_v19  ;;  %v4864_v26 = vrot.slane %v4765_v53, 4  ;;  %v3889_v46 = vpop.f32.mrb[182].mxu1  ;;  %v4767_v8 = vpop.f32.mrb[246].mxu0  ;;  %v9459_v19 = vld [vmem:[#allocation31_spill] sm:$0xff] }
 0x39d   : > { %v8855_v62 = vadd.f32 %v9455_v42, %v3886_v10  ;;  %v8858_v40 = vsel %vm2841_vm5, %v4858_v58, %v4862_v39  ;;  %v3890_v33 = vadd.f32 %v3889_v46, %v8611_v12  ;;  %v4866_v60 = vrot.slane %v4767_v8, 4  ;;  %v3891_v14 = vpop.f32.mrb[183].mxu1  ;;  %v4769_v20 = vpop.f32.mrb[247].mxu0  ;;  %v9463_v42 = vld [vmem:[#allocation32_spill] sm:$0xff] }
 0x39e   : > { %v8862_v16 = vadd.f32 %v9456_v37, %v3888_v57  ;;  %v8865_v15 = vsel %vm2841_vm5, %v4860_v45, %v4864_v26  ;;  %v3892_v22 = vadd.f32 %v3891_v14, %v9459_v19  ;;  %v4868_v53 = vrot.slane %v4769_v20, 4  ;;  %v9466_v37 = vld [vmem:[#allocation33_spill] sm:$0xff]  ;;  %v9467_v20 = vld [vmem:[#allocation34_spill] sm:$0xff] }
 0x39f   : > { %9458 = vst [vmem:[#allocation21_spill] sm:$0xff] %v8865_v15  ;;  %v8869_v10 = vadd.f32 %v9460_v52, %v3890_v33  ;;  %v8872_v58 = vsel %vm2841_vm5, %v4862_v39, %v4866_v60  ;;  %v9468_v39 = vld [vmem:[#allocation9_spill] sm:$0xff] }
 0x3a0   : > { %9457 = vst [vmem:[#allocation20_spill] sm:$0xff] %v8862_v16  ;;  %9462 = vst [vmem:[#allocation23_spill] sm:$0xff] %v8872_v58  ;;  %v8875_v12 = vadd.f32 %v9463_v42, %v3892_v22  ;;  %v8878_v46 = vsel %vm2841_vm5, %v4864_v26, %v4868_v53 }
 0x3a1   : > { %9461 = vst [vmem:[#allocation22_spill] sm:$0xff] %v8869_v10  ;;  %9465 = vst [vmem:[#allocation35_spill] sm:$0xff] %v8878_v46 }
 0x3a2   : > { %9464 = vst [vmem:[#allocation24_spill] sm:$0xff] %v8875_v12  ;;  %v3895_v57 = vpop.f32.mrb[184].mxu1  ;;  %v4773_v8 = vpop.f32.mrb[248].mxu0 }
 0x3a3   : > { %v3896_v45 = vadd.f32 %v3895_v57, %v9466_v37  ;;  %v4870_v16 = vrot.slane %v4773_v8, 4  ;;  %v3897_v15 = vpop.f32.mrb[185].mxu1  ;;  %v4775_v14 = vpop.f32.mrb[249].mxu0  ;;  %v9469_v57 = vld [vmem:[#allocation10_spill] sm:$0xff] }
 0x3a4   : > { %v3898_v19 = vadd.f32 %v3897_v15, %v9467_v20  ;;  %v4872_v52 = vrot.slane %v4775_v14, 4  ;;  %v3899_v33 = vpop.f32.mrb[186].mxu1  ;;  %v4777_v10 = vpop.f32.mrb[250].mxu0  ;;  %v9474_v20 = vld [vmem:[#allocation15_spill] sm:$0xff] }
 0x3a5   : > { %v8883_v58 = vadd.f32 %v9468_v39, %v3896_v45  ;;  %v8886_v22 = vsel %vm2841_vm5, %v4866_v60, %v4870_v16  ;;  %v3900_v26 = vadd.f32 %v3899_v33, %v8649_v32  ;;  %v4874_v42 = vrot.slane %v4777_v10, 4  ;;  %v3901_v12 = vpop.f32.mrb[187].mxu1  ;;  %v4779_v46 = vpop.f32.mrb[251].mxu0  ;;  %v9477_v39 = vld [vmem:[#allocation12_spill] sm:$0xff] }
 0x3a6   : > { %v8890_v8 = vadd.f32 %v9469_v57, %v3898_v19  ;;  %v8893_v37 = vsel %vm2841_vm5, %v4868_v53, %v4872_v52  ;;  %v3902_v15 = vadd.f32 %v3901_v12, %v8657_v55  ;;  %v4876_v14 = vrot.slane %v4779_v46, 4  ;;  %v9479_v55 = vld [vmem:[#allocation16_spill] sm:$0xff] }
 0x3a7   : > { %9471 = vst [vmem:[#allocation26_spill] sm:$0xff] %v8893_v37  ;;  %v8897_v45 = vadd.f32 %v8652_v25, %v3900_v26  ;;  %v8900_v60 = vsel %vm2841_vm5, %v4870_v16, %v4874_v42  ;;  %v9478_v53 = vrot.slane %v9477_v39, 2 }
 0x3a8   : > { %9470 = vst [vmem:[#allocation25_spill] sm:$0xff] %v8890_v8  ;;  %9473 = vst [vmem:[#allocation36_spill] sm:$0xff] %v8900_v60  ;;  %v8903_v32 = vadd.f32 %v9474_v20, %v3902_v15  ;;  %v8906_v10 = vsel %vm2841_vm5, %v4872_v52, %v4876_v14  ;;  %v9480_v8 = vld [vmem:[#allocation11_spill] sm:$0xff] }
 0x3a9   : > { %9472 = vst [vmem:[#allocation27_spill] sm:$0xff] %v8897_v45  ;;  %9476 = vst [vmem:[#allocation29_spill] sm:$0xff] %v8906_v10  ;;  %v4226_v57 = vsel %vm1667_vm2, %v9478_v53, 0.0  ;;  %v9481_v15 = vrot.slane %v9480_v8, 1  ;;  %v9482_v10 = vld [vmem:[#allocation13_spill] sm:$0xff] }
 0x3aa   : > { %9475 = vst [vmem:[#allocation28_spill] sm:$0xff] %v8903_v32  ;;  %v3905_v19 = vpop.f32.mrb[188].mxu1  ;;  %v4783_v33 = vpop.f32.mrb[252].mxu0  ;;  %v9483_v60 = vrot.slane %v9482_v10, 1  ;;  %v9484_v53 = vld [vmem:[#allocation17_spill] sm:$0xff] }
 0x3ab   : > { %v3906_v12 = vadd.f32 %v3905_v19, %v9479_v55  ;;  %v4878_v46 = vrot.slane %v4783_v33, 4  ;;  %v3907_v25 = vpop.f32.mrb[189].mxu1  ;;  %v4785_v26 = vpop.f32.mrb[253].mxu0  ;;  %v3738_v20 = vsel %vm891_vm1, %v9481_v15, 0.0 }
 0x3ac   : > { %v3908_v16 = vadd.f32 %v3907_v25, %v8675_v17  ;;  %v4880_v45 = vrot.slane %v4785_v26, 4  ;;  %v3909_v52 = vpop.f32.mrb[190].mxu1  ;;  %v8916_v32 = vpop.f32.mrb[254].mxu0  ;;  %v3739_v39 = vsel %vm891_vm1, %v9483_v60, 0.0  ;;  %v9487_v25 = vld [vmem:[#allocation18_spill] sm:$0xff] }
 0x3ad   : > { %v8922_v37 = vadd.f32 %v9484_v53, %v3906_v12  ;;  %v8925_v19 = vsel %vm2841_vm5, %v4874_v42, %v4878_v46  ;;  %v3910_v33 = vadd.f32 %v3909_v52, %v3738_v20  ;;  %v9329_v17 = vrot.slane %v8916_v32, 4  ;;  %v3911_v55 = vpop.f32.mrb[191].mxu1  ;;  %v8928_v8 = vpop.f32.mrb[255].mxu0  ;;  %v9489_v12 = vld [vmem:[#allocation14_spill] sm:$0xff] }
 0x3ae   : > { %9486 = vst [vmem:[#allocation30_spill] sm:$0xff] %v8928_v8  ;;  %v8931_v26 = vadd.f32 %v9487_v25, %v3908_v16  ;;  %v8934_v15 = vsel %vm2841_vm5, %v4876_v14, %v4880_v45  ;;  %v3912_v10 = vadd.f32 %v3911_v55, %v3739_v39  ;;  %v9331_v60 = vrot.slane %v8928_v8, 4 }
 0x3af   : > { %9485 = vst [vmem:[#allocation31_spill] sm:$0xff] %v8922_v37  ;;  %v9490_v53 = vrot.slane %v9489_v12, 2  ;;  %v8940_v37 = vadd.f32 %v4226_v57, %v3910_v33  ;;  %v8945_v20 = vsel %vm2841_vm5, %v4878_v46, %v9329_v17  ;;  %v4952_v57 = vld [vmem:[%s9305_s4] sm:$0x3]  ;;  %v9494_v17 = vld [vmem:[#allocation37_spill] sm:$0xff] }
 0x3b0   : > { %9488 = vst [vmem:[#allocation32_spill] sm:$0xff] %v8931_v26  ;;  %9491 = vst [vmem:[#allocation33_spill] sm:$0xff] %v8945_v20  ;;  %v8952_v14 = vsel %vm2841_vm5, %v4880_v45, %v9331_v60  ;;  %v9495_v8 = vsub.s32 0, %v9494_v17 }
 0x3b1   : > { %v4227_v42 = vsel %vm1667_vm2, %v9490_v53, 0.0  ;;  %9493 = vst [vmem:[#allocation9_spill] sm:$0xff] %v8952_v14 }
 0x3b2   : > { %v8947_v52 = vadd.f32 %v4227_v42, %v3912_v10  ;;  %v4367_v16 = vpop.f32.mrb[192].mxu1  ;;  %v8961_v45 = vrot.slane %v4952_v57, %v9495_v8 }
 0x3b3   : > { %v4369_v39 = vpop.f32.mrb[193].mxu1  ;;  %v4478_v25 = vrot.slane %v4367_v16, 3 }
 0x3b4   : > { %9492 = vst [vmem:[#allocation34_spill] sm:$0xff] %v8947_v52  ;;  %v4371_v55 = vpop.f32.mrb[194].mxu1  ;;  %v4481_v53 = vrot.slane %v4369_v39, 3 }
 0x3b5   : > { %v4479_v12 = vrot.slane %v4371_v55, 3  ;;  %v4373_v33 = vpop.f32.mrb[195].mxu1  ;;  %v9496_v55 = vsub.s32 1, %v9494_v17 }
 0x3b6   : > { %v4482_v46 = vrot.slane %v4373_v33, 3 }
 0x3b7   : > { %v4480_v10 = vsel %vm2254_vm3, %v4478_v25, %v4479_v12  ;;  %v8967_v14 = vrot.slane %v4952_v57, %v9496_v55 }
 0x3b8   : > { %v4574_v42 = vadd.f32 %v4480_v10, %v8685_v34  ;;  %v4483_v60 = vsel %vm2254_vm3, %v4481_v53, %v4482_v46 }
 0x3b9   : > { %v4575_v16 = vadd.f32 %v4483_v60, %v8689_v30 }
 0x3ba   : > { %v4920_v52 = vadd.f32 %v8696_v21, %v4574_v42  ;;  %v4377_v39 = vpop.f32.mrb[196].mxu1 }
 0x3bb   : > { %v4921_v33 = vadd.f32 %v8702_v1, %v4575_v16  ;;  %v4484_v25 = vrot.slane %v4377_v39, 3  ;;  %v4379_v26 = vpop.f32.mrb[197].mxu1 }
 0x3bc   : > { %v4964_v34 = vadd.f32 %v8961_v45, %v4920_v52  ;;  %v4486_v10 = vrot.slane %v4379_v26, 3  ;;  %v4381_v8 = vpop.f32.mrb[198].mxu1 }
 0x3bd   : > { %v4965_v20 = vadd.f32 %v8967_v14, %v4921_v33  ;;  %v4485_v53 = vsel %vm2254_vm3, %v4479_v12, %v4484_v25  ;;  %v4488_v30 = vrot.slane %v4381_v8, 3  ;;  %v4383_v60 = vpop.f32.mrb[199].mxu1 }
 0x3be   : > { %v4996_v17 = vmax.f32 %v4964_v34, 0.0  ;;  %v4576_v57 = vadd.f32 %v4485_v53, %v8693_v38  ;;  %v4487_v21 = vsel %vm2254_vm3, %v4482_v46, %v4486_v10  ;;  %v4490_v42 = vrot.slane %v4383_v60, 3 }
 0x3bf   : > { %v4997_v55 = vmax.f32 %v4965_v20, 0.0  ;;  %v4577_v1 = vadd.f32 %v4487_v21, %v8699_v59  ;;  %v4489_v16 = vsel %vm2254_vm3, %v4484_v25, %v4488_v30 }
 0x3c0   : > { %v4922_v26 = vadd.f32 %v8721_v56, %v4576_v57  ;;  %v4578_v52 = vadd.f32 %v4489_v16, %v8718_v35  ;;  %v4491_v12 = vsel %vm2254_vm3, %v4486_v10, %v4490_v42 }
 0x3c1   : > { %v5028_v39 = vmax.f32 %v4996_v17, %v4997_v55  ;;  %v4923_v33 = vadd.f32 %v8728_v50, %v4577_v1  ;;  %v4579_v38 = vadd.f32 %v4491_v12, %v8725_v43 }
 0x3c2   : > { %v4966_v46 = vadd.f32 %v8961_v45, %v4922_v26  ;;  %v4924_v20 = vadd.f32 %v8735_v13, %v4578_v52  ;;  %v4387_v34 = vpop.f32.mrb[200].mxu1 }
 0x3c3   : > { %5045 = vst.msk [vmem:[#allocation3] sm:$0xff] %vm5044_vm8, %v5028_v39  ;;  %v4967_v59 = vadd.f32 %v8967_v14, %v4923_v33  ;;  %v4925_v56 = vadd.f32 %v8742_v4, %v4579_v38  ;;  %v4492_v25 = vrot.slane %v4387_v34, 3  ;;  %v4389_v35 = vpop.f32.mrb[201].mxu1 }
 0x3c4   : > { %v4998_v8 = vmax.f32 %v4966_v46, 0.0  ;;  %v4968_v10 = vadd.f32 %v8961_v45, %v4924_v20  ;;  %v4494_v53 = vrot.slane %v4389_v35, 3  ;;  %v4391_v50 = vpop.f32.mrb[202].mxu1 }
 0x3c5   : > { %v4999_v60 = vmax.f32 %v4967_v59, 0.0  ;;  %v4969_v43 = vadd.f32 %v8967_v14, %v4925_v56  ;;  %v4493_v17 = vsel %vm2254_vm3, %v4488_v30, %v4492_v25  ;;  %v4496_v13 = vrot.slane %v4391_v50, 3  ;;  %v4393_v57 = vpop.f32.mrb[203].mxu1 }
 0x3c6   : > { %v5000_v21 = vmax.f32 %v4968_v10, 0.0  ;;  %v4580_v55 = vadd.f32 %v4493_v17, %v8732_v51  ;;  %v4495_v1 = vsel %vm2254_vm3, %v4490_v42, %v4494_v53  ;;  %v4498_v4 = vrot.slane %v4393_v57, 3 }
 0x3c7   : > { %v5029_v16 = vmax.f32 %v4998_v8, %v4999_v60  ;;  %v5001_v26 = vmax.f32 %v4969_v43, 0.0  ;;  %v4581_v52 = vadd.f32 %v4495_v1, %v8739_v5  ;;  %v4497_v12 = vsel %vm2254_vm3, %v4492_v25, %v4496_v13 }
 0x3c8   : > { %v4926_v39 = vadd.f32 %v8760_v47, %v4580_v55  ;;  %v4582_v33 = vadd.f32 %v4497_v12, %v8757_v41  ;;  %v4499_v30 = vsel %vm2254_vm3, %v4494_v53, %v4498_v4 }
 0x3c9   : > { %5046 = vst.msk [vmem:[#allocation3 + $0x8] sm:$0xff] %vm5044_vm8, %v5029_v16  ;;  %v5030_v38 = vmax.f32 %v5000_v21, %v5001_v26  ;;  %v4927_v51 = vadd.f32 %v8767_v0, %v4581_v52  ;;  %v4583_v42 = vadd.f32 %v4499_v30, %v8764_v24 }
 0x3ca   : > { %v4970_v46 = vadd.f32 %v8961_v45, %v4926_v39  ;;  %v4928_v20 = vadd.f32 %v8775_v3, %v4582_v33  ;;  %v4397_v5 = vpop.f32.mrb[204].mxu1 }
 0x3cb   : > { %5047 = vst.msk [vmem:[#allocation3 + $0x10] sm:$0xff] %vm5044_vm8, %v5030_v38  ;;  %v4971_v47 = vadd.f32 %v8967_v14, %v4927_v51  ;;  %v4929_v41 = vadd.f32 %v8785_v23, %v4583_v42  ;;  %v4500_v34 = vrot.slane %v4397_v5, 3  ;;  %v4399_v59 = vpop.f32.mrb[205].mxu1 }
 0x3cc   : > { %v5002_v56 = vmax.f32 %v4970_v46, 0.0  ;;  %v4972_v25 = vadd.f32 %v8961_v45, %v4928_v20  ;;  %v4502_v35 = vrot.slane %v4399_v59, 3  ;;  %v4401_v0 = vpop.f32.mrb[206].mxu1 }
 0x3cd   : > { %v5003_v8 = vmax.f32 %v4971_v47, 0.0  ;;  %v4973_v24 = vadd.f32 %v8967_v14, %v4929_v41  ;;  %v4501_v10 = vsel %vm2254_vm3, %v4496_v13, %v4500_v34  ;;  %v4504_v3 = vrot.slane %v4401_v0, 3  ;;  %v4403_v53 = vpop.f32.mrb[207].mxu1 }
 0x3ce   : > { %v5004_v50 = vmax.f32 %v4972_v25, 0.0  ;;  %v4584_v60 = vadd.f32 %v4501_v10, %v8772_v29  ;;  %v4503_v43 = vsel %vm2254_vm3, %v4498_v4, %v4502_v35  ;;  %v4506_v23 = vrot.slane %v4403_v53, 3 }
 0x3cf   : > { %v5031_v17 = vmax.f32 %v5002_v56, %v5003_v8  ;;  %v5005_v57 = vmax.f32 %v4973_v24, 0.0  ;;  %v4585_v21 = vadd.f32 %v4503_v43, %v8782_v27  ;;  %v4505_v55 = vsel %vm2254_vm3, %v4500_v34, %v4504_v3 }
 0x3d0   : > { %v4930_v1 = vadd.f32 %v8802_v36, %v4584_v60  ;;  %v4586_v16 = vadd.f32 %v4505_v55, %v8799_v28  ;;  %v4507_v13 = vsel %vm2254_vm3, %v4502_v35, %v4506_v23 }
 0x3d1   : > { %5048 = vst.msk [vmem:[#allocation3 + $0x18] sm:$0xff] %vm5044_vm8, %v5031_v17  ;;  %v5032_v26 = vmax.f32 %v5004_v50, %v5005_v57  ;;  %v4931_v29 = vadd.f32 %v8809_v54, %v4585_v21  ;;  %v4587_v4 = vadd.f32 %v4507_v13, %v8806_v61 }
 0x3d2   : > { %v4974_v52 = vadd.f32 %v8961_v45, %v4930_v1  ;;  %v4932_v12 = vadd.f32 %v8816_v18, %v4586_v16  ;;  %v4407_v27 = vpop.f32.mrb[208].mxu1 }
 0x3d3   : > { %5049 = vst.msk [vmem:[#allocation3 + $0x20] sm:$0xff] %vm5044_vm8, %v5032_v26  ;;  %v4975_v36 = vadd.f32 %v8967_v14, %v4931_v29  ;;  %v4933_v28 = vadd.f32 %v8822_v7, %v4587_v4  ;;  %v4508_v39 = vrot.slane %v4407_v27, 3  ;;  %v4409_v33 = vpop.f32.mrb[209].mxu1  ;;  %v9497_v4 = vld [vmem:[#allocation19_spill] sm:$0xff] }
 0x3d4   : > { %v5006_v30 = vmax.f32 %v4974_v52, 0.0  ;;  %v4976_v38 = vadd.f32 %v8961_v45, %v4932_v12  ;;  %v4510_v51 = vrot.slane %v4409_v33, 3  ;;  %v4411_v54 = vpop.f32.mrb[210].mxu1  ;;  %v9498_v33 = vld [vmem:[#allocation21_spill] sm:$0xff] }
 0x3d5   : > { %v5007_v42 = vmax.f32 %v4975_v36, 0.0  ;;  %v4977_v61 = vadd.f32 %v8967_v14, %v4933_v28  ;;  %v4509_v46 = vsel %vm2254_vm3, %v4504_v3, %v4508_v39  ;;  %v4512_v18 = vrot.slane %v4411_v54, 3  ;;  %v4413_v20 = vpop.f32.mrb[211].mxu1  ;;  %v9500_v54 = vld [vmem:[#allocation23_spill] sm:$0xff] }
 0x3d6   : > { %v5008_v5 = vmax.f32 %v4976_v38, 0.0  ;;  %v4588_v47 = vadd.f32 %v4509_v46, %v8813_v31  ;;  %v4511_v41 = vsel %vm2254_vm3, %v4506_v23, %v4510_v51  ;;  %v4514_v7 = vrot.slane %v4413_v20, 3  ;;  %v9501_v46 = vld [vmem:[#allocation35_spill] sm:$0xff] }
 0x3d7   : > { %v5033_v34 = vmax.f32 %v5006_v30, %v5007_v42  ;;  %v5009_v59 = vmax.f32 %v4977_v61, 0.0  ;;  %v4589_v56 = vadd.f32 %v4511_v41, %v8819_v6  ;;  %v4513_v25 = vsel %vm2254_vm3, %v4508_v39, %v4512_v18  ;;  %v9499_v30 = vld [vmem:[#allocation20_spill] sm:$0xff] }
 0x3d8   : > { %v4934_v35 = vadd.f32 %v8830_v9, %v4588_v47  ;;  %v4590_v0 = vadd.f32 %v4513_v25, %v8827_v63  ;;  %v4515_v8 = vsel %vm2254_vm3, %v4510_v51, %v4514_v7 }
 0x3d9   : > { %5050 = vst.msk [vmem:[#allocation3 + $0x28] sm:$0xff] %vm5044_vm8, %v5033_v34  ;;  %v5034_v24 = vmax.f32 %v5008_v5, %v5009_v59  ;;  %v4935_v31 = vadd.f32 %v8837_v2, %v4589_v56  ;;  %v4591_v10 = vadd.f32 %v4515_v8, %v8834_v49  ;;  %v9502_v8 = vld [vmem:[#allocation22_spill] sm:$0xff] }
 0x3da   : > { %v4978_v3 = vadd.f32 %v8961_v45, %v4934_v35  ;;  %v4936_v53 = vadd.f32 %v8844_v11, %v4590_v0  ;;  %v4417_v6 = vpop.f32.mrb[212].mxu1 }
 0x3db   : > { %5051 = vst.msk [vmem:[#allocation3 + $0x30] sm:$0xff] %vm5044_vm8, %v5034_v24  ;;  %v4979_v9 = vadd.f32 %v8967_v14, %v4935_v31  ;;  %v4937_v63 = vadd.f32 %v8850_v44, %v4591_v10  ;;  %v4516_v50 = vrot.slane %v4417_v6, 3  ;;  %v4419_v60 = vpop.f32.mrb[213].mxu1  ;;  %v9503_v6 = vld [vmem:[#allocation24_spill] sm:$0xff] }
 0x3dc   : > { %v5010_v43 = vmax.f32 %v4978_v3, 0.0  ;;  %v4980_v23 = vadd.f32 %v8961_v45, %v4936_v53  ;;  %v4518_v17 = vrot.slane %v4419_v60, 3  ;;  %v4421_v2 = vpop.f32.mrb[214].mxu1 }
 0x3dd   : > { %v5011_v57 = vmax.f32 %v4979_v9, 0.0  ;;  %v4981_v49 = vadd.f32 %v8967_v14, %v4937_v63  ;;  %v4517_v21 = vsel %vm2254_vm3, %v4512_v18, %v4516_v50  ;;  %v4520_v11 = vrot.slane %v4421_v2, 3  ;;  %v4423_v55 = vpop.f32.mrb[215].mxu1 }
 0x3de   : > { %v5012_v1 = vmax.f32 %v4980_v23, 0.0  ;;  %v4592_v16 = vadd.f32 %v4517_v21, %v8841_v48  ;;  %v4519_v13 = vsel %vm2254_vm3, %v4514_v7, %v4518_v17  ;;  %v4522_v44 = vrot.slane %v4423_v55, 3 }
 0x3df   : > { %v5035_v26 = vmax.f32 %v5010_v43, %v5011_v57  ;;  %v5013_v29 = vmax.f32 %v4981_v49, 0.0  ;;  %v4593_v52 = vadd.f32 %v4519_v13, %v9497_v4  ;;  %v4521_v12 = vsel %vm2254_vm3, %v4516_v50, %v4520_v11  ;;  %v9505_v49 = vld [vmem:[#allocation36_spill] sm:$0xff] }
 0x3e0   : > { %v4938_v27 = vadd.f32 %v8858_v40, %v4592_v16  ;;  %v4594_v36 = vadd.f32 %v4521_v12, %v8855_v62  ;;  %v4523_v28 = vsel %vm2254_vm3, %v4518_v17, %v4522_v44  ;;  %v9504_v17 = vld [vmem:[#allocation26_spill] sm:$0xff] }
 0x3e1   : > { %5052 = vst.msk [vmem:[#allocation3 + $0x38] sm:$0xff] %vm5044_vm8, %v5035_v26  ;;  %v5036_v39 = vmax.f32 %v5012_v1, %v5013_v29  ;;  %v4939_v48 = vadd.f32 %v9498_v33, %v4593_v52  ;;  %v4595_v38 = vadd.f32 %v4523_v28, %v9499_v30  ;;  %v9507_v26 = vld [vmem:[#allocation29_spill] sm:$0xff] }
 0x3e2   : > { %v4982_v51 = vadd.f32 %v8961_v45, %v4938_v27  ;;  %v4940_v42 = vadd.f32 %v9500_v54, %v4594_v36  ;;  %v4427_v61 = vpop.f32.mrb[216].mxu1  ;;  %v9509_v54 = vld [vmem:[#allocation28_spill] sm:$0xff] }
 0x3e3   : > { %5053 = vst.msk [vmem:[#allocation3 + $0x40] sm:$0xff] %vm5044_vm8, %v5036_v39  ;;  %v4983_v40 = vadd.f32 %v8967_v14, %v4939_v48  ;;  %v4941_v62 = vadd.f32 %v9501_v46, %v4595_v38  ;;  %v4524_v18 = vrot.slane %v4427_v61, 3  ;;  %v4429_v20 = vpop.f32.mrb[217].mxu1  ;;  %v9508_v48 = vld [vmem:[#allocation27_spill] sm:$0xff] }
 0x3e4   : > { %v5014_v5 = vmax.f32 %v4982_v51, 0.0  ;;  %v4984_v47 = vadd.f32 %v8961_v45, %v4940_v42  ;;  %v4526_v41 = vrot.slane %v4429_v20, 3  ;;  %v4431_v7 = vpop.f32.mrb[218].mxu1 }
 0x3e5   : > { %v5015_v34 = vmax.f32 %v4983_v40, 0.0  ;;  %v4985_v59 = vadd.f32 %v8967_v14, %v4941_v62  ;;  %v4525_v56 = vsel %vm2254_vm3, %v4520_v11, %v4524_v18  ;;  %v4528_v25 = vrot.slane %v4431_v7, 3  ;;  %v4433_v35 = vpop.f32.mrb[219].mxu1  ;;  %v9506_v11 = vld [vmem:[#allocation25_spill] sm:$0xff] }
 0x3e6   : > { %v5016_v0 = vmax.f32 %v4984_v47, 0.0  ;;  %v4596_v24 = vadd.f32 %v4525_v56, %v9502_v8  ;;  %v4527_v31 = vsel %vm2254_vm3, %v4522_v44, %v4526_v41  ;;  %v4530_v10 = vrot.slane %v4433_v35, 3 }
 0x3e7   : > { %v5037_v3 = vmax.f32 %v5014_v5, %v5015_v34  ;;  %v5017_v53 = vmax.f32 %v4985_v59, 0.0  ;;  %v4597_v9 = vadd.f32 %v4527_v31, %v9503_v6  ;;  %v4529_v63 = vsel %vm2254_vm3, %v4524_v18, %v4528_v25  ;;  %v9510_v18 = vld [vmem:[#allocation31_spill] sm:$0xff]  ;;  %v9513_v31 = vld [vmem:[#allocation32_spill] sm:$0xff] }
 0x3e8   : > { %v4942_v50 = vadd.f32 %v8886_v22, %v4596_v24  ;;  %v4598_v60 = vadd.f32 %v4529_v63, %v8883_v58  ;;  %v4531_v43 = vsel %vm2254_vm3, %v4526_v41, %v4530_v10  ;;  %v9511_v47 = vrot.slane %v8916_v32, 4 }
 0x3e9   : > { %5054 = vst.msk [vmem:[#allocation3 + $0x48] sm:$0xff] %vm5044_vm8, %v5037_v3  ;;  %v5038_v23 = vmax.f32 %v5016_v0, %v5017_v53  ;;  %v4943_v2 = vadd.f32 %v9504_v17, %v4597_v9  ;;  %v4599_v55 = vadd.f32 %v4531_v43, %v9506_v11  ;;  %v9514_v53 = vld [vmem:[#allocation34_spill] sm:$0xff] }
 0x3ea   : > { %v4986_v57 = vadd.f32 %v8961_v45, %v4942_v50  ;;  %v4944_v21 = vadd.f32 %v9505_v49, %v4598_v60  ;;  %v4437_v1 = vpop.f32.mrb[220].mxu1  ;;  %v4918_v41 = vsel %vm2841_vm5, %v9511_v47, 0.0  ;;  %v9515_v9 = vld [vmem:[#allocation30_spill] sm:$0xff]  ;;  %v9517_v60 = vld [vmem:[#allocation9_spill] sm:$0xff] }
 0x3eb   : > { %5055 = vst.msk [vmem:[#allocation3 + $0x50] sm:$0xff] %vm5044_vm8, %v5038_v23  ;;  %v4987_v22 = vadd.f32 %v8967_v14, %v4943_v2  ;;  %v4532_v16 = vrot.slane %v4437_v1, 3  ;;  %v4439_v58 = vpop.f32.mrb[221].mxu1  ;;  %v4945_v29 = vadd.f32 %v9507_v26, %v4599_v55  ;;  %v9516_v63 = vrot.slane %v9515_v9, 4 }
 0x3ec   : > { %v5018_v13 = vmax.f32 %v4986_v57, 0.0  ;;  %v4988_v44 = vadd.f32 %v8961_v45, %v4944_v21  ;;  %v4534_v4 = vrot.slane %v4439_v58, 3  ;;  %v4441_v52 = vpop.f32.mrb[222].mxu1  ;;  %v5097_v58 = vld [vmem:[#allocation3 + $0x3] ss:$16 sm:$0x3] }
 0x3ed   : > { %v5019_v12 = vmax.f32 %v4987_v22, 0.0  ;;  %v4533_v27 = vsel %vm2254_vm3, %v4528_v25, %v4532_v16  ;;  %v4536_v36 = vrot.slane %v4441_v52, 3  ;;  %v4443_v28 = vpop.f32.mrb[223].mxu1  ;;  %v4989_v33 = vadd.f32 %v8967_v14, %v4945_v29  ;;  %v9512_v25 = vld [vmem:[#allocation33_spill] sm:$0xff] }
 0x3ee   : > { %v5020_v39 = vmax.f32 %v4988_v44, 0.0  ;;  %v4600_v30 = vadd.f32 %v4533_v27, %v9508_v48  ;;  %v4535_v38 = vsel %vm2254_vm3, %v4530_v10, %v4534_v4  ;;  %v4538_v34 = vrot.slane %v4443_v28, 3  ;;  %v5089_v22 = vld [vmem:[#allocation3 + $0x2] ss:$16 sm:$0x3] }
 0x3ef   : > { %v5039_v51 = vmax.f32 %v5018_v13, %v5019_v12  ;;  %v4601_v42 = vadd.f32 %v4535_v38, %v9509_v54  ;;  %v4537_v61 = vsel %vm2254_vm3, %v4532_v16, %v4536_v36  ;;  %v4572_v40 = vsel %vm2254_vm3, %v4536_v36, 0.0  ;;  %v5090_v16 = vld [vmem:[#allocation3 + $0x2] ss:$16 sm:$0xc] }
 0x3f0   : > { %v5021_v46 = vmax.f32 %v4989_v33, 0.0  ;;  %v4946_v62 = vadd.f32 %v8925_v19, %v4600_v30  ;;  %v4602_v20 = vadd.f32 %v4537_v61, %v9510_v18  ;;  %v4604_v5 = vadd.f32 %v4572_v40, %v8940_v37  ;;  %v5098_v13 = vld [vmem:[#allocation3 + $0x3] ss:$16 sm:$0xc] }
 0x3f1   : > { %5056 = vst.msk [vmem:[#allocation3 + $0x58] sm:$0xff] %vm5044_vm8, %v5039_v51  ;;  %v4947_v7 = vadd.f32 %v8934_v15, %v4601_v42  ;;  %v4539_v8 = vsel %vm2254_vm3, %v4534_v4, %v4538_v34  ;;  %v4573_v37 = vsel %vm2254_vm3, %v4538_v34, 0.0  ;;  %v4919_v50 = vsel %vm2841_vm5, %v9516_v63, 0.0  ;;  %v5470_v44 = vld [vmem:[#allocation3 + $0x8] ss:$16 sm:$0x3] }
 0x3f2   : > { %v5040_v59 = vmax.f32 %v5020_v39, %v5021_v46  ;;  %v4990_v56 = vadd.f32 %v8961_v45, %v4946_v62  ;;  %v4948_v35 = vadd.f32 %v9512_v25, %v4602_v20  ;;  %v4950_v0 = vadd.f32 %v4918_v41, %v4604_v5  ;;  %v5478_v26 = vld [vmem:[#allocation3 + $0x9] ss:$16 sm:$0x3]  ;;  %v5471_v29 = vld [vmem:[#allocation3 + $0x8] ss:$16 sm:$0xc] }
 0x3f3   : > { %v4991_v19 = vadd.f32 %v8967_v14, %v4947_v7  ;;  %v4603_v15 = vadd.f32 %v4539_v8, %v9513_v31  ;;  %v4605_v6 = vadd.f32 %v4573_v37, %v9514_v53  ;;  %v5479_v4 = vld [vmem:[#allocation3 + $0x9] ss:$16 sm:$0xc]  ;;  %v5092_v52 = vld [vmem:[#allocation3 + $0x2] ss:$16 sm:$0x30]  ;;  %v5091_v36 = vor.u32 %v5090_v16, %v5089_v22 }
 0x3f4   : > { %5057 = vst.msk [vmem:[#allocation3 + $0x60] sm:$0xff] %vm5044_vm8, %v5040_v59  ;;  %v5022_v32 = vmax.f32 %v4990_v56, 0.0  ;;  %v4992_v24 = vadd.f32 %v8961_v45, %v4948_v35  ;;  %v4994_v3 = vadd.f32 %v8961_v45, %v4950_v0  ;;  %v5100_v12 = vld [vmem:[#allocation3 + $0x3] ss:$16 sm:$0x30]  ;;  %v5099_v28 = vor.u32 %v5098_v13, %v5097_v58  ;;  %v6719_v59 = vld [vmem:[%s9306_s5 + $0x8] sm:$0xff]  }
 0x3f5   : > { %v5023_v10 = vmax.f32 %v4991_v19, 0.0  ;;  %v4949_v43 = vadd.f32 %v9517_v60, %v4603_v15  ;;  %v4951_v17 = vadd.f32 %v4919_v50, %v4605_v6  ;;  %v5472_v39 = vor.u32 %v5471_v29, %v5470_v44  ;;  %v6718_v41 = vld [vmem:[%s9306_s5] sm:$0xff]   ;;  %v6720_v25 = vld [vmem:[%s9306_s5 + $0x10] sm:$0xff]   ;;  %v6721_v6 = vld [vmem:[%s9306_s5 + $0x18] sm:$0xff]  }
 0x3f6   : > { %v5024_v2 = vmax.f32 %v4992_v24, 0.0  ;;  %v5026_v49 = vmax.f32 %v4994_v3, 0.0  ;;  %v5480_v33 = vor.u32 %v5479_v4, %v5478_v26  ;;  %v5093_v48 = vor.u32 %v5092_v52, %v5091_v36  ;;  %v5062_v35 = vld [vmem:[#allocation3] ss:$16 sm:$0xc]  ;;  %v6726_v26 = vld [vmem:[%s9306_s5 + $0x68] sm:$0xff]  }
 0x3f7   : > { %v5041_v23 = vmax.f32 %v5022_v32, %v5023_v10  ;;  %v4993_v57 = vadd.f32 %v8967_v14, %v4949_v43  ;;  %v4995_v21 = vadd.f32 %v8967_v14, %v4951_v17  ;;  %v5101_v30 = vor.u32 %v5100_v12, %v5099_v28  ;;  %v5070_v0 = vld [vmem:[#allocation3 + $0x1] ss:$16 sm:$0xc]  ;;  %v5061_v19 = vld [vmem:[#allocation3] ss:$16 sm:$0x3] }
 0x3f8   : > { %v5473_v27 = vld [vmem:[#allocation3 + $0x8] ss:$16 sm:$0x30]  ;;  %v5481_v14 = vld [vmem:[#allocation3 + $0x9] ss:$16 sm:$0x30]  ;;  %v5063_v24 = vor.u32 %v5062_v35, %v5061_v19 }
 0x3f9   : > { %5058 = vst.msk [vmem:[#allocation3 + $0x68] sm:$0xff] %vm5044_vm8, %v5041_v23  ;;  %v5025_v11 = vmax.f32 %v4993_v57, 0.0  ;;  %v5027_v45 = vmax.f32 %v4995_v21, 0.0  ;;  %v5474_v38 = vor.u32 %v5473_v27, %v5472_v39  ;;  %v5482_v51 = vor.u32 %v5481_v14, %v5480_v33  ;;  %v5069_v8 = vld [vmem:[#allocation3 + $0x1] ss:$16 sm:$0x3] }
 0x3fa   : > { %v9518_v56 = vmov 0.0   ;;  %v5064_v37 = vld [vmem:[#allocation3] ss:$16 sm:$0x30]  ;;  %v5071_v31 = vor.u32 %v5070_v0, %v5069_v8  ;;  %v6724_v17 = vld [vmem:[%s9306_s5 + $0x58] sm:$0xff]   ;;  %v6730_v28 = vld [vmem:[%s9306_s5 + $0x88] sm:$0xff]  }
 0x3fb   : > { %v5042_v55 = vmax.f32 %v5024_v2, %v5025_v11  ;;  %v5043_v1 = vmax.f32 %v5026_v49, %v5027_v45  ;;  %v5072_v32 = vld [vmem:[#allocation3 + $0x1] ss:$16 sm:$0x30]  ;;  %v5065_v3 = vor.u32 %v5064_v37, %v5063_v24  ;;  %v5265_v57 = vld [vmem:[#allocation3 + $0x4] ss:$16 sm:$0xc] }
 0x3fc   : > { %v5073_v53 = vor.u32 %v5072_v32, %v5071_v31  ;;  %v6722_v50 = vld [vmem:[%s9306_s5 + $0x20] sm:$0xff]   ;;  %v6723_v43 = vld [vmem:[%s9306_s5 + $0x50] sm:$0xff]   ;;  %v6728_v27 = vld [vmem:[%s9306_s5 + $0x78] sm:$0xff]  }
 0x3fd   : > { %5059 = vst.msk [vmem:[#allocation3 + $0x70] sm:$0xff] %vm5044_vm8, %v5042_v55  ;;  %5060 = vst.msk [vmem:[#allocation3 + $0x78] sm:$0xff] %vm5044_vm8, %v5043_v1  ;;  %v6725_v2 = vld [vmem:[%s9306_s5 + $0x60] sm:$0xff]   ;;  %v6727_v52 = vld [vmem:[%s9306_s5 + $0x70] sm:$0xff]  }
 0x3fe   : > { %v5273_v49 = vld [vmem:[#allocation3 + $0x5] ss:$16 sm:$0xc]  ;;  %v5264_v21 = vld [vmem:[#allocation3 + $0x4] ss:$16 sm:$0x3] }
 0x3ff   : > { %v5272_v11 = vld [vmem:[#allocation3 + $0x5] ss:$16 sm:$0x3]  ;;  %v5267_v45 = vld [vmem:[#allocation3 + $0x4] ss:$16 sm:$0x30]  ;;  %v5266_v1 = vor.u32 %v5265_v57, %v5264_v21 }
 0x400   : > { %v5275_v55 = vld [vmem:[#allocation3 + $0x5] ss:$16 sm:$0x30]  ;;  %v5274_v22 = vor.u32 %v5273_v49, %v5272_v11  ;;  %v5368_v39 = vld [vmem:[#allocation3 + $0x6] ss:$16 sm:$0xc] }
 0x401   : > { %v5268_v13 = vor.u32 %v5267_v45, %v5266_v1  ;;  %v6729_v36 = vld [vmem:[%s9306_s5 + $0x80] sm:$0xff]   ;;  %v6736_v35 = vld [vmem:[%s9308_s7 + $0x18] sm:$0xff]   ;;  %v6738_v19 = vld [vmem:[%s9308_s7 + $0x28] sm:$0xff]  }
 0x402   : > { %v5276_v44 = vor.u32 %v5275_v55, %v5274_v22  ;;  %v5376_v33 = vld [vmem:[#allocation3 + $0x7] ss:$16 sm:$0xc]  ;;  %v6740_v37 = vld [vmem:[%s9308_s7 + $0x38] ss:$0 sps:$4 sm:$0xff]   ;;  %v6742_v24 = vld [vmem:[%s9310_s9 + $0x8] sm:$0xff]  }
 0x403   : > { %v6737_v0 = vld [vmem:[%s9308_s7 + $0x20] sm:$0xff]   ;;  %v6739_v8 = vld [vmem:[%s9308_s7 + $0x30] sm:$0xff]   ;;  %v5654_v31 = vsel %vm2841_vm5, %v6740_v37, 0 }
 0x404   : > { %v5094_v54 = vld [vmem:[#allocation3 + $0x2] ss:$16 sm:$0xc0]  ;;  %v5102_v42 = vld [vmem:[#allocation3 + $0x3] ss:$16 sm:$0xc0] }
 0x405   : > { %v5475_v61 = vld [vmem:[#allocation3 + $0x8] ss:$16 sm:$0xc0]  ;;  %v5483_v40 = vld [vmem:[#allocation3 + $0x9] ss:$16 sm:$0xc0]  ;;  %v5095_v46 = vor.u32 %v5094_v54, %v5093_v48  ;;  %v5103_v62 = vor.u32 %v5102_v42, %v5101_v30 }
 0x406   : > { %v5476_v18 = vor.u32 %v5475_v61, %v5474_v38  ;;  %v5484_v20 = vor.u32 %v5483_v40, %v5482_v51  ;;  %v5066_v15 = vld [vmem:[#allocation3] ss:$16 sm:$0xc0]  ;;  %v5074_v10 = vld [vmem:[#allocation3 + $0x1] ss:$16 sm:$0xc0] }
 0x407   : > { %v5104_v5 = vmax.f32 %v5095_v46, %v5103_v62  ;;  %v5067_v9 = vor.u32 %v5066_v15, %v5065_v3  ;;  %v5075_v63 = vor.u32 %v5074_v10, %v5073_v53  ;;  %v5269_v16 = vld [vmem:[#allocation3 + $0x4] ss:$16 sm:$0xc0]  ;;  %v5277_v58 = vld [vmem:[#allocation3 + $0x5] ss:$16 sm:$0xc0] }
 0x408   : > { %v5485_v47 = vmax.f32 %v5476_v18, %v5484_v20  ;;  %v5270_v29 = vor.u32 %v5269_v16, %v5268_v13  ;;  %v5278_v4 = vor.u32 %v5277_v58, %v5276_v44  ;;  %v5367_v48 = vld [vmem:[#allocation3 + $0x6] ss:$16 sm:$0x3]  ;;  %v5375_v30 = vld [vmem:[#allocation3 + $0x7] ss:$16 sm:$0x3] }
 0x409   : > { %v5105_v7 = vpack.c.bf16 %v5104_v5, %v5104_v5  ;;  %v5076_v60 = vmax.f32 %v5067_v9, %v5075_v63  ;;  %v5370_v38 = vld [vmem:[#allocation3 + $0x6] ss:$16 sm:$0x30]  ;;  %v5378_v51 = vld [vmem:[#allocation3 + $0x7] ss:$16 sm:$0x30]  ;;  %v5369_v54 = vor.u32 %v5368_v39, %v5367_v48  ;;  %v5377_v42 = vor.u32 %v5376_v33, %v5375_v30 }
 0x40a   : > { %v5486_v34 = vpack.c.bf16 %v5485_v47, %v5485_v47  ;;  %v5279_v12 = vmax.f32 %v5270_v29, %v5278_v4  ;;  %v5372_v61 = vld [vmem:[#allocation3 + $0x6] ss:$16 sm:$0xc0]  ;;  %v5380_v40 = vld [vmem:[#allocation3 + $0x7] ss:$16 sm:$0xc0] }
 0x40b   : > { %6380 = vmatmul.mubr.msk.bf16.vlgmr.msra.gmra.mrb[224].mxu1 %vm5044_vm8, %v5105_v7  ;;  %v5077_v23 = vpack.c.bf16 %v5076_v60, %v5076_v60  ;;  %v5371_v46 = vor.u32 %v5370_v38, %v5369_v54  ;;  %v5379_v62 = vor.u32 %v5378_v51, %v5377_v42  ;;  %v6731_v18 = vld [vmem:[%s9306_s5 + $0x90] sm:$0xff]   ;;  %v6732_v47 = vld [vmem:[%s9306_s5 + $0x98] sm:$0xff]   ;;  %v6741_v32 = vld [vmem:[%s9310_s9] sm:$0xff]  }
 0x40c   : > { %6384 = vmatpush3.bf16.msra.mxu1 %v6718_v41  ;;  %6436 = vmatmul.mubr.msk.bf16.vlgmr.msra.gmra.mrb[0].mxu0 %vm5044_vm8, %v5486_v34  ;;  %v5280_v14 = vpack.c.bf16 %v5279_v12, %v5279_v12  ;;  %v6733_v34 = vld [vmem:[%s9308_s7] sm:$0xff]   ;;  %v6743_v15 = vld [vmem:[%s9310_s9 + $0x10] sm:$0xff]   ;;  %v6744_v10 = vld [vmem:[%s9310_s9 + $0x18] sm:$0xff]  }
 0x40d   : > { %6385 = vmatprep.subr.bf16.mxu1 %v9518_v56  ;;  %6393 = vmatprep.mubr.msk.bf16.mxu1 %vm6817_vm7, %v9518_v56  ;;  %v5373_v20 = vor.u32 %v5372_v61, %v5371_v46  ;;  %v5381_v5 = vor.u32 %v5380_v40, %v5379_v62  ;;  %v6300_v13 = vld [vmem:[%s9307_s6] ss:$0 sm:$0xff] }
 0x40e   : > { %6471 = vmatprep.mubr.msk.bf16.mxu0 %vm6817_vm7, %v9518_v56  ;;  %6460 = vmatpush3.bf16.msra.mxu0 %v6741_v32 }
 0x40f   : > { %v5382_v41 = vmax.f32 %v5373_v20, %v5381_v5  ;;  %6461 = vmatprep.subr.bf16.mxu0 %v9518_v56 }
 0x410   : > { %6386 = vmatpush3.bf16.msra.mxu1 %v6719_v59  ;;  %v6734_v59 = vld [vmem:[%s9308_s7 + $0x8] sm:$0xff]  }
 0x411   : > { %6387 = vmatprep.subr.bf16.mxu1 %v9518_v56  ;;  %v5383_v7 = vpack.c.bf16 %v5382_v41, %v5382_v41 }
 0x412   : > { %6462 = vmatpush3.bf16.msra.mxu0 %v6742_v24 }
 0x413   : > { %6463 = vmatprep.subr.bf16.mxu0 %v9518_v56 }
 0x414   : > { %6388 = vmatpush3.bf16.msra.mxu1 %v6720_v25  ;;  %v6735_v25 = vld [vmem:[%s9308_s7 + $0x10] sm:$0xff]  }
 0x415   : > { %6389 = vmatprep.subr.bf16.mxu1 %v9518_v56 }
 0x416   : > { %6464 = vmatpush3.bf16.msra.mxu0 %v6743_v15 }
 0x417   : > { %6465 = vmatprep.subr.bf16.mxu0 %v9518_v56 }
 0x418   : > { %6390 = vmatpush3.bf16.msra.mxu1 %v6721_v6 }
 0x419   : > { %6391 = vmatprep.subr.bf16.mxu1 %v9518_v56 }
 0x41a   : > { %6466 = vmatpush3.bf16.msra.mxu0 %v6744_v10 }
 0x41b   : > { %6467 = vmatprep.subr.bf16.mxu0 %v9518_v56 }
 0x41c   : > { %6392 = vmatpush3.bf16.msra.mxu1 %v6722_v50 }
 0x41d   : > { %6397 = vmatprep.subr.bf16.mxu1 %v9518_v56 }
 0x41f   : > { %6394 = vmatmul.mubr.msk.bf16.vlgmr.msra.gmra.mrb[228].mxu1 %vm5044_vm8, %v5077_v23 }
 0x420   : > { %6398 = vmatpush3.bf16.msra.mxu1 %v6723_v43  ;;  %6407 = vmatprep.mubr.msk.bf16.mxu1 %vm6817_vm7, %v9518_v56 }
 0x421   : > { %6399 = vmatprep.subr.bf16.mxu1 %v9518_v56 }
 0x424   : > { %6400 = vmatpush3.bf16.msra.mxu1 %v6724_v17 }
 0x425   : > { %6401 = vmatprep.subr.bf16.mxu1 %v9518_v56 }
 0x428   : > { %6402 = vmatpush3.bf16.msra.mxu1 %v6725_v2 }
 0x429   : > { %6403 = vmatprep.subr.bf16.mxu1 %v9518_v56 }
 0x42c   : > { %6404 = vmatpush3.bf16.msra.mxu1 %v6726_v26 }
 0x42d   : > { %6405 = vmatprep.subr.bf16.mxu1 %v9518_v56 }
 0x430   : > { %6406 = vmatpush3.bf16.msra.mxu1 %v6727_v52 }
 0x431   : > { %6411 = vmatprep.subr.bf16.mxu1 %v9518_v56 }
 0x433   : > { %6408 = vmatmul.mubr.msk.bf16.vlgmr.msra.gmra.mrb[232].mxu1 %vm5044_vm8, %v5280_v14  ;;  %v6746_v14 = vld [vmem:[%s9310_s9 + $0x28] ss:$0 sps:$4 sm:$0x33]  }
 0x434   : > { %6412 = vmatpush3.bf16.msra.mxu1 %v6728_v27  ;;  %6421 = vmatprep.mubr.msk.bf16.mxu1 %vm6817_vm7, %v9518_v56  ;;  %v6745_v27 = vld [vmem:[%s9310_s9 + $0x20] sm:$0xff]  }
 0x435   : > { %6413 = vmatprep.subr.bf16.mxu1 %v9518_v56  ;;  %6468 = vmatpush3.bf16.msra.mxu0 %v6745_v27 }
 0x436   : > { %6469 = vmatprep.subr.bf16.mxu0 %v9518_v56 }
 0x438   : > { %6414 = vmatpush3.bf16.msra.mxu1 %v6729_v36  ;;  %v5753_v36 = vsel %vm3492_vm4, %v6746_v14, 0 }
 0x439   : > { %6415 = vmatprep.subr.bf16.mxu1 %v9518_v56  ;;  %6470 = vmatpush3.bf16.msra.mxu0 %v5753_v36 }
 0x43c   : > { %6416 = vmatpush3.bf16.msra.mxu1 %v6730_v28  ;;  %v6301_v28 = vld [vmem:[%s9309_s8] ss:$0 sm:$0xff] }
 0x43d   : > { %6417 = vmatprep.subr.bf16.mxu1 %v9518_v56 }
 0x440   : > { %6418 = vmatpush3.bf16.msra.mxu1 %v6731_v18 }
 0x441   : > { %6419 = vmatprep.subr.bf16.mxu1 %v9518_v56 }
 0x444   : > { %6420 = vmatpush3.bf16.msra.mxu1 %v6732_v47 }
 0x445   : > { %6439 = vmatprep.subr.bf16.mxu1 %v9518_v56 }
 0x447   : > { %6422 = vmatmul.mubr.msk.bf16.vlgmr.msra.gmra.mrb[236].mxu1 %vm5044_vm8, %v5383_v7 }
 0x448   : > { %6455 = vmatprep.mubr.msk.bf16.mxu1 %vm6817_vm7, %v9518_v56  ;;  %6440 = vmatpush3.bf16.msra.mxu1 %v6733_v34 }
 0x449   : > { %6441 = vmatprep.subr.bf16.mxu1 %v9518_v56 }
 0x44c   : > { %6442 = vmatpush3.bf16.msra.mxu1 %v6734_v59 }
 0x44d   : > { %6443 = vmatprep.subr.bf16.mxu1 %v9518_v56 }
 0x450   : > { %6444 = vmatpush3.bf16.msra.mxu1 %v6735_v25 }
 0x451   : > { %6445 = vmatprep.subr.bf16.mxu1 %v9518_v56 }
 0x454   : > { %6446 = vmatpush3.bf16.msra.mxu1 %v6736_v35 }
 0x455   : > { %6447 = vmatprep.subr.bf16.mxu1 %v9518_v56 }
 0x458   : > { %6448 = vmatpush3.bf16.msra.mxu1 %v6737_v0 }
 0x459   : > { %6449 = vmatprep.subr.bf16.mxu1 %v9518_v56 }
 0x45c   : > { %6450 = vmatpush3.bf16.msra.mxu1 %v6738_v19 }
 0x45d   : > { %6451 = vmatprep.subr.bf16.mxu1 %v9518_v56 }
 0x460   : > { %6452 = vmatpush3.bf16.msra.mxu1 %v6739_v8 }
 0x461   : > { %6453 = vmatprep.subr.bf16.mxu1 %v9518_v56  ;;  %v6311_v56 = vld [vmem:[%s9311_s10] ss:$0 sm:$0xff] }
 0x464   : > { %6454 = vmatpush3.bf16.msra.mxu1 %v5654_v31 }
 0x4de   : > { %v5184_v3 = vpop.f32.mrb[224].mxu1 }
 0x4df   : > { %v5565_v53 = vpop.f32.mrb[0].mxu0  ;;  %v6381_v6 = vpop.f32.mrb[225].mxu1 }
 0x4e0   : > { %v6437_v9 = vpop.f32.mrb[1].mxu0  ;;  %v5187_v63 = vpop.f32.mrb[226].mxu1 }
 0x4e1   : > { %v5568_v50 = vpop.f32.mrb[2].mxu0  ;;  %v6382_v60 = vpop.f32.mrb[227].mxu1 }
 0x4e2   : > { %v6438_v43 = vpop.f32.mrb[3].mxu0 }
 0x4f2   : > { %v5257_v23 = vpop.f32.mrb[228].mxu1 }
 0x4f3   : > { %v5258_v17 = vadd.f32 %v5257_v23, %v5184_v3  ;;  %v6395_v2 = vpop.f32.mrb[229].mxu1 }
 0x4f4   : > { %v5260_v57 = vpop.f32.mrb[230].mxu1 }
 0x4f5   : > { %v6396_v49 = vpop.f32.mrb[231].mxu1 }
 0x506   : > { %v5359_v21 = vpop.f32.mrb[232].mxu1 }
 0x507   : > { %v5365_v11 = vadd.f32 %v5359_v21, %v5258_v17  ;;  %v6409_v45 = vpop.f32.mrb[233].mxu1 }
 0x508   : > { %v5362_v55 = vpop.f32.mrb[234].mxu1 }
 0x509   : > { %v6410_v1 = vpop.f32.mrb[235].mxu1 }
 0x51a   : > { %v5462_v22 = vpop.f32.mrb[236].mxu1 }
 0x51b   : > { %v5468_v16 = vadd.f32 %v5462_v22, %v5365_v11  ;;  %v6423_v58 = vpop.f32.mrb[237].mxu1 }
 0x51c   : > { %v5465_v44 = vpop.f32.mrb[238].mxu1 }
 0x51d   : > { %v5571_v26 = vadd.f32 %v5565_v53, %v5468_v16  ;;  %v6424_v29 = vpop.f32.mrb[239].mxu1 }
 0x51f   : > { %v5579_v4 = vadd.f32 %v6300_v13, %v5571_v26 }
 0x521   : > { %v5580_v52 = vmax.f32 %v5579_v4, 0.0 }
 0x523   : > { %v5581_v12 = vpack.c.bf16 %v5580_v52, %v5580_v52 }
 0x525   : > { %6456 = vmatmul.mubr.msk.bf16.vlgmr.msra.gmra.mrb[240].mxu1 %vm5649_vm9, %v5581_v12 }
 0x5f8   : > { %v5690_v39 = vpop.f32.mrb[240].mxu1 }
 0x5f9   : > { %v5691_v33 = vadd.f32 %v6301_v28, %v5690_v39  ;;  %v6457_v48 = vpop.f32.mrb[241].mxu1 }
 0x5fa   : > { %v5693_v30 = vpop.f32.mrb[242].mxu1 }
 0x5fb   : > { %v5696_v38 = vmax.f32 %v5691_v33, 0.0  ;;  %v6458_v51 = vpop.f32.mrb[243].mxu1 }
 0x5fd   : > { %v5697_v54 = vpack.c.bf16 %v5696_v38, %v5696_v38 }
 0x5ff   : > { %6472 = vmatmul.mubr.msk.bf16.vlgmr.msra.gmra.mrb[4].mxu0 %vm3270_vm6, %v5697_v54 }
 0x6d2   : > { %v5789_v42 = vpop.f32.mrb[4].mxu0 }
 0x6d3   : > { %v5790_v61 = vadd.f32 %v6311_v56, %v5789_v42  ;;  %v6473_v40 = vpop.f32.mrb[5].mxu0 }
 0x6d4   : > { %v5792_v46 = vpop.f32.mrb[6].mxu0 }
 0x6d5   : > { %v6474_v62 = vpop.f32.mrb[7].mxu0  ;;  %5796 = vst.msk [vmem:[%s380_s22] sm:$0xff] %vm5795_vm10, %v5790_v61 }
 0x6d6   : > { %6764 = shalt.err (!%p6761_p3)
}
 0x6d7   : > { %s6765_s26 = scalar_lea.hbm %s9259_s25, 128  ;;  %s6769_s22 = scalar_lea.hbm %s9312_s11, 256 }
 0x6d8   : > { %p6766_p4 = scmp.ne.s32.totalorder %s9259_s25, %s6765_s26  ;;  %p6770_p9 = scmp.lt.u32.totalorder %s9259_s25, %s9312_s11 }
 0x6d9   : > { %p6771_p10 = scmp.lt.u32.totalorder %s6769_s22, %s6765_s26  ;;  %p6773_p12 = scmp.lt.u32.totalorder %s6765_s26, %s9259_s25 }
 0x6da   : > { %p6767_p7 = pnand %p6766_p4, %p6917_p5 }
 0x6db   : > { %p6772_p11 = por %p6771_p10, %p6770_p9 }
 0x6dc   : > { %p6768_p8 = pneg %p6767_p7 }
 0x6dd   : > { %p6774_p13 = por %p6773_p12, %p6772_p11 }
 0x6df   : > { %p6775_p0 = pnand %p6774_p13, %p6768_p8 }
 0x6e1   : > { %6778 = shalt.err (!%p6775_p0)
}
 0x6e2   : > { %6475 = dma.vmem_to_hbm [thread:$0]  (%p6917_p5), %s9261_s19, 128, %s9259_s25, %s5798_s21  }
 0x6e3 PF: > { %p6481_p1 = scmp.ge.s32.totalorder %s6813_s20, 2  ;;  %s5823_s29 = sand.u32 1, %s6801_s17  }
 0x6e4   : > { %s5824_s14 = scalar_lea.sflag [#allocation5], %s5823_s29 }
 0x6e5   : > { %p6478_p2 = pnand %p6481_p1, %p6921_p6 }
 0x6e7   : > { %6796 = dma.done.wait (!%p6478_p2), %s5824_s14, 128  }
 0x6e8   : > { %6798 = vsyncadd (!%p6478_p2), %s5824_s14, 4294967168  ;;  %s9519_s13 = sld [smem:[#allocation7_spill]]  ;;  %s9520_s19 = sld [smem:[#allocation8_spill]] }
 0x6e9   : > { %p21_p3 = scmp.ge.s32.totalorder %s6904_s23, 4   ;;  %s9521_s17 = smov %s6805_s18 }
 0x6ea   : > { %s9523_s20 = smov %s6904_s23 }
 0x6eb   :  { %23 = sbr.rel (!%p21_p3) target bundleno = 3 (0x3), region = 151 }
 0x6ee   : > { %s9522_s18 = smov %s9519_s13 }
 0x6f2   :  { %5829 = vsyncpa [#allocation5], 1 }
 0x6f3   :  { %5831 = vsyncpa [#allocation5 + $0x1], 1 }

</bundles_post_ra>
